<compile_context>
chip_gen: v7x
topology: tpu7x:2x2x1
jax: 0.10.0
libtpu: 0.0.40
codegen_flags: <defaults>
</compile_context>

<pallas_src>
import jax
import jax.numpy as jnp
from jax.experimental import pallas as pl
from jax.experimental.pallas import tpu as pltpu

# ---------------- model hyper-params (small, consistent with the module) ----------------
B = 8                 # batch: 8 sequences fill all 8 sublanes of a vreg (perf review item #1)
T = 8                 # decoder steps (= encoder length)
ENC_DIM = 32          # encoder_hidden_dim
OUT_DIM = 16          # out_dim
HIDDEN = 32           # LSTM hidden_dim
PRENET_HIDDEN = 16    # prenet_hidden_dim
PRENET_DROPOUT = 0.5
ZONEOUT = 0.1
REDUCTION_FACTOR = 1


def decoder_kernel(enc_ref, mask_ref,
                   pw0_ref, pb0_ref, pw1_ref, pb1_ref,
                   wih0_enc_ref, w0s_ref, bl0_ref,
                   w1s_ref, bl1_ref,
                   wf_h_ref, wf_enc_ref, wfh_pw0_ref,
                   out_ref,
                   enc_g0_ref, enc_f_ref, encfp0_ref):
    f32 = jnp.float32
    zo = ZONEOUT
    Bk = out_ref.shape[0]
    H = wf_h_ref.shape[0]
    OD = wf_h_ref.shape[1]
    PH = pb0_ref.shape[1]
    Tk = out_ref.shape[1] // OD

    # ---- hoisted non-recurrent matmuls: one pass over all T*B rows, parked in VMEM scratch
    # (not vregs) so the fully unrolled recurrence stays spill-free; per-step 1-vreg reads
    # ride the vld slots off the critical path.
    enc = enc_ref[...]                                                         # (T*B, ENC)
    enc_g0_ref[...] = (jnp.dot(enc, wih0_enc_ref[...], preferred_element_type=f32)
                       + bl0_ref[...])                                         # bl0 folded once
    enc_f = jnp.dot(enc, wf_enc_ref[...], preferred_element_type=f32)          # (T*B, OUT)
    enc_f_ref[...] = enc_f
    encfp0_ref[...] = (jnp.dot(enc_f, pw0_ref[...], preferred_element_type=f32)
                       + pb0_ref[...])                                         # (T*B, PH)

    def lstm_cell(gates, c):
        # full-width nonlinearities on the (B, 4H) = (8, 128) gates register, then slice
        # into PyTorch's i, f, g, o gate order.
        sig = jax.nn.sigmoid(gates)
        tnh = jnp.tanh(gates)
        i = sig[:, 0 * H:1 * H]
        f = sig[:, 1 * H:2 * H]
        g = tnh[:, 2 * H:3 * H]
        o = sig[:, 3 * H:4 * H]
        c_new = f * c + i * g
        return o * jnp.tanh(c_new), c_new

    h0 = jnp.zeros((Bk, H), f32)
    c0 = jnp.zeros((Bk, H), f32)
    h1 = jnp.zeros((Bk, H), f32)
    c1 = jnp.zeros((Bk, H), f32)
    # prenet layer-0 pre-activation for step 0: the go-frame is zero, so it is just the bias.
    z = jnp.broadcast_to(pb0_ref[...], (Bk, PH))

    for t in range(Tk):   # static unroll: the recurrence is inherently serial
        r0, r1 = t * Bk, (t + 1) * Bk

        # ---- Prenet (dropout always active, training=True semantics); pre-/post-ReLU
        # inverted-dropout masks are fused in the wrapper -> one multiply per layer.
        x = jnp.maximum(z, 0.0) * mask_ref[r0:r1, 0:PH]
        x = jnp.dot(x, pw1_ref[...], preferred_element_type=f32) + pb1_ref[...]
        x = jnp.maximum(x, 0.0) * mask_ref[r0:r1, PH:2 * PH]

        # ---- LSTM layer 0: encoder part (+bl0) precomputed; gate matmuls fused along the
        # contraction dim -> one MXU push/pop for [x | h0] @ [wih0_pre ; whh0].
        gates0 = enc_g0_ref[r0:r1, :] + jnp.dot(
            jnp.concatenate([x, h0], axis=-1), w0s_ref[...],
            preferred_element_type=f32)
        h0n, c0n = lstm_cell(gates0, c0)
        h0 = zo * h0 + (1.0 - zo) * h0n       # eval-mode ZoneOut blend
        c0 = zo * c0 + (1.0 - zo) * c0n

        # ---- LSTM layer 1 (same fusion) ----
        gates1 = bl1_ref[...] + jnp.dot(
            jnp.concatenate([h0, h1], axis=-1), w1s_ref[...],
            preferred_element_type=f32)
        h1n, c1n = lstm_cell(gates1, c1)
        h1 = zo * h1 + (1.0 - zo) * h1n
        c1 = zo * c1 + (1.0 - zo) * c1n

        # ---- output projection (bias=False): feat only feeds the store now, so it is OFF
        # the loop-carried critical path.
        feat = (jnp.dot(h1, wf_h_ref[...], preferred_element_type=f32)
                + enc_f_ref[r0:r1, :])
        out_ref[:, t * OD:(t + 1) * OD] = feat          # lane-dense slab, 16-lane store

        # ---- next step's prenet-L0 pre-activation via algebraic fusion:
        # feat @ pw0 + pb0 == h1 @ (wf_h @ pw0) + (enc_f[t] @ pw0 + pb0)
        if t + 1 < Tk:
            z = (jnp.dot(h1, wfh_pw0_ref[...], preferred_element_type=f32)
                 + encfp0_ref[r0:r1, :])


def no_att_decoder_forward(encoder_outs, in_lens, params, dropout_key):
    """encoder_outs: (B, T, ENC_DIM) float32 -> (B, OUT_DIM, T) float32 (inference mode)."""
    del in_lens  # unused by the forward math (kept for signature parity with the module)
    Bb, Tt, Cc = encoder_outs.shape
    PH = PRENET_HIDDEN

    # row layout t*B + b so the kernel takes static, sublane-aligned per-step row slices
    enc_flat = jnp.transpose(encoder_outs, (1, 0, 2)).reshape(Tt * Bb, Cc)

    # Inverted-dropout masks (F.dropout(..., training=True) semantics).  Four dropout
    # applications per step; the pre-/post-ReLU masks of each prenet layer are fused into
    # one product mask (exact since masks are >= 0) and packed lane-dense as (T*B, 2*PH).
    keep = 1.0 - PRENET_DROPOUT
    m = (jax.random.bernoulli(dropout_key, keep, (Tt, 4, Bb, PH)).astype(jnp.float32)
         * (1.0 / keep))
    masks = jnp.concatenate([m[:, 0] * m[:, 1], m[:, 2] * m[:, 3]],
                            axis=-1).reshape(Tt * Bb, 2 * PH)

    # Fused / precomputed weight slabs (built once per call, outside the kernel).
    w0s = jnp.concatenate([params["wih0_pre_t"], params["whh0_t"]], axis=0)   # (PH+H, 4H)
    w1s = jnp.concatenate([params["wih1_t"], params["whh1_t"]], axis=0)       # (2H,   4H)
    wfh_pw0 = jnp.dot(params["wf_h_t"], params["pw0_t"])                      # (H,    PH)

    operands = (enc_flat, masks,
                params["pw0_t"], params["pb0"], params["pw1_t"], params["pb1"],
                params["wih0_enc_t"], w0s, params["bl0"],
                w1s, params["bl1"],
                params["wf_h_t"], params["wf_enc_t"], wfh_pw0)

    out_flat = pl.pallas_call(
        decoder_kernel,
        out_shape=jax.ShapeDtypeStruct((Bb, Tt * OUT_DIM), jnp.float32),
        scratch_shapes=[
            pltpu.VMEM((Tt * Bb, 4 * HIDDEN), jnp.float32),    # enc @ wih0_enc + bl0
            pltpu.VMEM((Tt * Bb, OUT_DIM), jnp.float32),       # enc @ wf_enc
            pltpu.VMEM((Tt * Bb, PRENET_HIDDEN), jnp.float32), # (enc @ wf_enc) @ pw0 + pb0
        ],
    )(*operands)

    # (B, T*OUT_DIM) -> (B, T, OUT_DIM) -> (B, OUT_DIM, T)
    return jnp.transpose(out_flat.reshape(Bb, Tt, OUT_DIM), (0, 2, 1))


def init_params(key):
    """Deterministic parameter init (shapes follow the PyTorch module's __init__)."""
    ks = jax.random.split(key, 16)
    u = lambda k, shape, scale: jax.random.uniform(k, shape, jnp.float32, -scale, scale)

    lstm0_in = ENC_DIM + PRENET_HIDDEN
    s_h = HIDDEN ** -0.5
    s_p0 = OUT_DIM ** -0.5
    s_p1 = PRENET_HIDDEN ** -0.5
    s_f = (ENC_DIM + HIDDEN) ** -0.5

    # full matrices (as in the module), split for the concat-free encoder formulation
    wih0_t = u(ks[4], (lstm0_in, 4 * HIDDEN), s_h)            # rows: [att_c | prenet_out]
    wf_t = u(ks[12], (ENC_DIM + HIDDEN, OUT_DIM * REDUCTION_FACTOR), s_f)  # rows: [h1 | att_c]

    return dict(
        # prenet (weights stored transposed: (in, out))
        pw0_t=u(ks[0], (OUT_DIM, PRENET_HIDDEN), s_p0),
        pb0=u(ks[1], (1, PRENET_HIDDEN), s_p0),
        pw1_t=u(ks[2], (PRENET_HIDDEN, PRENET_HIDDEN), s_p1),
        pb1=u(ks[3], (1, PRENET_HIDDEN), s_p1),
        # LSTM layer 0 (gate order i,f,g,o along the 4H axis; bias_ih + bias_hh fused)
        wih0_enc_t=wih0_t[:ENC_DIM],
        wih0_pre_t=wih0_t[ENC_DIM:],
        whh0_t=u(ks[5], (HIDDEN, 4 * HIDDEN), s_h),
        bl0=u(ks[6], (1, 4 * HIDDEN), s_h) + u(ks[7], (1, 4 * HIDDEN), s_h),
        # LSTM layer 1
        wih1_t=u(ks[8], (HIDDEN, 4 * HIDDEN), s_h),
        whh1_t=u(ks[9], (HIDDEN, 4 * HIDDEN), s_h),
        bl1=u(ks[10], (1, 4 * HIDDEN), s_h) + u(ks[11], (1, 4 * HIDDEN), s_h),
        # feat_out (bias=False); reduction_factor = 1
        wf_h_t=wf_t[:HIDDEN],
        wf_enc_t=wf_t[HIDDEN:],
    )


if __name__ == "__main__":
    key = jax.random.PRNGKey(0)
    k_enc, k_par, k_drop = jax.random.split(key, 3)

    encoder_outs = jax.random.normal(k_enc, (B, T, ENC_DIM), jnp.float32)
    in_lens = jnp.full((B,), T, jnp.int32)
    params = init_params(k_par)

    fwd = jax.jit(no_att_decoder_forward)
    out = jax.block_until_ready(fwd(encoder_outs, in_lens, params, k_drop))

    assert out.shape == (B, OUT_DIM, T), out.shape
    assert out.dtype == jnp.float32
    assert bool(jnp.all(jnp.isfinite(out)))
    print("KERNEL_OK")
</pallas_src>

<mosaic_0001>
module attributes {stable_mosaic.version = 11 : i64} {
  func.func @decoder_kernel(%arg0: memref<64x32xf32, #tpu.memory_space<vmem>>, %arg1: memref<64x32xf32, #tpu.memory_space<vmem>>, %arg2: memref<16x16xf32, #tpu.memory_space<vmem>>, %arg3: memref<1x16xf32, #tpu.memory_space<vmem>>, %arg4: memref<16x16xf32, #tpu.memory_space<vmem>>, %arg5: memref<1x16xf32, #tpu.memory_space<vmem>>, %arg6: memref<32x128xf32, #tpu.memory_space<vmem>>, %arg7: memref<48x128xf32, #tpu.memory_space<vmem>>, %arg8: memref<1x128xf32, #tpu.memory_space<vmem>>, %arg9: memref<64x128xf32, #tpu.memory_space<vmem>>, %arg10: memref<1x128xf32, #tpu.memory_space<vmem>>, %arg11: memref<32x16xf32, #tpu.memory_space<vmem>>, %arg12: memref<32x16xf32, #tpu.memory_space<vmem>>, %arg13: memref<32x16xf32, #tpu.memory_space<vmem>>, %arg14: memref<8x128xf32, #tpu.memory_space<vmem>>, %arg15: memref<64x128xf32, #tpu.memory_space<vmem>>, %arg16: memref<64x16xf32, #tpu.memory_space<vmem>>, %arg17: memref<64x16xf32, #tpu.memory_space<vmem>>) attributes {dimension_semantics = [], scalar_prefetch = 0 : i64, scratch_operands = 3 : i64, tpu.core_type = #tpu.core_type<tc>} {
    %c0 = arith.constant 0 : index
    %c0_0 = arith.constant 0 : index
    %0 = vector.load %arg0[%c0, %c0_0] : memref<64x32xf32, #tpu.memory_space<vmem>>, vector<64x32xf32>
    %c0_1 = arith.constant 0 : index
    %c0_2 = arith.constant 0 : index
    %1 = vector.load %arg6[%c0_1, %c0_2] : memref<32x128xf32, #tpu.memory_space<vmem>>, vector<32x128xf32>
    %cst = arith.constant dense<0.000000e+00> : vector<64x128xf32>
    %2 = tpu.matmul %0, %1, %cst {dimension_numbers = #tpu.dot_dimension_numbers<[1], [0], [0], [1], [0, 0, 1, 1], [], []>} : vector<64x32xf32>, vector<32x128xf32>, vector<64x128xf32> -> vector<64x128xf32>
    %c0_3 = arith.constant 0 : index
    %c0_4 = arith.constant 0 : index
    %3 = vector.load %arg8[%c0_3, %c0_4] : memref<1x128xf32, #tpu.memory_space<vmem>>, vector<1x128xf32>
    %4 = vector.broadcast %3 : vector<1x128xf32> to vector<64x128xf32>
    %5 = arith.addf %2, %4 : vector<64x128xf32>
    %c0_5 = arith.constant 0 : index
    %c0_6 = arith.constant 0 : index
    %6 = vector.load %arg15[%c0_5, %c0_6] : memref<64x128xf32, #tpu.memory_space<vmem>>, vector<64x128xf32>
    tpu.vector_store %arg15[%c0_5, %c0_6], %5 {strides = array<i32>} : memref<64x128xf32, #tpu.memory_space<vmem>>, vector<64x128xf32>,
    %c0_7 = arith.constant 0 : index
    %c0_8 = arith.constant 0 : index
    %7 = vector.load %arg12[%c0_7, %c0_8] : memref<32x16xf32, #tpu.memory_space<vmem>>, vector<32x16xf32>
    %cst_9 = arith.constant dense<0.000000e+00> : vector<64x16xf32>
    %8 = tpu.matmul %0, %7, %cst_9 {dimension_numbers = #tpu.dot_dimension_numbers<[1], [0], [0], [1], [0, 0, 1, 1], [], []>} : vector<64x32xf32>, vector<32x16xf32>, vector<64x16xf32> -> vector<64x16xf32>
    %c0_10 = arith.constant 0 : index
    %c0_11 = arith.constant 0 : index
    %9 = vector.load %arg16[%c0_10, %c0_11] : memref<64x16xf32, #tpu.memory_space<vmem>>, vector<64x16xf32>
    tpu.vector_store %arg16[%c0_10, %c0_11], %8 {strides = array<i32>} : memref<64x16xf32, #tpu.memory_space<vmem>>, vector<64x16xf32>,
    %c0_12 = arith.constant 0 : index
    %c0_13 = arith.constant 0 : index
    %10 = vector.load %arg2[%c0_12, %c0_13] : memref<16x16xf32, #tpu.memory_space<vmem>>, vector<16x16xf32>
    %cst_14 = arith.constant dense<0.000000e+00> : vector<64x16xf32>
    %11 = tpu.matmul %8, %10, %cst_14 {dimension_numbers = #tpu.dot_dimension_numbers<[1], [0], [0], [1], [0, 0, 1, 1], [], []>} : vector<64x16xf32>, vector<16x16xf32>, vector<64x16xf32> -> vector<64x16xf32>
    %c0_15 = arith.constant 0 : index
    %c0_16 = arith.constant 0 : index
    %12 = vector.load %arg3[%c0_15, %c0_16] : memref<1x16xf32, #tpu.memory_space<vmem>>, vector<1x16xf32>
    %13 = vector.broadcast %12 : vector<1x16xf32> to vector<64x16xf32>
    %14 = arith.addf %11, %13 : vector<64x16xf32>
    %c0_17 = arith.constant 0 : index
    %c0_18 = arith.constant 0 : index
    %15 = vector.load %arg17[%c0_17, %c0_18] : memref<64x16xf32, #tpu.memory_space<vmem>>, vector<64x16xf32>
    tpu.vector_store %arg17[%c0_17, %c0_18], %14 {strides = array<i32>} : memref<64x16xf32, #tpu.memory_space<vmem>>, vector<64x16xf32>,
    %cst_19 = arith.constant 0.000000e+00 : f32
    %16 = vector.broadcast %cst_19 : f32 to vector<8x32xf32>
    %cst_20 = arith.constant 0.000000e+00 : f32
    %17 = vector.broadcast %cst_20 : f32 to vector<8x32xf32>
    %cst_21 = arith.constant 0.000000e+00 : f32
    %18 = vector.broadcast %cst_21 : f32 to vector<8x32xf32>
    %cst_22 = arith.constant 0.000000e+00 : f32
    %19 = vector.broadcast %cst_22 : f32 to vector<8x32xf32>
    %c0_23 = arith.constant 0 : index
    %c0_24 = arith.constant 0 : index
    %20 = vector.load %arg3[%c0_23, %c0_24] : memref<1x16xf32, #tpu.memory_space<vmem>>, vector<1x16xf32>
    %21 = vector.shape_cast %20 : vector<1x16xf32> to vector<1x16xf32>
    %22 = vector.broadcast %21 : vector<1x16xf32> to vector<8x16xf32>
    %cst_25 = arith.constant 0.000000e+00 : f32
    %23 = vector.broadcast %cst_25 : f32 to vector<8x16xf32>
    %24 = arith.maximumf %22, %23 : vector<8x16xf32>
    %c0_26 = arith.constant 0 : index
    %c0_27 = arith.constant 0 : index
    %25 = vector.load %arg1[%c0_26, %c0_27] : memref<64x32xf32, #tpu.memory_space<vmem>>, vector<8x16xf32>
    %26 = arith.mulf %24, %25 : vector<8x16xf32>
    %c0_28 = arith.constant 0 : index
    %c0_29 = arith.constant 0 : index
    %27 = vector.load %arg4[%c0_28, %c0_29] : memref<16x16xf32, #tpu.memory_space<vmem>>, vector<16x16xf32>
    %cst_30 = arith.constant dense<0.000000e+00> : vector<8x16xf32>
    %28 = tpu.matmul %26, %27, %cst_30 {dimension_numbers = #tpu.dot_dimension_numbers<[1], [0], [0], [1], [0, 0, 1, 1], [], []>} : vector<8x16xf32>, vector<16x16xf32>, vector<8x16xf32> -> vector<8x16xf32>
    %c0_31 = arith.constant 0 : index
    %c0_32 = arith.constant 0 : index
    %29 = vector.load %arg5[%c0_31, %c0_32] : memref<1x16xf32, #tpu.memory_space<vmem>>, vector<1x16xf32>
    %30 = vector.broadcast %29 : vector<1x16xf32> to vector<8x16xf32>
    %31 = arith.addf %28, %30 : vector<8x16xf32>
    %cst_33 = arith.constant 0.000000e+00 : f32
    %32 = vector.broadcast %cst_33 : f32 to vector<8x16xf32>
    %33 = arith.maximumf %31, %32 : vector<8x16xf32>
    %c0_34 = arith.constant 0 : index
    %c16 = arith.constant 16 : index
    %34 = vector.load %arg1[%c0_34, %c16] : memref<64x32xf32, #tpu.memory_space<vmem>>, vector<8x16xf32>
    %35 = arith.mulf %33, %34 : vector<8x16xf32>
    %c0_35 = arith.constant 0 : index
    %c0_36 = arith.constant 0 : index
    %36 = vector.load %arg15[%c0_35, %c0_36] : memref<64x128xf32, #tpu.memory_space<vmem>>, vector<8x128xf32>
    %37 = tpu.concatenate %35, %16 in 1 : vector<8x16xf32>, vector<8x32xf32> -> vector<8x48xf32>
    %c0_37 = arith.constant 0 : index
    %c0_38 = arith.constant 0 : index
    %38 = vector.load %arg7[%c0_37, %c0_38] : memref<48x128xf32, #tpu.memory_space<vmem>>, vector<48x128xf32>
    %cst_39 = arith.constant dense<0.000000e+00> : vector<8x128xf32>
    %39 = tpu.matmul %37, %38, %cst_39 {dimension_numbers = #tpu.dot_dimension_numbers<[1], [0], [0], [1], [0, 0, 1, 1], [], []>} : vector<8x48xf32>, vector<48x128xf32>, vector<8x128xf32> -> vector<8x128xf32>
    %40 = arith.addf %36, %39 : vector<8x128xf32>
    %41 = arith.negf %40 : vector<8x128xf32>
    %42 = math.exp %41 : vector<8x128xf32>
    %cst_40 = arith.constant 1.000000e+00 : f32
    %43 = vector.broadcast %cst_40 : f32 to vector<8x128xf32>
    %44 = arith.addf %43, %42 : vector<8x128xf32>
    %45 = arith.divf %43, %44 : vector<8x128xf32>
    %46 = math.tanh %40 : vector<8x128xf32>
    %47 = vector.extract_strided_slice %45 {offsets = [0, 0], sizes = [8, 32], strides = [1, 1]} : vector<8x128xf32> to vector<8x32xf32>
    %48 = vector.extract_strided_slice %45 {offsets = [0, 32], sizes = [8, 32], strides = [1, 1]} : vector<8x128xf32> to vector<8x32xf32>
    %49 = vector.extract_strided_slice %46 {offsets = [0, 64], sizes = [8, 32], strides = [1, 1]} : vector<8x128xf32> to vector<8x32xf32>
    %50 = vector.extract_strided_slice %45 {offsets = [0, 96], sizes = [8, 32], strides = [1, 1]} : vector<8x128xf32> to vector<8x32xf32>
    %51 = arith.mulf %48, %17 : vector<8x32xf32>
    %52 = arith.mulf %47, %49 : vector<8x32xf32>
    %53 = arith.addf %51, %52 : vector<8x32xf32>
    %54 = math.tanh %53 : vector<8x32xf32>
    %55 = arith.mulf %50, %54 : vector<8x32xf32>
    %cst_41 = arith.constant 1.000000e-01 : f32
    %56 = vector.broadcast %cst_41 : f32 to vector<8x32xf32>
    %57 = arith.mulf %56, %16 : vector<8x32xf32>
    %cst_42 = arith.constant 0.899999976 : f32
    %58 = vector.broadcast %cst_42 : f32 to vector<8x32xf32>
    %59 = arith.mulf %58, %55 : vector<8x32xf32>
    %60 = arith.addf %57, %59 : vector<8x32xf32>
    %cst_43 = arith.constant 1.000000e-01 : f32
    %61 = vector.broadcast %cst_43 : f32 to vector<8x32xf32>
    %62 = arith.mulf %61, %17 : vector<8x32xf32>
    %cst_44 = arith.constant 0.899999976 : f32
    %63 = vector.broadcast %cst_44 : f32 to vector<8x32xf32>
    %64 = arith.mulf %63, %53 : vector<8x32xf32>
    %65 = arith.addf %62, %64 : vector<8x32xf32>
    %c0_45 = arith.constant 0 : index
    %c0_46 = arith.constant 0 : index
    %66 = vector.load %arg10[%c0_45, %c0_46] : memref<1x128xf32, #tpu.memory_space<vmem>>, vector<1x128xf32>
    %67 = tpu.concatenate %60, %18 in 1 : vector<8x32xf32>, vector<8x32xf32> -> vector<8x64xf32>
    %c0_47 = arith.constant 0 : index
    %c0_48 = arith.constant 0 : index
    %68 = vector.load %arg9[%c0_47, %c0_48] : memref<64x128xf32, #tpu.memory_space<vmem>>, vector<64x128xf32>
    %cst_49 = arith.constant dense<0.000000e+00> : vector<8x128xf32>
    %69 = tpu.matmul %67, %68, %cst_49 {dimension_numbers = #tpu.dot_dimension_numbers<[1], [0], [0], [1], [0, 0, 1, 1], [], []>} : vector<8x64xf32>, vector<64x128xf32>, vector<8x128xf32> -> vector<8x128xf32>
    %70 = vector.broadcast %66 : vector<1x128xf32> to vector<8x128xf32>
    %71 = arith.addf %70, %69 : vector<8x128xf32>
    %72 = arith.negf %71 : vector<8x128xf32>
    %73 = math.exp %72 : vector<8x128xf32>
    %cst_50 = arith.constant 1.000000e+00 : f32
    %74 = vector.broadcast %cst_50 : f32 to vector<8x128xf32>
    %75 = arith.addf %74, %73 : vector<8x128xf32>
    %76 = arith.divf %74, %75 : vector<8x128xf32>
    %77 = math.tanh %71 : vector<8x128xf32>
    %78 = vector.extract_strided_slice %76 {offsets = [0, 0], sizes = [8, 32], strides = [1, 1]} : vector<8x128xf32> to vector<8x32xf32>
    %79 = vector.extract_strided_slice %76 {offsets = [0, 32], sizes = [8, 32], strides = [1, 1]} : vector<8x128xf32> to vector<8x32xf32>
    %80 = vector.extract_strided_slice %77 {offsets = [0, 64], sizes = [8, 32], strides = [1, 1]} : vector<8x128xf32> to vector<8x32xf32>
    %81 = vector.extract_strided_slice %76 {offsets = [0, 96], sizes = [8, 32], strides = [1, 1]} : vector<8x128xf32> to vector<8x32xf32>
    %82 = arith.mulf %79, %19 : vector<8x32xf32>
    %83 = arith.mulf %78, %80 : vector<8x32xf32>
    %84 = arith.addf %82, %83 : vector<8x32xf32>
    %85 = math.tanh %84 : vector<8x32xf32>
    %86 = arith.mulf %81, %85 : vector<8x32xf32>
    %cst_51 = arith.constant 1.000000e-01 : f32
    %87 = vector.broadcast %cst_51 : f32 to vector<8x32xf32>
    %88 = arith.mulf %87, %18 : vector<8x32xf32>
    %cst_52 = arith.constant 0.899999976 : f32
    %89 = vector.broadcast %cst_52 : f32 to vector<8x32xf32>
    %90 = arith.mulf %89, %86 : vector<8x32xf32>
    %91 = arith.addf %88, %90 : vector<8x32xf32>
    %cst_53 = arith.constant 1.000000e-01 : f32
    %92 = vector.broadcast %cst_53 : f32 to vector<8x32xf32>
    %93 = arith.mulf %92, %19 : vector<8x32xf32>
    %cst_54 = arith.constant 0.899999976 : f32
    %94 = vector.broadcast %cst_54 : f32 to vector<8x32xf32>
    %95 = arith.mulf %94, %84 : vector<8x32xf32>
    %96 = arith.addf %93, %95 : vector<8x32xf32>
    %c0_55 = arith.constant 0 : index
    %c0_56 = arith.constant 0 : index
    %97 = vector.load %arg11[%c0_55, %c0_56] : memref<32x16xf32, #tpu.memory_space<vmem>>, vector<32x16xf32>
    %cst_57 = arith.constant dense<0.000000e+00> : vector<8x16xf32>
    %98 = tpu.matmul %91, %97, %cst_57 {dimension_numbers = #tpu.dot_dimension_numbers<[1], [0], [0], [1], [0, 0, 1, 1], [], []>} : vector<8x32xf32>, vector<32x16xf32>, vector<8x16xf32> -> vector<8x16xf32>
    %c0_58 = arith.constant 0 : index
    %c0_59 = arith.constant 0 : index
    %99 = vector.load %arg16[%c0_58, %c0_59] : memref<64x16xf32, #tpu.memory_space<vmem>>, vector<8x16xf32>
    %100 = arith.addf %98, %99 : vector<8x16xf32>
    %c0_60 = arith.constant 0 : index
    %c0_61 = arith.constant 0 : index
    %101 = vector.load %arg14[%c0_60, %c0_61] : memref<8x128xf32, #tpu.memory_space<vmem>>, vector<8x16xf32>
    tpu.vector_store %arg14[%c0_60, %c0_61], %100 {strides = array<i32>} : memref<8x128xf32, #tpu.memory_space<vmem>>, vector<8x16xf32>,
    %c0_62 = arith.constant 0 : index
    %c0_63 = arith.constant 0 : index
    %102 = vector.load %arg13[%c0_62, %c0_63] : memref<32x16xf32, #tpu.memory_space<vmem>>, vector<32x16xf32>
    %cst_64 = arith.constant dense<0.000000e+00> : vector<8x16xf32>
    %103 = tpu.matmul %91, %102, %cst_64 {dimension_numbers = #tpu.dot_dimension_numbers<[1], [0], [0], [1], [0, 0, 1, 1], [], []>} : vector<8x32xf32>, vector<32x16xf32>, vector<8x16xf32> -> vector<8x16xf32>
    %c0_65 = arith.constant 0 : index
    %c0_66 = arith.constant 0 : index
    %104 = vector.load %arg17[%c0_65, %c0_66] : memref<64x16xf32, #tpu.memory_space<vmem>>, vector<8x16xf32>
    %105 = arith.addf %103, %104 : vector<8x16xf32>
    %cst_67 = arith.constant 0.000000e+00 : f32
    %106 = vector.broadcast %cst_67 : f32 to vector<8x16xf32>
    %107 = arith.maximumf %105, %106 : vector<8x16xf32>
    %c8 = arith.constant 8 : index
    %c0_68 = arith.constant 0 : index
    %108 = vector.load %arg1[%c8, %c0_68] : memref<64x32xf32, #tpu.memory_space<vmem>>, vector<8x16xf32>
    %109 = arith.mulf %107, %108 : vector<8x16xf32>
    %c0_69 = arith.constant 0 : index
    %c0_70 = arith.constant 0 : index
    %110 = vector.load %arg4[%c0_69, %c0_70] : memref<16x16xf32, #tpu.memory_space<vmem>>, vector<16x16xf32>
    %cst_71 = arith.constant dense<0.000000e+00> : vector<8x16xf32>
    %111 = tpu.matmul %109, %110, %cst_71 {dimension_numbers = #tpu.dot_dimension_numbers<[1], [0], [0], [1], [0, 0, 1, 1], [], []>} : vector<8x16xf32>, vector<16x16xf32>, vector<8x16xf32> -> vector<8x16xf32>
    %c0_72 = arith.constant 0 : index
    %c0_73 = arith.constant 0 : index
    %112 = vector.load %arg5[%c0_72, %c0_73] : memref<1x16xf32, #tpu.memory_space<vmem>>, vector<1x16xf32>
    %113 = vector.broadcast %112 : vector<1x16xf32> to vector<8x16xf32>
    %114 = arith.addf %111, %113 : vector<8x16xf32>
    %cst_74 = arith.constant 0.000000e+00 : f32
    %115 = vector.broadcast %cst_74 : f32 to vector<8x16xf32>
    %116 = arith.maximumf %114, %115 : vector<8x16xf32>
    %c8_75 = arith.constant 8 : index
    %c16_76 = arith.constant 16 : index
    %117 = vector.load %arg1[%c8_75, %c16_76] : memref<64x32xf32, #tpu.memory_space<vmem>>, vector<8x16xf32>
    %118 = arith.mulf %116, %117 : vector<8x16xf32>
    %c8_77 = arith.constant 8 : index
    %c0_78 = arith.constant 0 : index
    %119 = vector.load %arg15[%c8_77, %c0_78] : memref<64x128xf32, #tpu.memory_space<vmem>>, vector<8x128xf32>
    %120 = tpu.concatenate %118, %60 in 1 : vector<8x16xf32>, vector<8x32xf32> -> vector<8x48xf32>
    %c0_79 = arith.constant 0 : index
    %c0_80 = arith.constant 0 : index
    %121 = vector.load %arg7[%c0_79, %c0_80] : memref<48x128xf32, #tpu.memory_space<vmem>>, vector<48x128xf32>
    %cst_81 = arith.constant dense<0.000000e+00> : vector<8x128xf32>
    %122 = tpu.matmul %120, %121, %cst_81 {dimension_numbers = #tpu.dot_dimension_numbers<[1], [0], [0], [1], [0, 0, 1, 1], [], []>} : vector<8x48xf32>, vector<48x128xf32>, vector<8x128xf32> -> vector<8x128xf32>
    %123 = arith.addf %119, %122 : vector<8x128xf32>
    %124 = arith.negf %123 : vector<8x128xf32>
    %125 = math.exp %124 : vector<8x128xf32>
    %cst_82 = arith.constant 1.000000e+00 : f32
    %126 = vector.broadcast %cst_82 : f32 to vector<8x128xf32>
    %127 = arith.addf %126, %125 : vector<8x128xf32>
    %128 = arith.divf %126, %127 : vector<8x128xf32>
    %129 = math.tanh %123 : vector<8x128xf32>
    %130 = vector.extract_strided_slice %128 {offsets = [0, 0], sizes = [8, 32], strides = [1, 1]} : vector<8x128xf32> to vector<8x32xf32>
    %131 = vector.extract_strided_slice %128 {offsets = [0, 32], sizes = [8, 32], strides = [1, 1]} : vector<8x128xf32> to vector<8x32xf32>
    %132 = vector.extract_strided_slice %129 {offsets = [0, 64], sizes = [8, 32], strides = [1, 1]} : vector<8x128xf32> to vector<8x32xf32>
    %133 = vector.extract_strided_slice %128 {offsets = [0, 96], sizes = [8, 32], strides = [1, 1]} : vector<8x128xf32> to vector<8x32xf32>
    %134 = arith.mulf %131, %65 : vector<8x32xf32>
    %135 = arith.mulf %130, %132 : vector<8x32xf32>
    %136 = arith.addf %134, %135 : vector<8x32xf32>
    %137 = math.tanh %136 : vector<8x32xf32>
    %138 = arith.mulf %133, %137 : vector<8x32xf32>
    %cst_83 = arith.constant 1.000000e-01 : f32
    %139 = vector.broadcast %cst_83 : f32 to vector<8x32xf32>
    %140 = arith.mulf %139, %60 : vector<8x32xf32>
    %cst_84 = arith.constant 0.899999976 : f32
    %141 = vector.broadcast %cst_84 : f32 to vector<8x32xf32>
    %142 = arith.mulf %141, %138 : vector<8x32xf32>
    %143 = arith.addf %140, %142 : vector<8x32xf32>
    %cst_85 = arith.constant 1.000000e-01 : f32
    %144 = vector.broadcast %cst_85 : f32 to vector<8x32xf32>
    %145 = arith.mulf %144, %65 : vector<8x32xf32>
    %cst_86 = arith.constant 0.899999976 : f32
    %146 = vector.broadcast %cst_86 : f32 to vector<8x32xf32>
    %147 = arith.mulf %146, %136 : vector<8x32xf32>
    %148 = arith.addf %145, %147 : vector<8x32xf32>
    %c0_87 = arith.constant 0 : index
    %c0_88 = arith.constant 0 : index
    %149 = vector.load %arg10[%c0_87, %c0_88] : memref<1x128xf32, #tpu.memory_space<vmem>>, vector<1x128xf32>
    %150 = tpu.concatenate %143, %91 in 1 : vector<8x32xf32>, vector<8x32xf32> -> vector<8x64xf32>
    %c0_89 = arith.constant 0 : index
    %c0_90 = arith.constant 0 : index
    %151 = vector.load %arg9[%c0_89, %c0_90] : memref<64x128xf32, #tpu.memory_space<vmem>>, vector<64x128xf32>
    %cst_91 = arith.constant dense<0.000000e+00> : vector<8x128xf32>
    %152 = tpu.matmul %150, %151, %cst_91 {dimension_numbers = #tpu.dot_dimension_numbers<[1], [0], [0], [1], [0, 0, 1, 1], [], []>} : vector<8x64xf32>, vector<64x128xf32>, vector<8x128xf32> -> vector<8x128xf32>
    %153 = vector.broadcast %149 : vector<1x128xf32> to vector<8x128xf32>
    %154 = arith.addf %153, %152 : vector<8x128xf32>
    %155 = arith.negf %154 : vector<8x128xf32>
    %156 = math.exp %155 : vector<8x128xf32>
    %cst_92 = arith.constant 1.000000e+00 : f32
    %157 = vector.broadcast %cst_92 : f32 to vector<8x128xf32>
    %158 = arith.addf %157, %156 : vector<8x128xf32>
    %159 = arith.divf %157, %158 : vector<8x128xf32>
    %160 = math.tanh %154 : vector<8x128xf32>
    %161 = vector.extract_strided_slice %159 {offsets = [0, 0], sizes = [8, 32], strides = [1, 1]} : vector<8x128xf32> to vector<8x32xf32>
    %162 = vector.extract_strided_slice %159 {offsets = [0, 32], sizes = [8, 32], strides = [1, 1]} : vector<8x128xf32> to vector<8x32xf32>
    %163 = vector.extract_strided_slice %160 {offsets = [0, 64], sizes = [8, 32], strides = [1, 1]} : vector<8x128xf32> to vector<8x32xf32>
    %164 = vector.extract_strided_slice %159 {offsets = [0, 96], sizes = [8, 32], strides = [1, 1]} : vector<8x128xf32> to vector<8x32xf32>
    %165 = arith.mulf %162, %96 : vector<8x32xf32>
    %166 = arith.mulf %161, %163 : vector<8x32xf32>
    %167 = arith.addf %165, %166 : vector<8x32xf32>
    %168 = math.tanh %167 : vector<8x32xf32>
    %169 = arith.mulf %164, %168 : vector<8x32xf32>
    %cst_93 = arith.constant 1.000000e-01 : f32
    %170 = vector.broadcast %cst_93 : f32 to vector<8x32xf32>
    %171 = arith.mulf %170, %91 : vector<8x32xf32>
    %cst_94 = arith.constant 0.899999976 : f32
    %172 = vector.broadcast %cst_94 : f32 to vector<8x32xf32>
    %173 = arith.mulf %172, %169 : vector<8x32xf32>
    %174 = arith.addf %171, %173 : vector<8x32xf32>
    %cst_95 = arith.constant 1.000000e-01 : f32
    %175 = vector.broadcast %cst_95 : f32 to vector<8x32xf32>
    %176 = arith.mulf %175, %96 : vector<8x32xf32>
    %cst_96 = arith.constant 0.899999976 : f32
    %177 = vector.broadcast %cst_96 : f32 to vector<8x32xf32>
    %178 = arith.mulf %177, %167 : vector<8x32xf32>
    %179 = arith.addf %176, %178 : vector<8x32xf32>
    %c0_97 = arith.constant 0 : index
    %c0_98 = arith.constant 0 : index
    %180 = vector.load %arg11[%c0_97, %c0_98] : memref<32x16xf32, #tpu.memory_space<vmem>>, vector<32x16xf32>
    %cst_99 = arith.constant dense<0.000000e+00> : vector<8x16xf32>
    %181 = tpu.matmul %174, %180, %cst_99 {dimension_numbers = #tpu.dot_dimension_numbers<[1], [0], [0], [1], [0, 0, 1, 1], [], []>} : vector<8x32xf32>, vector<32x16xf32>, vector<8x16xf32> -> vector<8x16xf32>
    %c8_100 = arith.constant 8 : index
    %c0_101 = arith.constant 0 : index
    %182 = vector.load %arg16[%c8_100, %c0_101] : memref<64x16xf32, #tpu.memory_space<vmem>>, vector<8x16xf32>
    %183 = arith.addf %181, %182 : vector<8x16xf32>
    %c0_102 = arith.constant 0 : index
    %c16_103 = arith.constant 16 : index
    %184 = vector.load %arg14[%c0_102, %c16_103] : memref<8x128xf32, #tpu.memory_space<vmem>>, vector<8x16xf32>
    tpu.vector_store %arg14[%c0_102, %c16_103], %183 {strides = array<i32>} : memref<8x128xf32, #tpu.memory_space<vmem>>, vector<8x16xf32>,
    %c0_104 = arith.constant 0 : index
    %c0_105 = arith.constant 0 : index
    %185 = vector.load %arg13[%c0_104, %c0_105] : memref<32x16xf32, #tpu.memory_space<vmem>>, vector<32x16xf32>
    %cst_106 = arith.constant dense<0.000000e+00> : vector<8x16xf32>
    %186 = tpu.matmul %174, %185, %cst_106 {dimension_numbers = #tpu.dot_dimension_numbers<[1], [0], [0], [1], [0, 0, 1, 1], [], []>} : vector<8x32xf32>, vector<32x16xf32>, vector<8x16xf32> -> vector<8x16xf32>
    %c8_107 = arith.constant 8 : index
    %c0_108 = arith.constant 0 : index
    %187 = vector.load %arg17[%c8_107, %c0_108] : memref<64x16xf32, #tpu.memory_space<vmem>>, vector<8x16xf32>
    %188 = arith.addf %186, %187 : vector<8x16xf32>
    %cst_109 = arith.constant 0.000000e+00 : f32
    %189 = vector.broadcast %cst_109 : f32 to vector<8x16xf32>
    %190 = arith.maximumf %188, %189 : vector<8x16xf32>
    %c16_110 = arith.constant 16 : index
    %c0_111 = arith.constant 0 : index
    %191 = vector.load %arg1[%c16_110, %c0_111] : memref<64x32xf32, #tpu.memory_space<vmem>>, vector<8x16xf32>
    %192 = arith.mulf %190, %191 : vector<8x16xf32>
    %c0_112 = arith.constant 0 : index
    %c0_113 = arith.constant 0 : index
    %193 = vector.load %arg4[%c0_112, %c0_113] : memref<16x16xf32, #tpu.memory_space<vmem>>, vector<16x16xf32>
    %cst_114 = arith.constant dense<0.000000e+00> : vector<8x16xf32>
    %194 = tpu.matmul %192, %193, %cst_114 {dimension_numbers = #tpu.dot_dimension_numbers<[1], [0], [0], [1], [0, 0, 1, 1], [], []>} : vector<8x16xf32>, vector<16x16xf32>, vector<8x16xf32> -> vector<8x16xf32>
    %c0_115 = arith.constant 0 : index
    %c0_116 = arith.constant 0 : index
    %195 = vector.load %arg5[%c0_115, %c0_116] : memref<1x16xf32, #tpu.memory_space<vmem>>, vector<1x16xf32>
    %196 = vector.broadcast %195 : vector<1x16xf32> to vector<8x16xf32>
    %197 = arith.addf %194, %196 : vector<8x16xf32>
    %cst_117 = arith.constant 0.000000e+00 : f32
    %198 = vector.broadcast %cst_117 : f32 to vector<8x16xf32>
    %199 = arith.maximumf %197, %198 : vector<8x16xf32>
    %c16_118 = arith.constant 16 : index
    %c16_119 = arith.constant 16 : index
    %200 = vector.load %arg1[%c16_118, %c16_119] : memref<64x32xf32, #tpu.memory_space<vmem>>, vector<8x16xf32>
    %201 = arith.mulf %199, %200 : vector<8x16xf32>
    %c16_120 = arith.constant 16 : index
    %c0_121 = arith.constant 0 : index
    %202 = vector.load %arg15[%c16_120, %c0_121] : memref<64x128xf32, #tpu.memory_space<vmem>>, vector<8x128xf32>
    %203 = tpu.concatenate %201, %143 in 1 : vector<8x16xf32>, vector<8x32xf32> -> vector<8x48xf32>
    %c0_122 = arith.constant 0 : index
    %c0_123 = arith.constant 0 : index
    %204 = vector.load %arg7[%c0_122, %c0_123] : memref<48x128xf32, #tpu.memory_space<vmem>>, vector<48x128xf32>
    %cst_124 = arith.constant dense<0.000000e+00> : vector<8x128xf32>
    %205 = tpu.matmul %203, %204, %cst_124 {dimension_numbers = #tpu.dot_dimension_numbers<[1], [0], [0], [1], [0, 0, 1, 1], [], []>} : vector<8x48xf32>, vector<48x128xf32>, vector<8x128xf32> -> vector<8x128xf32>
    %206 = arith.addf %202, %205 : vector<8x128xf32>
    %207 = arith.negf %206 : vector<8x128xf32>
    %208 = math.exp %207 : vector<8x128xf32>
    %cst_125 = arith.constant 1.000000e+00 : f32
    %209 = vector.broadcast %cst_125 : f32 to vector<8x128xf32>
    %210 = arith.addf %209, %208 : vector<8x128xf32>
    %211 = arith.divf %209, %210 : vector<8x128xf32>
    %212 = math.tanh %206 : vector<8x128xf32>
    %213 = vector.extract_strided_slice %211 {offsets = [0, 0], sizes = [8, 32], strides = [1, 1]} : vector<8x128xf32> to vector<8x32xf32>
    %214 = vector.extract_strided_slice %211 {offsets = [0, 32], sizes = [8, 32], strides = [1, 1]} : vector<8x128xf32> to vector<8x32xf32>
    %215 = vector.extract_strided_slice %212 {offsets = [0, 64], sizes = [8, 32], strides = [1, 1]} : vector<8x128xf32> to vector<8x32xf32>
    %216 = vector.extract_strided_slice %211 {offsets = [0, 96], sizes = [8, 32], strides = [1, 1]} : vector<8x128xf32> to vector<8x32xf32>
    %217 = arith.mulf %214, %148 : vector<8x32xf32>
    %218 = arith.mulf %213, %215 : vector<8x32xf32>
    %219 = arith.addf %217, %218 : vector<8x32xf32>
    %220 = math.tanh %219 : vector<8x32xf32>
    %221 = arith.mulf %216, %220 : vector<8x32xf32>
    %cst_126 = arith.constant 1.000000e-01 : f32
    %222 = vector.broadcast %cst_126 : f32 to vector<8x32xf32>
    %223 = arith.mulf %222, %143 : vector<8x32xf32>
    %cst_127 = arith.constant 0.899999976 : f32
    %224 = vector.broadcast %cst_127 : f32 to vector<8x32xf32>
    %225 = arith.mulf %224, %221 : vector<8x32xf32>
    %226 = arith.addf %223, %225 : vector<8x32xf32>
    %cst_128 = arith.constant 1.000000e-01 : f32
    %227 = vector.broadcast %cst_128 : f32 to vector<8x32xf32>
    %228 = arith.mulf %227, %148 : vector<8x32xf32>
    %cst_129 = arith.constant 0.899999976 : f32
    %229 = vector.broadcast %cst_129 : f32 to vector<8x32xf32>
    %230 = arith.mulf %229, %219 : vector<8x32xf32>
    %231 = arith.addf %228, %230 : vector<8x32xf32>
    %c0_130 = arith.constant 0 : index
    %c0_131 = arith.constant 0 : index
    %232 = vector.load %arg10[%c0_130, %c0_131] : memref<1x128xf32, #tpu.memory_space<vmem>>, vector<1x128xf32>
    %233 = tpu.concatenate %226, %174 in 1 : vector<8x32xf32>, vector<8x32xf32> -> vector<8x64xf32>
    %c0_132 = arith.constant 0 : index
    %c0_133 = arith.constant 0 : index
    %234 = vector.load %arg9[%c0_132, %c0_133] : memref<64x128xf32, #tpu.memory_space<vmem>>, vector<64x128xf32>
    %cst_134 = arith.constant dense<0.000000e+00> : vector<8x128xf32>
    %235 = tpu.matmul %233, %234, %cst_134 {dimension_numbers = #tpu.dot_dimension_numbers<[1], [0], [0], [1], [0, 0, 1, 1], [], []>} : vector<8x64xf32>, vector<64x128xf32>, vector<8x128xf32> -> vector<8x128xf32>
    %236 = vector.broadcast %232 : vector<1x128xf32> to vector<8x128xf32>
    %237 = arith.addf %236, %235 : vector<8x128xf32>
    %238 = arith.negf %237 : vector<8x128xf32>
    %239 = math.exp %238 : vector<8x128xf32>
    %cst_135 = arith.constant 1.000000e+00 : f32
    %240 = vector.broadcast %cst_135 : f32 to vector<8x128xf32>
    %241 = arith.addf %240, %239 : vector<8x128xf32>
    %242 = arith.divf %240, %241 : vector<8x128xf32>
    %243 = math.tanh %237 : vector<8x128xf32>
    %244 = vector.extract_strided_slice %242 {offsets = [0, 0], sizes = [8, 32], strides = [1, 1]} : vector<8x128xf32> to vector<8x32xf32>
    %245 = vector.extract_strided_slice %242 {offsets = [0, 32], sizes = [8, 32], strides = [1, 1]} : vector<8x128xf32> to vector<8x32xf32>
    %246 = vector.extract_strided_slice %243 {offsets = [0, 64], sizes = [8, 32], strides = [1, 1]} : vector<8x128xf32> to vector<8x32xf32>
    %247 = vector.extract_strided_slice %242 {offsets = [0, 96], sizes = [8, 32], strides = [1, 1]} : vector<8x128xf32> to vector<8x32xf32>
    %248 = arith.mulf %245, %179 : vector<8x32xf32>
    %249 = arith.mulf %244, %246 : vector<8x32xf32>
    %250 = arith.addf %248, %249 : vector<8x32xf32>
    %251 = math.tanh %250 : vector<8x32xf32>
    %252 = arith.mulf %247, %251 : vector<8x32xf32>
    %cst_136 = arith.constant 1.000000e-01 : f32
    %253 = vector.broadcast %cst_136 : f32 to vector<8x32xf32>
    %254 = arith.mulf %253, %174 : vector<8x32xf32>
    %cst_137 = arith.constant 0.899999976 : f32
    %255 = vector.broadcast %cst_137 : f32 to vector<8x32xf32>
    %256 = arith.mulf %255, %252 : vector<8x32xf32>
    %257 = arith.addf %254, %256 : vector<8x32xf32>
    %cst_138 = arith.constant 1.000000e-01 : f32
    %258 = vector.broadcast %cst_138 : f32 to vector<8x32xf32>
    %259 = arith.mulf %258, %179 : vector<8x32xf32>
    %cst_139 = arith.constant 0.899999976 : f32
    %260 = vector.broadcast %cst_139 : f32 to vector<8x32xf32>
    %261 = arith.mulf %260, %250 : vector<8x32xf32>
    %262 = arith.addf %259, %261 : vector<8x32xf32>
    %c0_140 = arith.constant 0 : index
    %c0_141 = arith.constant 0 : index
    %263 = vector.load %arg11[%c0_140, %c0_141] : memref<32x16xf32, #tpu.memory_space<vmem>>, vector<32x16xf32>
    %cst_142 = arith.constant dense<0.000000e+00> : vector<8x16xf32>
    %264 = tpu.matmul %257, %263, %cst_142 {dimension_numbers = #tpu.dot_dimension_numbers<[1], [0], [0], [1], [0, 0, 1, 1], [], []>} : vector<8x32xf32>, vector<32x16xf32>, vector<8x16xf32> -> vector<8x16xf32>
    %c16_143 = arith.constant 16 : index
    %c0_144 = arith.constant 0 : index
    %265 = vector.load %arg16[%c16_143, %c0_144] : memref<64x16xf32, #tpu.memory_space<vmem>>, vector<8x16xf32>
    %266 = arith.addf %264, %265 : vector<8x16xf32>
    %c0_145 = arith.constant 0 : index
    %c32 = arith.constant 32 : index
    %267 = vector.load %arg14[%c0_145, %c32] : memref<8x128xf32, #tpu.memory_space<vmem>>, vector<8x16xf32>
    tpu.vector_store %arg14[%c0_145, %c32], %266 {strides = array<i32>} : memref<8x128xf32, #tpu.memory_space<vmem>>, vector<8x16xf32>,
    %c0_146 = arith.constant 0 : index
    %c0_147 = arith.constant 0 : index
    %268 = vector.load %arg13[%c0_146, %c0_147] : memref<32x16xf32, #tpu.memory_space<vmem>>, vector<32x16xf32>
    %cst_148 = arith.constant dense<0.000000e+00> : vector<8x16xf32>
    %269 = tpu.matmul %257, %268, %cst_148 {dimension_numbers = #tpu.dot_dimension_numbers<[1], [0], [0], [1], [0, 0, 1, 1], [], []>} : vector<8x32xf32>, vector<32x16xf32>, vector<8x16xf32> -> vector<8x16xf32>
    %c16_149 = arith.constant 16 : index
    %c0_150 = arith.constant 0 : index
    %270 = vector.load %arg17[%c16_149, %c0_150] : memref<64x16xf32, #tpu.memory_space<vmem>>, vector<8x16xf32>
    %271 = arith.addf %269, %270 : vector<8x16xf32>
    %cst_151 = arith.constant 0.000000e+00 : f32
    %272 = vector.broadcast %cst_151 : f32 to vector<8x16xf32>
    %273 = arith.maximumf %271, %272 : vector<8x16xf32>
    %c24 = arith.constant 24 : index
    %c0_152 = arith.constant 0 : index
    %274 = vector.load %arg1[%c24, %c0_152] : memref<64x32xf32, #tpu.memory_space<vmem>>, vector<8x16xf32>
    %275 = arith.mulf %273, %274 : vector<8x16xf32>
    %c0_153 = arith.constant 0 : index
    %c0_154 = arith.constant 0 : index
    %276 = vector.load %arg4[%c0_153, %c0_154] : memref<16x16xf32, #tpu.memory_space<vmem>>, vector<16x16xf32>
    %cst_155 = arith.constant dense<0.000000e+00> : vector<8x16xf32>
    %277 = tpu.matmul %275, %276, %cst_155 {dimension_numbers = #tpu.dot_dimension_numbers<[1], [0], [0], [1], [0, 0, 1, 1], [], []>} : vector<8x16xf32>, vector<16x16xf32>, vector<8x16xf32> -> vector<8x16xf32>
    %c0_156 = arith.constant 0 : index
    %c0_157 = arith.constant 0 : index
    %278 = vector.load %arg5[%c0_156, %c0_157] : memref<1x16xf32, #tpu.memory_space<vmem>>, vector<1x16xf32>
    %279 = vector.broadcast %278 : vector<1x16xf32> to vector<8x16xf32>
    %280 = arith.addf %277, %279 : vector<8x16xf32>
    %cst_158 = arith.constant 0.000000e+00 : f32
    %281 = vector.broadcast %cst_158 : f32 to vector<8x16xf32>
    %282 = arith.maximumf %280, %281 : vector<8x16xf32>
    %c24_159 = arith.constant 24 : index
    %c16_160 = arith.constant 16 : index
    %283 = vector.load %arg1[%c24_159, %c16_160] : memref<64x32xf32, #tpu.memory_space<vmem>>, vector<8x16xf32>
    %284 = arith.mulf %282, %283 : vector<8x16xf32>
    %c24_161 = arith.constant 24 : index
    %c0_162 = arith.constant 0 : index
    %285 = vector.load %arg15[%c24_161, %c0_162] : memref<64x128xf32, #tpu.memory_space<vmem>>, vector<8x128xf32>
    %286 = tpu.concatenate %284, %226 in 1 : vector<8x16xf32>, vector<8x32xf32> -> vector<8x48xf32>
    %c0_163 = arith.constant 0 : index
    %c0_164 = arith.constant 0 : index
    %287 = vector.load %arg7[%c0_163, %c0_164] : memref<48x128xf32, #tpu.memory_space<vmem>>, vector<48x128xf32>
    %cst_165 = arith.constant dense<0.000000e+00> : vector<8x128xf32>
    %288 = tpu.matmul %286, %287, %cst_165 {dimension_numbers = #tpu.dot_dimension_numbers<[1], [0], [0], [1], [0, 0, 1, 1], [], []>} : vector<8x48xf32>, vector<48x128xf32>, vector<8x128xf32> -> vector<8x128xf32>
    %289 = arith.addf %285, %288 : vector<8x128xf32>
    %290 = arith.negf %289 : vector<8x128xf32>
    %291 = math.exp %290 : vector<8x128xf32>
    %cst_166 = arith.constant 1.000000e+00 : f32
    %292 = vector.broadcast %cst_166 : f32 to vector<8x128xf32>
    %293 = arith.addf %292, %291 : vector<8x128xf32>
    %294 = arith.divf %292, %293 : vector<8x128xf32>
    %295 = math.tanh %289 : vector<8x128xf32>
    %296 = vector.extract_strided_slice %294 {offsets = [0, 0], sizes = [8, 32], strides = [1, 1]} : vector<8x128xf32> to vector<8x32xf32>
    %297 = vector.extract_strided_slice %294 {offsets = [0, 32], sizes = [8, 32], strides = [1, 1]} : vector<8x128xf32> to vector<8x32xf32>
    %298 = vector.extract_strided_slice %295 {offsets = [0, 64], sizes = [8, 32], strides = [1, 1]} : vector<8x128xf32> to vector<8x32xf32>
    %299 = vector.extract_strided_slice %294 {offsets = [0, 96], sizes = [8, 32], strides = [1, 1]} : vector<8x128xf32> to vector<8x32xf32>
    %300 = arith.mulf %297, %231 : vector<8x32xf32>
    %301 = arith.mulf %296, %298 : vector<8x32xf32>
    %302 = arith.addf %300, %301 : vector<8x32xf32>
    %303 = math.tanh %302 : vector<8x32xf32>
    %304 = arith.mulf %299, %303 : vector<8x32xf32>
    %cst_167 = arith.constant 1.000000e-01 : f32
    %305 = vector.broadcast %cst_167 : f32 to vector<8x32xf32>
    %306 = arith.mulf %305, %226 : vector<8x32xf32>
    %cst_168 = arith.constant 0.899999976 : f32
    %307 = vector.broadcast %cst_168 : f32 to vector<8x32xf32>
    %308 = arith.mulf %307, %304 : vector<8x32xf32>
    %309 = arith.addf %306, %308 : vector<8x32xf32>
    %cst_169 = arith.constant 1.000000e-01 : f32
    %310 = vector.broadcast %cst_169 : f32 to vector<8x32xf32>
    %311 = arith.mulf %310, %231 : vector<8x32xf32>
    %cst_170 = arith.constant 0.899999976 : f32
    %312 = vector.broadcast %cst_170 : f32 to vector<8x32xf32>
    %313 = arith.mulf %312, %302 : vector<8x32xf32>
    %314 = arith.addf %311, %313 : vector<8x32xf32>
    %c0_171 = arith.constant 0 : index
    %c0_172 = arith.constant 0 : index
    %315 = vector.load %arg10[%c0_171, %c0_172] : memref<1x128xf32, #tpu.memory_space<vmem>>, vector<1x128xf32>
    %316 = tpu.concatenate %309, %257 in 1 : vector<8x32xf32>, vector<8x32xf32> -> vector<8x64xf32>
    %c0_173 = arith.constant 0 : index
    %c0_174 = arith.constant 0 : index
    %317 = vector.load %arg9[%c0_173, %c0_174] : memref<64x128xf32, #tpu.memory_space<vmem>>, vector<64x128xf32>
    %cst_175 = arith.constant dense<0.000000e+00> : vector<8x128xf32>
    %318 = tpu.matmul %316, %317, %cst_175 {dimension_numbers = #tpu.dot_dimension_numbers<[1], [0], [0], [1], [0, 0, 1, 1], [], []>} : vector<8x64xf32>, vector<64x128xf32>, vector<8x128xf32> -> vector<8x128xf32>
    %319 = vector.broadcast %315 : vector<1x128xf32> to vector<8x128xf32>
    %320 = arith.addf %319, %318 : vector<8x128xf32>
    %321 = arith.negf %320 : vector<8x128xf32>
    %322 = math.exp %321 : vector<8x128xf32>
    %cst_176 = arith.constant 1.000000e+00 : f32
    %323 = vector.broadcast %cst_176 : f32 to vector<8x128xf32>
    %324 = arith.addf %323, %322 : vector<8x128xf32>
    %325 = arith.divf %323, %324 : vector<8x128xf32>
    %326 = math.tanh %320 : vector<8x128xf32>
    %327 = vector.extract_strided_slice %325 {offsets = [0, 0], sizes = [8, 32], strides = [1, 1]} : vector<8x128xf32> to vector<8x32xf32>
    %328 = vector.extract_strided_slice %325 {offsets = [0, 32], sizes = [8, 32], strides = [1, 1]} : vector<8x128xf32> to vector<8x32xf32>
    %329 = vector.extract_strided_slice %326 {offsets = [0, 64], sizes = [8, 32], strides = [1, 1]} : vector<8x128xf32> to vector<8x32xf32>
    %330 = vector.extract_strided_slice %325 {offsets = [0, 96], sizes = [8, 32], strides = [1, 1]} : vector<8x128xf32> to vector<8x32xf32>
    %331 = arith.mulf %328, %262 : vector<8x32xf32>
    %332 = arith.mulf %327, %329 : vector<8x32xf32>
    %333 = arith.addf %331, %332 : vector<8x32xf32>
    %334 = math.tanh %333 : vector<8x32xf32>
    %335 = arith.mulf %330, %334 : vector<8x32xf32>
    %cst_177 = arith.constant 1.000000e-01 : f32
    %336 = vector.broadcast %cst_177 : f32 to vector<8x32xf32>
    %337 = arith.mulf %336, %257 : vector<8x32xf32>
    %cst_178 = arith.constant 0.899999976 : f32
    %338 = vector.broadcast %cst_178 : f32 to vector<8x32xf32>
    %339 = arith.mulf %338, %335 : vector<8x32xf32>
    %340 = arith.addf %337, %339 : vector<8x32xf32>
    %cst_179 = arith.constant 1.000000e-01 : f32
    %341 = vector.broadcast %cst_179 : f32 to vector<8x32xf32>
    %342 = arith.mulf %341, %262 : vector<8x32xf32>
    %cst_180 = arith.constant 0.899999976 : f32
    %343 = vector.broadcast %cst_180 : f32 to vector<8x32xf32>
    %344 = arith.mulf %343, %333 : vector<8x32xf32>
    %345 = arith.addf %342, %344 : vector<8x32xf32>
    %c0_181 = arith.constant 0 : index
    %c0_182 = arith.constant 0 : index
    %346 = vector.load %arg11[%c0_181, %c0_182] : memref<32x16xf32, #tpu.memory_space<vmem>>, vector<32x16xf32>
    %cst_183 = arith.constant dense<0.000000e+00> : vector<8x16xf32>
    %347 = tpu.matmul %340, %346, %cst_183 {dimension_numbers = #tpu.dot_dimension_numbers<[1], [0], [0], [1], [0, 0, 1, 1], [], []>} : vector<8x32xf32>, vector<32x16xf32>, vector<8x16xf32> -> vector<8x16xf32>
    %c24_184 = arith.constant 24 : index
    %c0_185 = arith.constant 0 : index
    %348 = vector.load %arg16[%c24_184, %c0_185] : memref<64x16xf32, #tpu.memory_space<vmem>>, vector<8x16xf32>
    %349 = arith.addf %347, %348 : vector<8x16xf32>
    %c0_186 = arith.constant 0 : index
    %c48 = arith.constant 48 : index
    %350 = vector.load %arg14[%c0_186, %c48] : memref<8x128xf32, #tpu.memory_space<vmem>>, vector<8x16xf32>
    tpu.vector_store %arg14[%c0_186, %c48], %349 {strides = array<i32>} : memref<8x128xf32, #tpu.memory_space<vmem>>, vector<8x16xf32>,
    %c0_187 = arith.constant 0 : index
    %c0_188 = arith.constant 0 : index
    %351 = vector.load %arg13[%c0_187, %c0_188] : memref<32x16xf32, #tpu.memory_space<vmem>>, vector<32x16xf32>
    %cst_189 = arith.constant dense<0.000000e+00> : vector<8x16xf32>
    %352 = tpu.matmul %340, %351, %cst_189 {dimension_numbers = #tpu.dot_dimension_numbers<[1], [0], [0], [1], [0, 0, 1, 1], [], []>} : vector<8x32xf32>, vector<32x16xf32>, vector<8x16xf32> -> vector<8x16xf32>
    %c24_190 = arith.constant 24 : index
    %c0_191 = arith.constant 0 : index
    %353 = vector.load %arg17[%c24_190, %c0_191] : memref<64x16xf32, #tpu.memory_space<vmem>>, vector<8x16xf32>
    %354 = arith.addf %352, %353 : vector<8x16xf32>
    %cst_192 = arith.constant 0.000000e+00 : f32
    %355 = vector.broadcast %cst_192 : f32 to vector<8x16xf32>
    %356 = arith.maximumf %354, %355 : vector<8x16xf32>
    %c32_193 = arith.constant 32 : index
    %c0_194 = arith.constant 0 : index
    %357 = vector.load %arg1[%c32_193, %c0_194] : memref<64x32xf32, #tpu.memory_space<vmem>>, vector<8x16xf32>
    %358 = arith.mulf %356, %357 : vector<8x16xf32>
    %c0_195 = arith.constant 0 : index
    %c0_196 = arith.constant 0 : index
    %359 = vector.load %arg4[%c0_195, %c0_196] : memref<16x16xf32, #tpu.memory_space<vmem>>, vector<16x16xf32>
    %cst_197 = arith.constant dense<0.000000e+00> : vector<8x16xf32>
    %360 = tpu.matmul %358, %359, %cst_197 {dimension_numbers = #tpu.dot_dimension_numbers<[1], [0], [0], [1], [0, 0, 1, 1], [], []>} : vector<8x16xf32>, vector<16x16xf32>, vector<8x16xf32> -> vector<8x16xf32>
    %c0_198 = arith.constant 0 : index
    %c0_199 = arith.constant 0 : index
    %361 = vector.load %arg5[%c0_198, %c0_199] : memref<1x16xf32, #tpu.memory_space<vmem>>, vector<1x16xf32>
    %362 = vector.broadcast %361 : vector<1x16xf32> to vector<8x16xf32>
    %363 = arith.addf %360, %362 : vector<8x16xf32>
    %cst_200 = arith.constant 0.000000e+00 : f32
    %364 = vector.broadcast %cst_200 : f32 to vector<8x16xf32>
    %365 = arith.maximumf %363, %364 : vector<8x16xf32>
    %c32_201 = arith.constant 32 : index
    %c16_202 = arith.constant 16 : index
    %366 = vector.load %arg1[%c32_201, %c16_202] : memref<64x32xf32, #tpu.memory_space<vmem>>, vector<8x16xf32>
    %367 = arith.mulf %365, %366 : vector<8x16xf32>
    %c32_203 = arith.constant 32 : index
    %c0_204 = arith.constant 0 : index
    %368 = vector.load %arg15[%c32_203, %c0_204] : memref<64x128xf32, #tpu.memory_space<vmem>>, vector<8x128xf32>
    %369 = tpu.concatenate %367, %309 in 1 : vector<8x16xf32>, vector<8x32xf32> -> vector<8x48xf32>
    %c0_205 = arith.constant 0 : index
    %c0_206 = arith.constant 0 : index
    %370 = vector.load %arg7[%c0_205, %c0_206] : memref<48x128xf32, #tpu.memory_space<vmem>>, vector<48x128xf32>
    %cst_207 = arith.constant dense<0.000000e+00> : vector<8x128xf32>
    %371 = tpu.matmul %369, %370, %cst_207 {dimension_numbers = #tpu.dot_dimension_numbers<[1], [0], [0], [1], [0, 0, 1, 1], [], []>} : vector<8x48xf32>, vector<48x128xf32>, vector<8x128xf32> -> vector<8x128xf32>
    %372 = arith.addf %368, %371 : vector<8x128xf32>
    %373 = arith.negf %372 : vector<8x128xf32>
    %374 = math.exp %373 : vector<8x128xf32>
    %cst_208 = arith.constant 1.000000e+00 : f32
    %375 = vector.broadcast %cst_208 : f32 to vector<8x128xf32>
    %376 = arith.addf %375, %374 : vector<8x128xf32>
    %377 = arith.divf %375, %376 : vector<8x128xf32>
    %378 = math.tanh %372 : vector<8x128xf32>
    %379 = vector.extract_strided_slice %377 {offsets = [0, 0], sizes = [8, 32], strides = [1, 1]} : vector<8x128xf32> to vector<8x32xf32>
    %380 = vector.extract_strided_slice %377 {offsets = [0, 32], sizes = [8, 32], strides = [1, 1]} : vector<8x128xf32> to vector<8x32xf32>
    %381 = vector.extract_strided_slice %378 {offsets = [0, 64], sizes = [8, 32], strides = [1, 1]} : vector<8x128xf32> to vector<8x32xf32>
    %382 = vector.extract_strided_slice %377 {offsets = [0, 96], sizes = [8, 32], strides = [1, 1]} : vector<8x128xf32> to vector<8x32xf32>
    %383 = arith.mulf %380, %314 : vector<8x32xf32>
    %384 = arith.mulf %379, %381 : vector<8x32xf32>
    %385 = arith.addf %383, %384 : vector<8x32xf32>
    %386 = math.tanh %385 : vector<8x32xf32>
    %387 = arith.mulf %382, %386 : vector<8x32xf32>
    %cst_209 = arith.constant 1.000000e-01 : f32
    %388 = vector.broadcast %cst_209 : f32 to vector<8x32xf32>
    %389 = arith.mulf %388, %309 : vector<8x32xf32>
    %cst_210 = arith.constant 0.899999976 : f32
    %390 = vector.broadcast %cst_210 : f32 to vector<8x32xf32>
    %391 = arith.mulf %390, %387 : vector<8x32xf32>
    %392 = arith.addf %389, %391 : vector<8x32xf32>
    %cst_211 = arith.constant 1.000000e-01 : f32
    %393 = vector.broadcast %cst_211 : f32 to vector<8x32xf32>
    %394 = arith.mulf %393, %314 : vector<8x32xf32>
    %cst_212 = arith.constant 0.899999976 : f32
    %395 = vector.broadcast %cst_212 : f32 to vector<8x32xf32>
    %396 = arith.mulf %395, %385 : vector<8x32xf32>
    %397 = arith.addf %394, %396 : vector<8x32xf32>
    %c0_213 = arith.constant 0 : index
    %c0_214 = arith.constant 0 : index
    %398 = vector.load %arg10[%c0_213, %c0_214] : memref<1x128xf32, #tpu.memory_space<vmem>>, vector<1x128xf32>
    %399 = tpu.concatenate %392, %340 in 1 : vector<8x32xf32>, vector<8x32xf32> -> vector<8x64xf32>
    %c0_215 = arith.constant 0 : index
    %c0_216 = arith.constant 0 : index
    %400 = vector.load %arg9[%c0_215, %c0_216] : memref<64x128xf32, #tpu.memory_space<vmem>>, vector<64x128xf32>
    %cst_217 = arith.constant dense<0.000000e+00> : vector<8x128xf32>
    %401 = tpu.matmul %399, %400, %cst_217 {dimension_numbers = #tpu.dot_dimension_numbers<[1], [0], [0], [1], [0, 0, 1, 1], [], []>} : vector<8x64xf32>, vector<64x128xf32>, vector<8x128xf32> -> vector<8x128xf32>
    %402 = vector.broadcast %398 : vector<1x128xf32> to vector<8x128xf32>
    %403 = arith.addf %402, %401 : vector<8x128xf32>
    %404 = arith.negf %403 : vector<8x128xf32>
    %405 = math.exp %404 : vector<8x128xf32>
    %cst_218 = arith.constant 1.000000e+00 : f32
    %406 = vector.broadcast %cst_218 : f32 to vector<8x128xf32>
    %407 = arith.addf %406, %405 : vector<8x128xf32>
    %408 = arith.divf %406, %407 : vector<8x128xf32>
    %409 = math.tanh %403 : vector<8x128xf32>
    %410 = vector.extract_strided_slice %408 {offsets = [0, 0], sizes = [8, 32], strides = [1, 1]} : vector<8x128xf32> to vector<8x32xf32>
    %411 = vector.extract_strided_slice %408 {offsets = [0, 32], sizes = [8, 32], strides = [1, 1]} : vector<8x128xf32> to vector<8x32xf32>
    %412 = vector.extract_strided_slice %409 {offsets = [0, 64], sizes = [8, 32], strides = [1, 1]} : vector<8x128xf32> to vector<8x32xf32>
    %413 = vector.extract_strided_slice %408 {offsets = [0, 96], sizes = [8, 32], strides = [1, 1]} : vector<8x128xf32> to vector<8x32xf32>
    %414 = arith.mulf %411, %345 : vector<8x32xf32>
    %415 = arith.mulf %410, %412 : vector<8x32xf32>
    %416 = arith.addf %414, %415 : vector<8x32xf32>
    %417 = math.tanh %416 : vector<8x32xf32>
    %418 = arith.mulf %413, %417 : vector<8x32xf32>
    %cst_219 = arith.constant 1.000000e-01 : f32
    %419 = vector.broadcast %cst_219 : f32 to vector<8x32xf32>
    %420 = arith.mulf %419, %340 : vector<8x32xf32>
    %cst_220 = arith.constant 0.899999976 : f32
    %421 = vector.broadcast %cst_220 : f32 to vector<8x32xf32>
    %422 = arith.mulf %421, %418 : vector<8x32xf32>
    %423 = arith.addf %420, %422 : vector<8x32xf32>
    %cst_221 = arith.constant 1.000000e-01 : f32
    %424 = vector.broadcast %cst_221 : f32 to vector<8x32xf32>
    %425 = arith.mulf %424, %345 : vector<8x32xf32>
    %cst_222 = arith.constant 0.899999976 : f32
    %426 = vector.broadcast %cst_222 : f32 to vector<8x32xf32>
    %427 = arith.mulf %426, %416 : vector<8x32xf32>
    %428 = arith.addf %425, %427 : vector<8x32xf32>
    %c0_223 = arith.constant 0 : index
    %c0_224 = arith.constant 0 : index
    %429 = vector.load %arg11[%c0_223, %c0_224] : memref<32x16xf32, #tpu.memory_space<vmem>>, vector<32x16xf32>
    %cst_225 = arith.constant dense<0.000000e+00> : vector<8x16xf32>
    %430 = tpu.matmul %423, %429, %cst_225 {dimension_numbers = #tpu.dot_dimension_numbers<[1], [0], [0], [1], [0, 0, 1, 1], [], []>} : vector<8x32xf32>, vector<32x16xf32>, vector<8x16xf32> -> vector<8x16xf32>
    %c32_226 = arith.constant 32 : index
    %c0_227 = arith.constant 0 : index
    %431 = vector.load %arg16[%c32_226, %c0_227] : memref<64x16xf32, #tpu.memory_space<vmem>>, vector<8x16xf32>
    %432 = arith.addf %430, %431 : vector<8x16xf32>
    %c0_228 = arith.constant 0 : index
    %c64 = arith.constant 64 : index
    %433 = vector.load %arg14[%c0_228, %c64] : memref<8x128xf32, #tpu.memory_space<vmem>>, vector<8x16xf32>
    tpu.vector_store %arg14[%c0_228, %c64], %432 {strides = array<i32>} : memref<8x128xf32, #tpu.memory_space<vmem>>, vector<8x16xf32>,
    %c0_229 = arith.constant 0 : index
    %c0_230 = arith.constant 0 : index
    %434 = vector.load %arg13[%c0_229, %c0_230] : memref<32x16xf32, #tpu.memory_space<vmem>>, vector<32x16xf32>
    %cst_231 = arith.constant dense<0.000000e+00> : vector<8x16xf32>
    %435 = tpu.matmul %423, %434, %cst_231 {dimension_numbers = #tpu.dot_dimension_numbers<[1], [0], [0], [1], [0, 0, 1, 1], [], []>} : vector<8x32xf32>, vector<32x16xf32>, vector<8x16xf32> -> vector<8x16xf32>
    %c32_232 = arith.constant 32 : index
    %c0_233 = arith.constant 0 : index
    %436 = vector.load %arg17[%c32_232, %c0_233] : memref<64x16xf32, #tpu.memory_space<vmem>>, vector<8x16xf32>
    %437 = arith.addf %435, %436 : vector<8x16xf32>
    %cst_234 = arith.constant 0.000000e+00 : f32
    %438 = vector.broadcast %cst_234 : f32 to vector<8x16xf32>
    %439 = arith.maximumf %437, %438 : vector<8x16xf32>
    %c40 = arith.constant 40 : index
    %c0_235 = arith.constant 0 : index
    %440 = vector.load %arg1[%c40, %c0_235] : memref<64x32xf32, #tpu.memory_space<vmem>>, vector<8x16xf32>
    %441 = arith.mulf %439, %440 : vector<8x16xf32>
    %c0_236 = arith.constant 0 : index
    %c0_237 = arith.constant 0 : index
    %442 = vector.load %arg4[%c0_236, %c0_237] : memref<16x16xf32, #tpu.memory_space<vmem>>, vector<16x16xf32>
    %cst_238 = arith.constant dense<0.000000e+00> : vector<8x16xf32>
    %443 = tpu.matmul %441, %442, %cst_238 {dimension_numbers = #tpu.dot_dimension_numbers<[1], [0], [0], [1], [0, 0, 1, 1], [], []>} : vector<8x16xf32>, vector<16x16xf32>, vector<8x16xf32> -> vector<8x16xf32>
    %c0_239 = arith.constant 0 : index
    %c0_240 = arith.constant 0 : index
    %444 = vector.load %arg5[%c0_239, %c0_240] : memref<1x16xf32, #tpu.memory_space<vmem>>, vector<1x16xf32>
    %445 = vector.broadcast %444 : vector<1x16xf32> to vector<8x16xf32>
    %446 = arith.addf %443, %445 : vector<8x16xf32>
    %cst_241 = arith.constant 0.000000e+00 : f32
    %447 = vector.broadcast %cst_241 : f32 to vector<8x16xf32>
    %448 = arith.maximumf %446, %447 : vector<8x16xf32>
    %c40_242 = arith.constant 40 : index
    %c16_243 = arith.constant 16 : index
    %449 = vector.load %arg1[%c40_242, %c16_243] : memref<64x32xf32, #tpu.memory_space<vmem>>, vector<8x16xf32>
    %450 = arith.mulf %448, %449 : vector<8x16xf32>
    %c40_244 = arith.constant 40 : index
    %c0_245 = arith.constant 0 : index
    %451 = vector.load %arg15[%c40_244, %c0_245] : memref<64x128xf32, #tpu.memory_space<vmem>>, vector<8x128xf32>
    %452 = tpu.concatenate %450, %392 in 1 : vector<8x16xf32>, vector<8x32xf32> -> vector<8x48xf32>
    %c0_246 = arith.constant 0 : index
    %c0_247 = arith.constant 0 : index
    %453 = vector.load %arg7[%c0_246, %c0_247] : memref<48x128xf32, #tpu.memory_space<vmem>>, vector<48x128xf32>
    %cst_248 = arith.constant dense<0.000000e+00> : vector<8x128xf32>
    %454 = tpu.matmul %452, %453, %cst_248 {dimension_numbers = #tpu.dot_dimension_numbers<[1], [0], [0], [1], [0, 0, 1, 1], [], []>} : vector<8x48xf32>, vector<48x128xf32>, vector<8x128xf32> -> vector<8x128xf32>
    %455 = arith.addf %451, %454 : vector<8x128xf32>
    %456 = arith.negf %455 : vector<8x128xf32>
    %457 = math.exp %456 : vector<8x128xf32>
    %cst_249 = arith.constant 1.000000e+00 : f32
    %458 = vector.broadcast %cst_249 : f32 to vector<8x128xf32>
    %459 = arith.addf %458, %457 : vector<8x128xf32>
    %460 = arith.divf %458, %459 : vector<8x128xf32>
    %461 = math.tanh %455 : vector<8x128xf32>
    %462 = vector.extract_strided_slice %460 {offsets = [0, 0], sizes = [8, 32], strides = [1, 1]} : vector<8x128xf32> to vector<8x32xf32>
    %463 = vector.extract_strided_slice %460 {offsets = [0, 32], sizes = [8, 32], strides = [1, 1]} : vector<8x128xf32> to vector<8x32xf32>
    %464 = vector.extract_strided_slice %461 {offsets = [0, 64], sizes = [8, 32], strides = [1, 1]} : vector<8x128xf32> to vector<8x32xf32>
    %465 = vector.extract_strided_slice %460 {offsets = [0, 96], sizes = [8, 32], strides = [1, 1]} : vector<8x128xf32> to vector<8x32xf32>
    %466 = arith.mulf %463, %397 : vector<8x32xf32>
    %467 = arith.mulf %462, %464 : vector<8x32xf32>
    %468 = arith.addf %466, %467 : vector<8x32xf32>
    %469 = math.tanh %468 : vector<8x32xf32>
    %470 = arith.mulf %465, %469 : vector<8x32xf32>
    %cst_250 = arith.constant 1.000000e-01 : f32
    %471 = vector.broadcast %cst_250 : f32 to vector<8x32xf32>
    %472 = arith.mulf %471, %392 : vector<8x32xf32>
    %cst_251 = arith.constant 0.899999976 : f32
    %473 = vector.broadcast %cst_251 : f32 to vector<8x32xf32>
    %474 = arith.mulf %473, %470 : vector<8x32xf32>
    %475 = arith.addf %472, %474 : vector<8x32xf32>
    %cst_252 = arith.constant 1.000000e-01 : f32
    %476 = vector.broadcast %cst_252 : f32 to vector<8x32xf32>
    %477 = arith.mulf %476, %397 : vector<8x32xf32>
    %cst_253 = arith.constant 0.899999976 : f32
    %478 = vector.broadcast %cst_253 : f32 to vector<8x32xf32>
    %479 = arith.mulf %478, %468 : vector<8x32xf32>
    %480 = arith.addf %477, %479 : vector<8x32xf32>
    %c0_254 = arith.constant 0 : index
    %c0_255 = arith.constant 0 : index
    %481 = vector.load %arg10[%c0_254, %c0_255] : memref<1x128xf32, #tpu.memory_space<vmem>>, vector<1x128xf32>
    %482 = tpu.concatenate %475, %423 in 1 : vector<8x32xf32>, vector<8x32xf32> -> vector<8x64xf32>
    %c0_256 = arith.constant 0 : index
    %c0_257 = arith.constant 0 : index
    %483 = vector.load %arg9[%c0_256, %c0_257] : memref<64x128xf32, #tpu.memory_space<vmem>>, vector<64x128xf32>
    %cst_258 = arith.constant dense<0.000000e+00> : vector<8x128xf32>
    %484 = tpu.matmul %482, %483, %cst_258 {dimension_numbers = #tpu.dot_dimension_numbers<[1], [0], [0], [1], [0, 0, 1, 1], [], []>} : vector<8x64xf32>, vector<64x128xf32>, vector<8x128xf32> -> vector<8x128xf32>
    %485 = vector.broadcast %481 : vector<1x128xf32> to vector<8x128xf32>
    %486 = arith.addf %485, %484 : vector<8x128xf32>
    %487 = arith.negf %486 : vector<8x128xf32>
    %488 = math.exp %487 : vector<8x128xf32>
    %cst_259 = arith.constant 1.000000e+00 : f32
    %489 = vector.broadcast %cst_259 : f32 to vector<8x128xf32>
    %490 = arith.addf %489, %488 : vector<8x128xf32>
    %491 = arith.divf %489, %490 : vector<8x128xf32>
    %492 = math.tanh %486 : vector<8x128xf32>
    %493 = vector.extract_strided_slice %491 {offsets = [0, 0], sizes = [8, 32], strides = [1, 1]} : vector<8x128xf32> to vector<8x32xf32>
    %494 = vector.extract_strided_slice %491 {offsets = [0, 32], sizes = [8, 32], strides = [1, 1]} : vector<8x128xf32> to vector<8x32xf32>
    %495 = vector.extract_strided_slice %492 {offsets = [0, 64], sizes = [8, 32], strides = [1, 1]} : vector<8x128xf32> to vector<8x32xf32>
    %496 = vector.extract_strided_slice %491 {offsets = [0, 96], sizes = [8, 32], strides = [1, 1]} : vector<8x128xf32> to vector<8x32xf32>
    %497 = arith.mulf %494, %428 : vector<8x32xf32>
    %498 = arith.mulf %493, %495 : vector<8x32xf32>
    %499 = arith.addf %497, %498 : vector<8x32xf32>
    %500 = math.tanh %499 : vector<8x32xf32>
    %501 = arith.mulf %496, %500 : vector<8x32xf32>
    %cst_260 = arith.constant 1.000000e-01 : f32
    %502 = vector.broadcast %cst_260 : f32 to vector<8x32xf32>
    %503 = arith.mulf %502, %423 : vector<8x32xf32>
    %cst_261 = arith.constant 0.899999976 : f32
    %504 = vector.broadcast %cst_261 : f32 to vector<8x32xf32>
    %505 = arith.mulf %504, %501 : vector<8x32xf32>
    %506 = arith.addf %503, %505 : vector<8x32xf32>
    %cst_262 = arith.constant 1.000000e-01 : f32
    %507 = vector.broadcast %cst_262 : f32 to vector<8x32xf32>
    %508 = arith.mulf %507, %428 : vector<8x32xf32>
    %cst_263 = arith.constant 0.899999976 : f32
    %509 = vector.broadcast %cst_263 : f32 to vector<8x32xf32>
    %510 = arith.mulf %509, %499 : vector<8x32xf32>
    %511 = arith.addf %508, %510 : vector<8x32xf32>
    %c0_264 = arith.constant 0 : index
    %c0_265 = arith.constant 0 : index
    %512 = vector.load %arg11[%c0_264, %c0_265] : memref<32x16xf32, #tpu.memory_space<vmem>>, vector<32x16xf32>
    %cst_266 = arith.constant dense<0.000000e+00> : vector<8x16xf32>
    %513 = tpu.matmul %506, %512, %cst_266 {dimension_numbers = #tpu.dot_dimension_numbers<[1], [0], [0], [1], [0, 0, 1, 1], [], []>} : vector<8x32xf32>, vector<32x16xf32>, vector<8x16xf32> -> vector<8x16xf32>
    %c40_267 = arith.constant 40 : index
    %c0_268 = arith.constant 0 : index
    %514 = vector.load %arg16[%c40_267, %c0_268] : memref<64x16xf32, #tpu.memory_space<vmem>>, vector<8x16xf32>
    %515 = arith.addf %513, %514 : vector<8x16xf32>
    %c0_269 = arith.constant 0 : index
    %c80 = arith.constant 80 : index
    %516 = vector.load %arg14[%c0_269, %c80] : memref<8x128xf32, #tpu.memory_space<vmem>>, vector<8x16xf32>
    tpu.vector_store %arg14[%c0_269, %c80], %515 {strides = array<i32>} : memref<8x128xf32, #tpu.memory_space<vmem>>, vector<8x16xf32>,
    %c0_270 = arith.constant 0 : index
    %c0_271 = arith.constant 0 : index
    %517 = vector.load %arg13[%c0_270, %c0_271] : memref<32x16xf32, #tpu.memory_space<vmem>>, vector<32x16xf32>
    %cst_272 = arith.constant dense<0.000000e+00> : vector<8x16xf32>
    %518 = tpu.matmul %506, %517, %cst_272 {dimension_numbers = #tpu.dot_dimension_numbers<[1], [0], [0], [1], [0, 0, 1, 1], [], []>} : vector<8x32xf32>, vector<32x16xf32>, vector<8x16xf32> -> vector<8x16xf32>
    %c40_273 = arith.constant 40 : index
    %c0_274 = arith.constant 0 : index
    %519 = vector.load %arg17[%c40_273, %c0_274] : memref<64x16xf32, #tpu.memory_space<vmem>>, vector<8x16xf32>
    %520 = arith.addf %518, %519 : vector<8x16xf32>
    %cst_275 = arith.constant 0.000000e+00 : f32
    %521 = vector.broadcast %cst_275 : f32 to vector<8x16xf32>
    %522 = arith.maximumf %520, %521 : vector<8x16xf32>
    %c48_276 = arith.constant 48 : index
    %c0_277 = arith.constant 0 : index
    %523 = vector.load %arg1[%c48_276, %c0_277] : memref<64x32xf32, #tpu.memory_space<vmem>>, vector<8x16xf32>
    %524 = arith.mulf %522, %523 : vector<8x16xf32>
    %c0_278 = arith.constant 0 : index
    %c0_279 = arith.constant 0 : index
    %525 = vector.load %arg4[%c0_278, %c0_279] : memref<16x16xf32, #tpu.memory_space<vmem>>, vector<16x16xf32>
    %cst_280 = arith.constant dense<0.000000e+00> : vector<8x16xf32>
    %526 = tpu.matmul %524, %525, %cst_280 {dimension_numbers = #tpu.dot_dimension_numbers<[1], [0], [0], [1], [0, 0, 1, 1], [], []>} : vector<8x16xf32>, vector<16x16xf32>, vector<8x16xf32> -> vector<8x16xf32>
    %c0_281 = arith.constant 0 : index
    %c0_282 = arith.constant 0 : index
    %527 = vector.load %arg5[%c0_281, %c0_282] : memref<1x16xf32, #tpu.memory_space<vmem>>, vector<1x16xf32>
    %528 = vector.broadcast %527 : vector<1x16xf32> to vector<8x16xf32>
    %529 = arith.addf %526, %528 : vector<8x16xf32>
    %cst_283 = arith.constant 0.000000e+00 : f32
    %530 = vector.broadcast %cst_283 : f32 to vector<8x16xf32>
    %531 = arith.maximumf %529, %530 : vector<8x16xf32>
    %c48_284 = arith.constant 48 : index
    %c16_285 = arith.constant 16 : index
    %532 = vector.load %arg1[%c48_284, %c16_285] : memref<64x32xf32, #tpu.memory_space<vmem>>, vector<8x16xf32>
    %533 = arith.mulf %531, %532 : vector<8x16xf32>
    %c48_286 = arith.constant 48 : index
    %c0_287 = arith.constant 0 : index
    %534 = vector.load %arg15[%c48_286, %c0_287] : memref<64x128xf32, #tpu.memory_space<vmem>>, vector<8x128xf32>
    %535 = tpu.concatenate %533, %475 in 1 : vector<8x16xf32>, vector<8x32xf32> -> vector<8x48xf32>
    %c0_288 = arith.constant 0 : index
    %c0_289 = arith.constant 0 : index
    %536 = vector.load %arg7[%c0_288, %c0_289] : memref<48x128xf32, #tpu.memory_space<vmem>>, vector<48x128xf32>
    %cst_290 = arith.constant dense<0.000000e+00> : vector<8x128xf32>
    %537 = tpu.matmul %535, %536, %cst_290 {dimension_numbers = #tpu.dot_dimension_numbers<[1], [0], [0], [1], [0, 0, 1, 1], [], []>} : vector<8x48xf32>, vector<48x128xf32>, vector<8x128xf32> -> vector<8x128xf32>
    %538 = arith.addf %534, %537 : vector<8x128xf32>
    %539 = arith.negf %538 : vector<8x128xf32>
    %540 = math.exp %539 : vector<8x128xf32>
    %cst_291 = arith.constant 1.000000e+00 : f32
    %541 = vector.broadcast %cst_291 : f32 to vector<8x128xf32>
    %542 = arith.addf %541, %540 : vector<8x128xf32>
    %543 = arith.divf %541, %542 : vector<8x128xf32>
    %544 = math.tanh %538 : vector<8x128xf32>
    %545 = vector.extract_strided_slice %543 {offsets = [0, 0], sizes = [8, 32], strides = [1, 1]} : vector<8x128xf32> to vector<8x32xf32>
    %546 = vector.extract_strided_slice %543 {offsets = [0, 32], sizes = [8, 32], strides = [1, 1]} : vector<8x128xf32> to vector<8x32xf32>
    %547 = vector.extract_strided_slice %544 {offsets = [0, 64], sizes = [8, 32], strides = [1, 1]} : vector<8x128xf32> to vector<8x32xf32>
    %548 = vector.extract_strided_slice %543 {offsets = [0, 96], sizes = [8, 32], strides = [1, 1]} : vector<8x128xf32> to vector<8x32xf32>
    %549 = arith.mulf %546, %480 : vector<8x32xf32>
    %550 = arith.mulf %545, %547 : vector<8x32xf32>
    %551 = arith.addf %549, %550 : vector<8x32xf32>
    %552 = math.tanh %551 : vector<8x32xf32>
    %553 = arith.mulf %548, %552 : vector<8x32xf32>
    %cst_292 = arith.constant 1.000000e-01 : f32
    %554 = vector.broadcast %cst_292 : f32 to vector<8x32xf32>
    %555 = arith.mulf %554, %475 : vector<8x32xf32>
    %cst_293 = arith.constant 0.899999976 : f32
    %556 = vector.broadcast %cst_293 : f32 to vector<8x32xf32>
    %557 = arith.mulf %556, %553 : vector<8x32xf32>
    %558 = arith.addf %555, %557 : vector<8x32xf32>
    %cst_294 = arith.constant 1.000000e-01 : f32
    %559 = vector.broadcast %cst_294 : f32 to vector<8x32xf32>
    %560 = arith.mulf %559, %480 : vector<8x32xf32>
    %cst_295 = arith.constant 0.899999976 : f32
    %561 = vector.broadcast %cst_295 : f32 to vector<8x32xf32>
    %562 = arith.mulf %561, %551 : vector<8x32xf32>
    %563 = arith.addf %560, %562 : vector<8x32xf32>
    %c0_296 = arith.constant 0 : index
    %c0_297 = arith.constant 0 : index
    %564 = vector.load %arg10[%c0_296, %c0_297] : memref<1x128xf32, #tpu.memory_space<vmem>>, vector<1x128xf32>
    %565 = tpu.concatenate %558, %506 in 1 : vector<8x32xf32>, vector<8x32xf32> -> vector<8x64xf32>
    %c0_298 = arith.constant 0 : index
    %c0_299 = arith.constant 0 : index
    %566 = vector.load %arg9[%c0_298, %c0_299] : memref<64x128xf32, #tpu.memory_space<vmem>>, vector<64x128xf32>
    %cst_300 = arith.constant dense<0.000000e+00> : vector<8x128xf32>
    %567 = tpu.matmul %565, %566, %cst_300 {dimension_numbers = #tpu.dot_dimension_numbers<[1], [0], [0], [1], [0, 0, 1, 1], [], []>} : vector<8x64xf32>, vector<64x128xf32>, vector<8x128xf32> -> vector<8x128xf32>
    %568 = vector.broadcast %564 : vector<1x128xf32> to vector<8x128xf32>
    %569 = arith.addf %568, %567 : vector<8x128xf32>
    %570 = arith.negf %569 : vector<8x128xf32>
    %571 = math.exp %570 : vector<8x128xf32>
    %cst_301 = arith.constant 1.000000e+00 : f32
    %572 = vector.broadcast %cst_301 : f32 to vector<8x128xf32>
    %573 = arith.addf %572, %571 : vector<8x128xf32>
    %574 = arith.divf %572, %573 : vector<8x128xf32>
    %575 = math.tanh %569 : vector<8x128xf32>
    %576 = vector.extract_strided_slice %574 {offsets = [0, 0], sizes = [8, 32], strides = [1, 1]} : vector<8x128xf32> to vector<8x32xf32>
    %577 = vector.extract_strided_slice %574 {offsets = [0, 32], sizes = [8, 32], strides = [1, 1]} : vector<8x128xf32> to vector<8x32xf32>
    %578 = vector.extract_strided_slice %575 {offsets = [0, 64], sizes = [8, 32], strides = [1, 1]} : vector<8x128xf32> to vector<8x32xf32>
    %579 = vector.extract_strided_slice %574 {offsets = [0, 96], sizes = [8, 32], strides = [1, 1]} : vector<8x128xf32> to vector<8x32xf32>
    %580 = arith.mulf %577, %511 : vector<8x32xf32>
    %581 = arith.mulf %576, %578 : vector<8x32xf32>
    %582 = arith.addf %580, %581 : vector<8x32xf32>
    %583 = math.tanh %582 : vector<8x32xf32>
    %584 = arith.mulf %579, %583 : vector<8x32xf32>
    %cst_302 = arith.constant 1.000000e-01 : f32
    %585 = vector.broadcast %cst_302 : f32 to vector<8x32xf32>
    %586 = arith.mulf %585, %506 : vector<8x32xf32>
    %cst_303 = arith.constant 0.899999976 : f32
    %587 = vector.broadcast %cst_303 : f32 to vector<8x32xf32>
    %588 = arith.mulf %587, %584 : vector<8x32xf32>
    %589 = arith.addf %586, %588 : vector<8x32xf32>
    %cst_304 = arith.constant 1.000000e-01 : f32
    %590 = vector.broadcast %cst_304 : f32 to vector<8x32xf32>
    %591 = arith.mulf %590, %511 : vector<8x32xf32>
    %cst_305 = arith.constant 0.899999976 : f32
    %592 = vector.broadcast %cst_305 : f32 to vector<8x32xf32>
    %593 = arith.mulf %592, %582 : vector<8x32xf32>
    %594 = arith.addf %591, %593 : vector<8x32xf32>
    %c0_306 = arith.constant 0 : index
    %c0_307 = arith.constant 0 : index
    %595 = vector.load %arg11[%c0_306, %c0_307] : memref<32x16xf32, #tpu.memory_space<vmem>>, vector<32x16xf32>
    %cst_308 = arith.constant dense<0.000000e+00> : vector<8x16xf32>
    %596 = tpu.matmul %589, %595, %cst_308 {dimension_numbers = #tpu.dot_dimension_numbers<[1], [0], [0], [1], [0, 0, 1, 1], [], []>} : vector<8x32xf32>, vector<32x16xf32>, vector<8x16xf32> -> vector<8x16xf32>
    %c48_309 = arith.constant 48 : index
    %c0_310 = arith.constant 0 : index
    %597 = vector.load %arg16[%c48_309, %c0_310] : memref<64x16xf32, #tpu.memory_space<vmem>>, vector<8x16xf32>
    %598 = arith.addf %596, %597 : vector<8x16xf32>
    %c0_311 = arith.constant 0 : index
    %c96 = arith.constant 96 : index
    %599 = vector.load %arg14[%c0_311, %c96] : memref<8x128xf32, #tpu.memory_space<vmem>>, vector<8x16xf32>
    tpu.vector_store %arg14[%c0_311, %c96], %598 {strides = array<i32>} : memref<8x128xf32, #tpu.memory_space<vmem>>, vector<8x16xf32>,
    %c0_312 = arith.constant 0 : index
    %c0_313 = arith.constant 0 : index
    %600 = vector.load %arg13[%c0_312, %c0_313] : memref<32x16xf32, #tpu.memory_space<vmem>>, vector<32x16xf32>
    %cst_314 = arith.constant dense<0.000000e+00> : vector<8x16xf32>
    %601 = tpu.matmul %589, %600, %cst_314 {dimension_numbers = #tpu.dot_dimension_numbers<[1], [0], [0], [1], [0, 0, 1, 1], [], []>} : vector<8x32xf32>, vector<32x16xf32>, vector<8x16xf32> -> vector<8x16xf32>
    %c48_315 = arith.constant 48 : index
    %c0_316 = arith.constant 0 : index
    %602 = vector.load %arg17[%c48_315, %c0_316] : memref<64x16xf32, #tpu.memory_space<vmem>>, vector<8x16xf32>
    %603 = arith.addf %601, %602 : vector<8x16xf32>
    %cst_317 = arith.constant 0.000000e+00 : f32
    %604 = vector.broadcast %cst_317 : f32 to vector<8x16xf32>
    %605 = arith.maximumf %603, %604 : vector<8x16xf32>
    %c56 = arith.constant 56 : index
    %c0_318 = arith.constant 0 : index
    %606 = vector.load %arg1[%c56, %c0_318] : memref<64x32xf32, #tpu.memory_space<vmem>>, vector<8x16xf32>
    %607 = arith.mulf %605, %606 : vector<8x16xf32>
    %c0_319 = arith.constant 0 : index
    %c0_320 = arith.constant 0 : index
    %608 = vector.load %arg4[%c0_319, %c0_320] : memref<16x16xf32, #tpu.memory_space<vmem>>, vector<16x16xf32>
    %cst_321 = arith.constant dense<0.000000e+00> : vector<8x16xf32>
    %609 = tpu.matmul %607, %608, %cst_321 {dimension_numbers = #tpu.dot_dimension_numbers<[1], [0], [0], [1], [0, 0, 1, 1], [], []>} : vector<8x16xf32>, vector<16x16xf32>, vector<8x16xf32> -> vector<8x16xf32>
    %c0_322 = arith.constant 0 : index
    %c0_323 = arith.constant 0 : index
    %610 = vector.load %arg5[%c0_322, %c0_323] : memref<1x16xf32, #tpu.memory_space<vmem>>, vector<1x16xf32>
    %611 = vector.broadcast %610 : vector<1x16xf32> to vector<8x16xf32>
    %612 = arith.addf %609, %611 : vector<8x16xf32>
    %cst_324 = arith.constant 0.000000e+00 : f32
    %613 = vector.broadcast %cst_324 : f32 to vector<8x16xf32>
    %614 = arith.maximumf %612, %613 : vector<8x16xf32>
    %c56_325 = arith.constant 56 : index
    %c16_326 = arith.constant 16 : index
    %615 = vector.load %arg1[%c56_325, %c16_326] : memref<64x32xf32, #tpu.memory_space<vmem>>, vector<8x16xf32>
    %616 = arith.mulf %614, %615 : vector<8x16xf32>
    %c56_327 = arith.constant 56 : index
    %c0_328 = arith.constant 0 : index
    %617 = vector.load %arg15[%c56_327, %c0_328] : memref<64x128xf32, #tpu.memory_space<vmem>>, vector<8x128xf32>
    %618 = tpu.concatenate %616, %558 in 1 : vector<8x16xf32>, vector<8x32xf32> -> vector<8x48xf32>
    %c0_329 = arith.constant 0 : index
    %c0_330 = arith.constant 0 : index
    %619 = vector.load %arg7[%c0_329, %c0_330] : memref<48x128xf32, #tpu.memory_space<vmem>>, vector<48x128xf32>
    %cst_331 = arith.constant dense<0.000000e+00> : vector<8x128xf32>
    %620 = tpu.matmul %618, %619, %cst_331 {dimension_numbers = #tpu.dot_dimension_numbers<[1], [0], [0], [1], [0, 0, 1, 1], [], []>} : vector<8x48xf32>, vector<48x128xf32>, vector<8x128xf32> -> vector<8x128xf32>
    %621 = arith.addf %617, %620 : vector<8x128xf32>
    %622 = arith.negf %621 : vector<8x128xf32>
    %623 = math.exp %622 : vector<8x128xf32>
    %cst_332 = arith.constant 1.000000e+00 : f32
    %624 = vector.broadcast %cst_332 : f32 to vector<8x128xf32>
    %625 = arith.addf %624, %623 : vector<8x128xf32>
    %626 = arith.divf %624, %625 : vector<8x128xf32>
    %627 = math.tanh %621 : vector<8x128xf32>
    %628 = vector.extract_strided_slice %626 {offsets = [0, 0], sizes = [8, 32], strides = [1, 1]} : vector<8x128xf32> to vector<8x32xf32>
    %629 = vector.extract_strided_slice %626 {offsets = [0, 32], sizes = [8, 32], strides = [1, 1]} : vector<8x128xf32> to vector<8x32xf32>
    %630 = vector.extract_strided_slice %627 {offsets = [0, 64], sizes = [8, 32], strides = [1, 1]} : vector<8x128xf32> to vector<8x32xf32>
    %631 = vector.extract_strided_slice %626 {offsets = [0, 96], sizes = [8, 32], strides = [1, 1]} : vector<8x128xf32> to vector<8x32xf32>
    %632 = arith.mulf %629, %563 : vector<8x32xf32>
    %633 = arith.mulf %628, %630 : vector<8x32xf32>
    %634 = arith.addf %632, %633 : vector<8x32xf32>
    %635 = math.tanh %634 : vector<8x32xf32>
    %636 = arith.mulf %631, %635 : vector<8x32xf32>
    %cst_333 = arith.constant 1.000000e-01 : f32
    %637 = vector.broadcast %cst_333 : f32 to vector<8x32xf32>
    %638 = arith.mulf %637, %558 : vector<8x32xf32>
    %cst_334 = arith.constant 0.899999976 : f32
    %639 = vector.broadcast %cst_334 : f32 to vector<8x32xf32>
    %640 = arith.mulf %639, %636 : vector<8x32xf32>
    %641 = arith.addf %638, %640 : vector<8x32xf32>
    %c0_335 = arith.constant 0 : index
    %c0_336 = arith.constant 0 : index
    %642 = vector.load %arg10[%c0_335, %c0_336] : memref<1x128xf32, #tpu.memory_space<vmem>>, vector<1x128xf32>
    %643 = tpu.concatenate %641, %589 in 1 : vector<8x32xf32>, vector<8x32xf32> -> vector<8x64xf32>
    %c0_337 = arith.constant 0 : index
    %c0_338 = arith.constant 0 : index
    %644 = vector.load %arg9[%c0_337, %c0_338] : memref<64x128xf32, #tpu.memory_space<vmem>>, vector<64x128xf32>
    %cst_339 = arith.constant dense<0.000000e+00> : vector<8x128xf32>
    %645 = tpu.matmul %643, %644, %cst_339 {dimension_numbers = #tpu.dot_dimension_numbers<[1], [0], [0], [1], [0, 0, 1, 1], [], []>} : vector<8x64xf32>, vector<64x128xf32>, vector<8x128xf32> -> vector<8x128xf32>
    %646 = vector.broadcast %642 : vector<1x128xf32> to vector<8x128xf32>
    %647 = arith.addf %646, %645 : vector<8x128xf32>
    %648 = arith.negf %647 : vector<8x128xf32>
    %649 = math.exp %648 : vector<8x128xf32>
    %cst_340 = arith.constant 1.000000e+00 : f32
    %650 = vector.broadcast %cst_340 : f32 to vector<8x128xf32>
    %651 = arith.addf %650, %649 : vector<8x128xf32>
    %652 = arith.divf %650, %651 : vector<8x128xf32>
    %653 = math.tanh %647 : vector<8x128xf32>
    %654 = vector.extract_strided_slice %652 {offsets = [0, 0], sizes = [8, 32], strides = [1, 1]} : vector<8x128xf32> to vector<8x32xf32>
    %655 = vector.extract_strided_slice %652 {offsets = [0, 32], sizes = [8, 32], strides = [1, 1]} : vector<8x128xf32> to vector<8x32xf32>
    %656 = vector.extract_strided_slice %653 {offsets = [0, 64], sizes = [8, 32], strides = [1, 1]} : vector<8x128xf32> to vector<8x32xf32>
    %657 = vector.extract_strided_slice %652 {offsets = [0, 96], sizes = [8, 32], strides = [1, 1]} : vector<8x128xf32> to vector<8x32xf32>
    %658 = arith.mulf %655, %594 : vector<8x32xf32>
    %659 = arith.mulf %654, %656 : vector<8x32xf32>
    %660 = arith.addf %658, %659 : vector<8x32xf32>
    %661 = math.tanh %660 : vector<8x32xf32>
    %662 = arith.mulf %657, %661 : vector<8x32xf32>
    %cst_341 = arith.constant 1.000000e-01 : f32
    %663 = vector.broadcast %cst_341 : f32 to vector<8x32xf32>
    %664 = arith.mulf %663, %589 : vector<8x32xf32>
    %cst_342 = arith.constant 0.899999976 : f32
    %665 = vector.broadcast %cst_342 : f32 to vector<8x32xf32>
    %666 = arith.mulf %665, %662 : vector<8x32xf32>
    %667 = arith.addf %664, %666 : vector<8x32xf32>
    %c0_343 = arith.constant 0 : index
    %c0_344 = arith.constant 0 : index
    %668 = vector.load %arg11[%c0_343, %c0_344] : memref<32x16xf32, #tpu.memory_space<vmem>>, vector<32x16xf32>
    %cst_345 = arith.constant dense<0.000000e+00> : vector<8x16xf32>
    %669 = tpu.matmul %667, %668, %cst_345 {dimension_numbers = #tpu.dot_dimension_numbers<[1], [0], [0], [1], [0, 0, 1, 1], [], []>} : vector<8x32xf32>, vector<32x16xf32>, vector<8x16xf32> -> vector<8x16xf32>
    %c56_346 = arith.constant 56 : index
    %c0_347 = arith.constant 0 : index
    %670 = vector.load %arg16[%c56_346, %c0_347] : memref<64x16xf32, #tpu.memory_space<vmem>>, vector<8x16xf32>
    %671 = arith.addf %669, %670 : vector<8x16xf32>
    %c0_348 = arith.constant 0 : index
    %c112 = arith.constant 112 : index
    %672 = vector.load %arg14[%c0_348, %c112] : memref<8x128xf32, #tpu.memory_space<vmem>>, vector<8x16xf32>
    tpu.vector_store %arg14[%c0_348, %c112], %671 {strides = array<i32>} : memref<8x128xf32, #tpu.memory_space<vmem>>, vector<8x16xf32>,
    return
  }
}

</mosaic_0001>

<bundles_post_ra>
// kernel: no_att_decoder_forward.1
= control target key start
LH: loop header
LB: loop body
LE: loop exit
PB: predicated region body
PF: predicated region fallthrough
CT: control target
= control target key end

     0   :  { %vm66_vm0 = vcmask 261120   ;;  %s5685_s16 = smov 112   ;;  %v5686_v20 = vmov 0.0|0.0   ;;  %vm5687_vm1 = vmmov 0   ;;  %v5688_v31 = vmov 0.0   ;;  %s5689_s18 = smov 64   ;;  %s6795_s12 = inlined_call_operand.vmem [shape: f32[32,16], index: 12, kind: input, shape index: {}]   ;;  %s6796_s0 = inlined_call_operand.vmem [shape: f32[64,32], index: 0, kind: input, shape index: {}]   ;;  %s6797_s4 = inlined_call_operand.vmem [shape: f32[16,16], index: 4, kind: input, shape index: {}]   ;;  %s6798_s1 = inlined_call_operand.vmem [shape: f32[64,32], index: 1, kind: input, shape index: {}]   ;;  %s6799_s6 = inlined_call_operand.vmem [shape: f32[32,128], index: 6, kind: input, shape index: {}]   ;;  %s6800_s2 = inlined_call_operand.vmem [shape: f32[16,16], index: 2, kind: input, shape index: {}]   ;;  %s6801_s3 = inlined_call_operand.vmem [shape: f32[1,16], index: 3, kind: input, shape index: {}]   ;;  %s6802_s7 = inlined_call_operand.vmem [shape: f32[48,128], index: 7, kind: input, shape index: {}]   ;;  %s6803_s8 = inlined_call_operand.vmem [shape: f32[1,128], index: 8, kind: input, shape index: {}]   ;;  %s6804_s5 = inlined_call_operand.vmem [shape: f32[1,16], index: 5, kind: input, shape index: {}]   ;;  %s6805_s9 = inlined_call_operand.vmem [shape: f32[64,128], index: 9, kind: input, shape index: {}]   ;;  %s6806_s10 = inlined_call_operand.vmem [shape: f32[1,128], index: 10, kind: input, shape index: {}]   ;;  %s6807_s11 = inlined_call_operand.vmem [shape: f32[32,16], index: 11, kind: input, shape index: {}]   ;;  %s6808_s13 = inlined_call_operand.vmem [shape: f32[32,16], index: 13, kind: input, shape index: {}]   ;;  %s6809_s14 = inlined_call_operand.vmem [shape: f32[8,128], index: 14, kind: output, shape index: {}]  }
   0x1   :  { %v204_v0 = vld [vmem:[%s6795_s12] sm:$0xff]  ;;  %v205_v1 = vld [vmem:[%s6795_s12 + $0x8] sm:$0xff]  ;;  %v206_v2 = vld [vmem:[%s6795_s12 + $0x10] sm:$0xff]  ;;  %vm313_vm2 = vcmask 130048   ;;  %vm574_vm3 = vcmask 392192   ;;  %s5690_s19 = smov 32  }
   0x2   :  { %v5253_v3 = vpack.c.bf16 %v205_v1, %v204_v0  ;;  %v207_v4 = vld [vmem:[%s6795_s12 + $0x18] sm:$0xff]  ;;  %v47_v5 = vld [vmem:[%s6796_s0] sm:$0xff]  ;;  %v479_v8 = vld [vmem:[%s6797_s4 + $0x8] sm:$0xff]  ;;  %vm691_vm4 = vcmask 523264   ;;  %s5691_s30 = smov 48   ;;  %vm1373_vm5 = vcmask 261248  }
   0x3   :  { %v5257_v6 = vpack.c.bf16 %v207_v4, %v206_v2  ;;  %4724 = vmatprep.mubr.msk.f32.mxu1 %vm66_vm0, %v47_v5  ;;  %4704 = vmatprep.mubr.msk.f32.mxu0 %vm66_vm0, %v47_v5  ;;  %v478_v7 = vld [vmem:[%s6797_s4] sm:$0xff]  ;;  %v56_v11 = vld [vmem:[%s6799_s6 + $0x8] sm:$0xff]  ;;  %v57_v13 = vld [vmem:[%s6799_s6 + $0x10] sm:$0xff]  ;;  %vm1867_vm6 = vcmask 392448   ;;  %vm2361_vm7 = vcmask 523648   ;;  %vm2855_vm8 = vcmask 654848  }
   0x4   :  { %5254 = vmatprep.subr.bf16.mxu1 %v5253_v3  ;;  %v476_v9 = vld [vmem:[%s6798_s1] sm:$0xff]  ;;  %v58_v14 = vld [vmem:[%s6799_s6 + $0x18] sm:$0xff]  ;;  %v323_v17 = vld [vmem:[%s6800_s2 + $0x8] sm:$0xff]  ;;  %v5818_v19 = vpack.c.bf16 %v479_v8, %v478_v7  ;;  %vm3349_vm9 = vcmask 786048   ;;  %vm3843_vm10 = vcmask 917248   ;;  %vm4331_vm11 = vcmask 1048448  }
   0x5   :  { %5256 = vmatpush3.bf16.msra.mxu1 %v5253_v3  ;;  %v55_v10 = vld [vmem:[%s6799_s6] sm:$0xff]  ;;  %562 = vrot.lane.b32.xlu0 %v476_v9, %s5685_s16  ;;  %v5249_v15 = vpack.c.bf16 %v58_v14, %v57_v13  ;;  %v48_v18 = vld [vmem:[%s6796_s0 + $0x8] sm:$0xff]  ;;  %v49_v21 = vld [vmem:[%s6796_s0 + $0x10] sm:$0xff] }
   0x6   :  { %5258 = vmatprep.subr.bf16.mxu1 %v5257_v6  ;;  %v5245_v12 = vpack.c.bf16 %v56_v11, %v55_v10  ;;  %v322_v16 = vld [vmem:[%s6800_s2] sm:$0xff]  ;;  %v50_v23 = vld [vmem:[%s6796_s0 + $0x18] sm:$0xff]  ;;  %v52_v25 = vld [vmem:[%s6796_s0 + $0x28] sm:$0xff] }
   0x7   :  { %v5261_v22 = vpack.c.bf16 %v323_v17, %v322_v16  ;;  %v51_v24 = vld [vmem:[%s6796_s0 + $0x20] sm:$0xff]  ;;  %v53_v27 = vld [vmem:[%s6796_s0 + $0x30] sm:$0xff]  ;;  %v54_v29 = vld [vmem:[%s6796_s0 + $0x38] sm:$0xff] }
   0x8   :  { %5246 = vmatprep.subr.bf16.mxu0 %v5245_v12  ;;  %v5842_v26 = vld [vmem:[%s6801_s3] ss:$0 sm:$0xff]  ;;  %v569_v33 = vld [vmem:[%s6802_s7 + $0x8] sm:$0xff]  ;;  %v570_v35 = vld [vmem:[%s6802_s7 + $0x10] sm:$0xff] }
   0x9   :  { %5260 = vmatpush3.bf16.msra.mxu1 %v5257_v6  ;;  %5248 = vmatpush3.bf16.msra.mxu0 %v5245_v12  ;;  %v475_v28 = vmax.f32 %v5842_v26, 0.0  ;;  %v568_v32 = vld [vmem:[%s6802_s7] sm:$0xff]  ;;  %v571_v36 = vld [vmem:[%s6802_s7 + $0x18] sm:$0xff]  ;;  %v573_v39 = vld [vmem:[%s6802_s7 + $0x28] sm:$0xff] }
   0xa   :  { %5265 = vmatprep.subr.bf16.mxu1 %v5686_v20  ;;  %5250 = vmatprep.subr.bf16.mxu0 %v5249_v15  ;;  %v5873_v34 = vpack.c.bf16 %v569_v33, %v568_v32  ;;  %v5883_v37 = vpack.c.bf16 %v571_v36, %v570_v35  ;;  %v572_v38 = vld [vmem:[%s6802_s7 + $0x20] sm:$0xff] }
   0xb   :  { %v477_v30 = vmul.f32 %v476_v9, %v475_v28  ;;  %v5893_v40 = vpack.c.bf16 %v573_v39, %v572_v38  ;;  %v5904_v43 = vld [vmem:[%s6803_s8] ss:$0 sm:$0xff] }
   0xc   :  { %4725 = vmatmul.mubr.msk.f32.vlgmr.msra.gmra.mrb[0].mxu1 %vm66_vm0, %v48_v18  ;;  %v5929_v58 = vld [vmem:[%s6804_s5] ss:$0 sm:$0xff] }
   0xd   :  { %5267 = vmatpush3.bf16.msra.mxu1 %v5818_v19  ;;  %4727 = vmatprep.mubr.msk.f32.mxu1 %vm66_vm0, %v49_v21 }
   0xe   :  { %5252 = vmatpush3.bf16.msra.mxu0 %v5249_v15  ;;  %5268 = vmatprep.subr.bf16.mxu1 %v5686_v20 }
   0xf   :  { %5262 = vmatprep.subr.bf16.mxu0 %v5261_v22 }
  0x10   :  { %4728 = vmatmul.mubr.msk.f32.gmra.mrb[2].mxu1 %vm66_vm0, %v50_v23 }
  0x11   :  { %4730 = vmatprep.mubr.msk.f32.mxu1 %vm66_vm0, %v51_v24  ;;  %4705 = vmatmul.mubr.msk.f32.vlgmr.msra.gmra.mrb[0].mxu0 %vm66_vm0, %v48_v18 }
  0x12   :  { %4707 = vmatprep.mubr.msk.f32.mxu0 %vm66_vm0, %v49_v21  ;;  %5264 = vmatpush3.bf16.msra.mxu0 %v5261_v22 }
  0x13   :  { %5277 = vmatprep.subr.bf16.mxu0 %v5686_v20 }
  0x14   :  { %4731 = vmatmul.mubr.msk.f32.gmra.mrb[4].mxu1 %vm66_vm0, %v52_v25 }
  0x15   :  { %4733 = vmatprep.mubr.msk.f32.mxu1 %vm66_vm0, %v53_v27  ;;  %4708 = vmatmul.mubr.msk.f32.gmra.mrb[2].mxu0 %vm66_vm0, %v50_v23 }
  0x16   :  { %4710 = vmatprep.mubr.msk.f32.mxu0 %vm66_vm0, %v51_v24 }
  0x18   :  { %4734 = vmatmul.mubr.msk.f32.gmra.mrb[6].mxu1 %vm66_vm0, %v54_v29 }
  0x19   :  { %4756 = vmatprep.mubr.msk.f32.mxu1 %vm5687_vm1, %v5688_v31  ;;  %4711 = vmatmul.mubr.msk.f32.gmra.mrb[4].mxu0 %vm66_vm0, %v52_v25 }
  0x1a   :  { %4713 = vmatprep.mubr.msk.f32.mxu0 %vm66_vm0, %v53_v27 }
  0x1c   :  { %4757 = vmatmul.mubr.msk.f32.vlgmr.msra.gmra.mrb[8].mxu1 %vm313_vm2, %v477_v30 }
  0x1d   :  { %4714 = vmatmul.mubr.msk.f32.gmra.mrb[6].mxu0 %vm66_vm0, %v54_v29  ;;  %4771 = vmatprep.mubr.msk.f32.mxu1 %vm5687_vm1, %v5688_v31 }
  0x1e   :  { %5270 = vmatpush3.bf16.msra.mxu1 %v5873_v34 }
  0x1f   :  { %5271 = vmatprep.subr.bf16.mxu1 %v5686_v20 }
  0x22   :  { %5273 = vmatpush3.bf16.msra.mxu1 %v5883_v37 }
  0x23   :  { %5274 = vmatprep.subr.bf16.mxu1 %v5686_v20 }
  0x26   :  { %5276 = vmatpush3.bf16.msra.mxu1 %v5893_v40 }
  0x27   :  { %5289 = vmatprep.subr.bf16.mxu1 %v5686_v20 }
  0x77   :  { %v563_v2 = vpop.permute.xlu0 %562 }
  0xdf   :  { %v4726_v41 = vpop.f32.mrb[0].mxu1 }
  0xe0   :  { %315 = vst.msk [vmem:[#allocation3 + $0x8] sm:$0xff] %vm313_vm2, %v4726_v41  ;;  %v274_v42 = vpop.f32.mrb[1].mxu1 }
  0xe1   :  { %314 = vst.msk [vmem:[#allocation3] sm:$0xff] %vm313_vm2, %v274_v42  ;;  %4740 = vmatprep.mubr.msk.f32.mxu0 %vm313_vm2, %v274_v42 }
  0xe2   :  { %4741 = vmatmul.mubr.msk.f32.vlgmr.msra.gmra.mrb[8].mxu0 %vm313_vm2, %v4726_v41 }
  0xe3   :  { %v4729_v44 = vpop.f32.mrb[2].mxu1 }
  0xe4   :  { %317 = vst.msk [vmem:[#allocation3 + $0x18] sm:$0xff] %vm313_vm2, %v4729_v44  ;;  %v284_v45 = vpop.f32.mrb[3].mxu1  ;;  %v4706_v46 = vpop.f32.mrb[0].mxu0 }
  0xe5   :  { %316 = vst.msk [vmem:[#allocation3 + $0x10] sm:$0xff] %vm313_vm2, %v284_v45  ;;  %4743 = vmatprep.mubr.msk.f32.mxu0 %vm313_vm2, %v284_v45  ;;  %v5910_v47 = vadd.f32 %v4706_v46, %v5904_v43  ;;  %v157_v48 = vpop.f32.mrb[1].mxu0  ;;  %v684_v45 = vld [vmem:[%s6805_s9 + $0x8] sm:$0xff]  ;;  %v685_v46 = vld [vmem:[%s6805_s9 + $0x10] sm:$0xff] }
  0xe6   :  { %4744 = vmatmul.mubr.msk.f32.gmra.mrb[10].mxu0 %vm313_vm2, %v4729_v44  ;;  %v158_v27 = vadd.f32 %v5904_v43, %v157_v48  ;;  %v683_v44 = vld [vmem:[%s6805_s9] sm:$0xff] }
  0xe7   :  { %v4732_v49 = vpop.f32.mrb[4].mxu1  ;;  %v5980_v48 = vpack.c.bf16 %v684_v45, %v683_v44  ;;  %v957_v44 = vld [vmem:[%s6798_s1 + $0x8] sm:$0xff] }
  0xe8   :  { %319 = vst.msk [vmem:[#allocation3 + $0x28] sm:$0xff] %vm313_vm2, %v4732_v49  ;;  %v294_v50 = vpop.f32.mrb[5].mxu1  ;;  %v4709_v51 = vpop.f32.mrb[2].mxu0  ;;  %v804_v45 = vld [vmem:[#allocation3] sm:$0xff] }
  0xe9   :  { %318 = vst.msk [vmem:[#allocation3 + $0x20] sm:$0xff] %vm313_vm2, %v294_v50  ;;  %4746 = vmatprep.mubr.msk.f32.mxu0 %vm313_vm2, %v294_v50  ;;  %v5917_v52 = vadd.f32 %v4709_v51, %v5904_v43  ;;  %v167_v53 = vpop.f32.mrb[3].mxu0  ;;  %5279 = vmatpush3.bf16.msra.mxu0 %v5980_v48  ;;  %v687_v51 = vld [vmem:[%s6805_s9 + $0x20] sm:$0xff] }
  0xea   :  { %4747 = vmatmul.mubr.msk.f32.gmra.mrb[12].mxu0 %vm313_vm2, %v4732_v49  ;;  %v5921_v54 = vadd.f32 %v5904_v43, %v167_v53  ;;  %v686_v49 = vld [vmem:[%s6805_s9 + $0x18] sm:$0xff]  ;;  %5280 = vmatprep.subr.bf16.mxu0 %v5686_v20  ;;  %v688_v53 = vld [vmem:[%s6805_s9 + $0x28] sm:$0xff] }
  0xeb   :  { %v4735_v55 = vpop.f32.mrb[6].mxu1  ;;  %v5986_v50 = vpack.c.bf16 %v686_v49, %v685_v46 }
  0xec   :  { %321 = vst.msk [vmem:[#allocation3 + $0x38] sm:$0xff] %vm313_vm2, %v4735_v55  ;;  %v304_v56 = vpop.f32.mrb[7].mxu1  ;;  %v4712_v57 = vpop.f32.mrb[4].mxu0 }
  0xed   :  { %320 = vst.msk [vmem:[#allocation3 + $0x30] sm:$0xff] %vm313_vm2, %v304_v56  ;;  %4749 = vmatprep.mubr.msk.f32.mxu0 %vm313_vm2, %v304_v56  ;;  %v5932_v59 = vadd.f32 %v4712_v57, %v5904_v43  ;;  %v177_v60 = vpop.f32.mrb[5].mxu0  ;;  %5282 = vmatpush3.bf16.msra.mxu0 %v5986_v50  ;;  %v5996_v56 = vpack.c.bf16 %v688_v53, %v687_v51  ;;  %v689_v57 = vld [vmem:[%s6805_s9 + $0x30] sm:$0xff] }
  0xee   :  { %4750 = vmatmul.mubr.msk.f32.gmra.mrb[14].mxu0 %vm313_vm2, %v4735_v55  ;;  %v5936_v61 = vadd.f32 %v5904_v43, %v177_v60  ;;  %5283 = vmatprep.subr.bf16.mxu0 %v5686_v20  ;;  %v690_v60 = vld [vmem:[%s6805_s9 + $0x38] sm:$0xff] }
  0xef   :  { %v556_v62 = vpop.f32.mrb[8].mxu1  ;;  %4790 = vmatprep.mubr.msk.f32.mxu0 %vm5687_vm1, %v5688_v31 }
  0xf0   :  { %v557_v63 = vadd.f32 %v5929_v58, %v556_v62  ;;  %v4758_v0 = vpop.f32.mrb[9].mxu1  ;;  %v4715_v1 = vpop.f32.mrb[6].mxu0  ;;  %v6007_v62 = vpack.c.bf16 %v690_v60, %v689_v57 }
  0xf1   :  { %v5942_v3 = vadd.f32 %v4715_v1, %v5904_v43  ;;  %v187_v4 = vpop.f32.mrb[7].mxu0  ;;  %5285 = vmatpush3.bf16.msra.mxu0 %v5996_v56 }
  0xf2   :  { %v560_v5 = vmax.f32 %v557_v63, 0.0  ;;  %v5945_v6 = vadd.f32 %v5904_v43, %v187_v4  ;;  %5286 = vmatprep.subr.bf16.mxu0 %v5686_v20 }
  0xf4   :  { %v565_v7 = vmul.f32 %v563_v2, %v560_v5  ;;  %v6023_v5 = vld [vmem:[%s6806_s10] ss:$0 sm:$0xff] }
  0xf5   :  { %5288 = vmatpush3.bf16.msra.mxu0 %v6007_v62 }
  0xf6   :  { %v567_v8 = vsel %vm313_vm2, %v565_v7, 0.0  ;;  %5295 = vmatprep.subr.bf16.mxu0 %v5686_v20 }
  0xf7   :  { %4772 = vmatmul.mubr.msk.f32.vlgmr.msra.gmra.mrb[10].mxu1 %vm574_vm3, %v567_v8 }
  0xf8   :  { %4801 = vmatprep.mubr.msk.f32.mxu1 %vm5687_vm1, %v5688_v31 }
 0x1b5   :  { %v4742_v9 = vpop.f32.mrb[8].mxu0 }
 0x1b6   :  { %v427_v10 = vadd.f32 %v4742_v9, %v5842_v26  ;;  %v421_v11 = vpop.f32.mrb[9].mxu0 }
 0x1b7   :  { %v422_v12 = vadd.f32 %v5842_v26, %v421_v11 }
 0x1b8   :  { %461 = vst.msk [vmem:[#allocation4 + $0x8] sm:$0xff] %vm313_vm2, %v427_v10 }
 0x1b9   :  { %460 = vst.msk [vmem:[#allocation4] sm:$0xff] %vm313_vm2, %v422_v12  ;;  %v4745_v13 = vpop.f32.mrb[10].mxu0 }
 0x1ba   :  { %v437_v14 = vadd.f32 %v4745_v13, %v5842_v26  ;;  %v431_v15 = vpop.f32.mrb[11].mxu0 }
 0x1bb   :  { %v432_v16 = vadd.f32 %v5842_v26, %v431_v15 }
 0x1bc   :  { %463 = vst.msk [vmem:[#allocation4 + $0x18] sm:$0xff] %vm313_vm2, %v437_v14 }
 0x1bd   :  { %462 = vst.msk [vmem:[#allocation4 + $0x10] sm:$0xff] %vm313_vm2, %v432_v16  ;;  %v4748_v17 = vpop.f32.mrb[12].mxu0 }
 0x1be   :  { %v447_v18 = vadd.f32 %v4748_v17, %v5842_v26  ;;  %v441_v21 = vpop.f32.mrb[13].mxu0 }
 0x1bf   :  { %v442_v22 = vadd.f32 %v5842_v26, %v441_v21 }
 0x1c0   :  { %465 = vst.msk [vmem:[#allocation4 + $0x28] sm:$0xff] %vm313_vm2, %v447_v18  ;;  %v885_v49 = vld [vmem:[#allocation4] sm:$0xff] }
 0x1c1   :  { %464 = vst.msk [vmem:[#allocation4 + $0x20] sm:$0xff] %vm313_vm2, %v442_v22  ;;  %v4751_v23 = vpop.f32.mrb[14].mxu0  ;;  %v800_v22 = vld [vmem:[%s6807_s11] sm:$0xff] }
 0x1c2   :  { %v451_v24 = vpop.f32.mrb[15].mxu0  ;;  %v801_v23 = vld [vmem:[%s6807_s11 + $0x8] sm:$0xff] }
 0x1c3   :  { %v452_v25 = vadd.f32 %v5842_v26, %v451_v24  ;;  %v881_v24 = vld [vmem:[%s6808_s13] sm:$0xff] }
 0x1c5   :  { %466 = vst.msk [vmem:[#allocation4 + $0x30] sm:$0xff] %vm313_vm2, %v452_v25  ;;  %v6040_v25 = vpack.c.bf16 %v801_v23, %v800_v22 }
 0x1c7   :  { %5291 = vmatpush3.bf16.msra.mxu1 %v6040_v25 }
 0x1c8   :  { %5292 = vmatprep.subr.bf16.mxu1 %v5686_v20 }
 0x1ca   :  { %v644_v28 = vpop.f32.mrb[10].mxu1 }
 0x1cb   :  { %v648_v29 = vadd.f32 %v644_v28, %v158_v27  ;;  %v4773_v30 = vpop.f32.mrb[11].mxu1  ;;  %v882_v27 = vld [vmem:[%s6808_s13 + $0x8] sm:$0xff]  ;;  %v802_v28 = vld [vmem:[%s6807_s11 + $0x10] sm:$0xff] }
 0x1cc   :  { %v6051_v30 = vpack.c.bf16 %v882_v27, %v881_v24 }
 0x1cd   :  { %5557 = vtanh.f32 %v648_v29  ;;  %v4367_v33 = vmul.f32 -1.442695, %v648_v29  ;;  %v803_v29 = vld [vmem:[%s6807_s11 + $0x18] sm:$0xff] }
 0x1cf   :  { %5559 = vpow2.f32 %v4367_v33  ;;  %v884_v33 = vld [vmem:[%s6808_s13 + $0x18] sm:$0xff] }
 0x1d7   :  { %v5558_v32 = vpop.eup %5557 }
 0x1d8   :  { %658 = vrot.lane.b32.xlu0 %v5558_v32, %s5689_s18  ;;  %v883_v32 = vld [vmem:[%s6808_s13 + $0x10] sm:$0xff] }
 0x1d9   :  { %v5560_v35 = vpop.eup %5559 }
 0x1da   :  { %v652_v36 = vadd.f32 1.0, %v5560_v35 }
 0x1dc   :  { %5561 = vrcp.f32 %v652_v36  ;;  %v6060_v36 = vpack.c.bf16 %v803_v29, %v802_v28 }
 0x1de   :  { %5294 = vmatpush3.bf16.msra.mxu1 %v6060_v36 }
 0x1df   :  { %5301 = vmatprep.subr.bf16.mxu1 %v5686_v20 }
 0x1e6   :  { %v5562_v38 = vpop.eup %5561 }
 0x1e7   :  { %v656_v41 = vmul.f32 0.0, %v5562_v38 }
 0x24a   :  { %v659_v39 = vpop.permute.xlu0 %658 }
 0x24b   :  { %v661_v26 = vmul.f32 %v5562_v38, %v659_v39 }
 0x24d   :  { %663 = vrot.lane.b32.xlu1 %v661_v26, %s5690_s19 }
 0x2bf   :  { %v664_v42 = vpop.permute.xlu1 %663 }
 0x2c0   :  { %v5968_v43 = vadd.f32 %v664_v42, %v656_v41 }
 0x2c2   :  { %5563 = vtanh.f32 %v5968_v43  ;;  %v6124_v28 = vmul.f32 0.9, %v5968_v43 }
 0x2cc   :  { %v5564_v55 = vpop.eup %5563 }
 0x2cd   :  { %669 = vrot.lane.b32.xlu1 %v5564_v55, %s5689_s18 }
 0x33f   :  { %v670_v63 = vpop.permute.xlu1 %669 }
 0x340   :  { %v672_v0 = vmul.f32 %v5562_v38, %v670_v63  ;;  %v6064_v38 = vpack.c.bf16 %v884_v33, %v883_v32 }
 0x342   :  { %v6012_v1 = vmul.f32 0.9, %v672_v0 }
 0x344   :  { %679 = vrot.lane.b32.xlu0 %v6012_v1, %s5690_s19 }
 0x3b6   :  { %v680_v2 = vpop.permute.xlu0 %679 }
 0x3b7   :  { %v682_v4 = vsel %vm66_vm0, %v680_v2, 0.0 }
 0x3b8   :  { %4791 = vmatmul.mubr.msk.f32.vlgmr.msra.gmra.mrb[16].mxu0 %vm691_vm4, %v682_v4 }
 0x3b9   :  { %4812 = vmatprep.mubr.msk.f32.mxu0 %vm5687_vm1, %v5688_v31  ;;  %5297 = vmatpush3.bf16.msra.mxu0 %v6051_v30 }
 0x3ba   :  { %5298 = vmatprep.subr.bf16.mxu0 %v5686_v20 }
 0x3bd   :  { %5300 = vmatpush3.bf16.msra.mxu0 %v6064_v38 }
 0x3be   :  { %5304 = vmatprep.subr.bf16.mxu0 %v5686_v20 }
 0x48b   :  { %v761_v7 = vpop.f32.mrb[16].mxu0 }
 0x48c   :  { %v771_v8 = vadd.f32 %v6023_v5, %v761_v7  ;;  %v4792_v9 = vpop.f32.mrb[17].mxu0 }
 0x48e   :  { %5565 = vtanh.f32 %v771_v8  ;;  %v4370_v11 = vmul.f32 -1.442695, %v771_v8 }
 0x490   :  { %5567 = vpow2.f32 %v4370_v11 }
 0x498   :  { %v5566_v10 = vpop.eup %5565 }
 0x499   :  { %781 = vrot.lane.b32.xlu1 %v5566_v10, %s5689_s18 }
 0x49a   :  { %v5568_v12 = vpop.eup %5567 }
 0x49b   :  { %v775_v13 = vadd.f32 1.0, %v5568_v12 }
 0x49d   :  { %5569 = vrcp.f32 %v775_v13 }
 0x4a7   :  { %v5570_v14 = vpop.eup %5569 }
 0x4a8   :  { %v779_v17 = vmul.f32 0.0, %v5570_v14 }
 0x50b   :  { %v782_v15 = vpop.permute.xlu1 %781 }
 0x50c   :  { %v784_v16 = vmul.f32 %v5570_v14, %v782_v15 }
 0x50e   :  { %786 = vrot.lane.b32.xlu0 %v784_v16, %s5690_s19 }
 0x580   :  { %v787_v18 = vpop.permute.xlu0 %786 }
 0x581   :  { %v6028_v21 = vadd.f32 %v787_v18, %v779_v17 }
 0x583   :  { %5571 = vtanh.f32 %v6028_v21 }
 0x58d   :  { %v5572_v35 = vpop.eup %5571 }
 0x58e   :  { %792 = vrot.lane.b32.xlu1 %v5572_v35, %s5689_s18 }
 0x592   :  { %1043 = vrot.lane.b32.xlu1 %v957_v44, %s5685_s16 }
 0x600   :  { %v793_v39 = vpop.permute.xlu1 %792 }
 0x601   :  { %v795_v26 = vmul.f32 %v5570_v14, %v793_v39 }
 0x603   :  { %v6072_v41 = vmul.f32 0.9, %v795_v26  ;;  %v1156_v26 = vmul.f32 0.1, %v6012_v1 }
 0x604   :  { %v1044_v8 = vpop.permute.xlu1 %1043 }
 0x605   :  { %806 = vrot.lane.b32.xlu0 %v6072_v41, %s5690_s19 }
 0x609   :  { %1048 = vrot.lane.b32.xlu0 %v6012_v1, %s5691_s30 }
 0x677   :  { %v807_v42 = vpop.permute.xlu0 %806 }
 0x678   :  { %4802 = vmatmul.mubr.msk.f32.vlgmr.msra.gmra.mrb[12].mxu1 %vm66_vm0, %v807_v42  ;;  %4813 = vmatmul.mubr.msk.f32.vlgmr.msra.gmra.mrb[18].mxu0 %vm66_vm0, %v807_v42 }
 0x679   :  { %5303 = vmatpush3.bf16.msra.mxu1 %v5818_v19  ;;  %4819 = vmatprep.mubr.msk.f32.mxu1 %vm5687_vm1, %v5688_v31 }
 0x67a   :  { %5306 = vmatpush3.bf16.msra.mxu0 %v5873_v34  ;;  %4834 = vmatprep.mubr.msk.f32.mxu0 %vm5687_vm1, %v5688_v31 }
 0x67b   :  { %5307 = vmatprep.subr.bf16.mxu0 %v5686_v20  ;;  %5313 = vmatprep.subr.bf16.mxu1 %v5686_v20  ;;  %v1049_v11 = vpop.permute.xlu0 %1048 }
 0x67e   :  { %5309 = vmatpush3.bf16.msra.mxu0 %v5883_v37 }
 0x67f   :  { %5310 = vmatprep.subr.bf16.mxu0 %v5686_v20 }
 0x682   :  { %5312 = vmatpush3.bf16.msra.mxu0 %v5893_v40 }
 0x683   :  { %5325 = vmatprep.subr.bf16.mxu0 %v5686_v20 }
 0x74b   :  { %v876_v46 = vpop.f32.mrb[12].mxu1  ;;  %v952_v51 = vpop.f32.mrb[18].mxu0 }
 0x74c   :  { %v877_v53 = vadd.f32 %v876_v46, %v804_v45  ;;  %v953_v55 = vadd.f32 %v952_v51, %v885_v49  ;;  %v4803_v57 = vpop.f32.mrb[13].mxu1  ;;  %v4814_v60 = vpop.f32.mrb[19].mxu0 }
 0x74e   :  { %880 = vst.msk [vmem:[%s6809_s14] sm:$0xff] %vm313_vm2, %v877_v53  ;;  %v956_v63 = vmax.f32 %v953_v55, 0.0 }
 0x750   :  { %v958_v0 = vmul.f32 %v957_v44, %v956_v63 }
 0x752   :  { %4820 = vmatmul.mubr.msk.f32.vlgmr.msra.gmra.mrb[14].mxu1 %vm313_vm2, %v958_v0 }
 0x753   :  { %5315 = vmatpush3.bf16.msra.mxu1 %v5980_v48  ;;  %4853 = vmatprep.mubr.msk.f32.mxu1 %vm5687_vm1, %v5688_v31 }
 0x754   :  { %5316 = vmatprep.subr.bf16.mxu1 %v5686_v20 }
 0x757   :  { %5318 = vmatpush3.bf16.msra.mxu1 %v5986_v50 }
 0x758   :  { %5319 = vmatprep.subr.bf16.mxu1 %v5686_v20 }
 0x75b   :  { %5321 = vmatpush3.bf16.msra.mxu1 %v5996_v56 }
 0x75c   :  { %5322 = vmatprep.subr.bf16.mxu1 %v5686_v20 }
 0x75f   :  { %5324 = vmatpush3.bf16.msra.mxu1 %v6007_v62 }
 0x760   :  { %5331 = vmatprep.subr.bf16.mxu1 %v5686_v20 }
 0x825   :  { %v1037_v2 = vpop.f32.mrb[14].mxu1 }
 0x826   :  { %v1038_v4 = vadd.f32 %v5929_v58, %v1037_v2  ;;  %v4821_v7 = vpop.f32.mrb[15].mxu1 }
 0x828   :  { %v1041_v9 = vmax.f32 %v1038_v4, 0.0  ;;  %v6150_v4 = vmul.f32 0.9, %v6028_v21 }
 0x82a   :  { %v1046_v10 = vmul.f32 %v1044_v8, %v1041_v9 }
 0x82c   :  { %v1051_v12 = vsel %vm313_vm2, %v1046_v10, %v1049_v11 }
 0x82d   :  { %4835 = vmatmul.mubr.msk.f32.vlgmr.msra.gmra.mrb[20].mxu0 %vm574_vm3, %v1051_v12 }
 0x82e   :  { %5327 = vmatpush3.bf16.msra.mxu0 %v6040_v25  ;;  %4864 = vmatprep.mubr.msk.f32.mxu0 %vm5687_vm1, %v5688_v31 }
 0x82f   :  { %5328 = vmatprep.subr.bf16.mxu0 %v5686_v20 }
 0x832   :  { %5330 = vmatpush3.bf16.msra.mxu0 %v6060_v36 }
 0x833   :  { %5337 = vmatprep.subr.bf16.mxu0 %v5686_v20 }
 0x900   :  { %v1127_v13 = vpop.f32.mrb[20].mxu0 }
 0x901   :  { %v1131_v14 = vadd.f32 %v1127_v13, %v5910_v47  ;;  %v4836_v15 = vpop.f32.mrb[21].mxu0  ;;  %v1283_v13 = vmul.f32 0.1, %v6072_v41 }
 0x903   :  { %5573 = vtanh.f32 %v1131_v14  ;;  %v4376_v17 = vmul.f32 -1.442695, %v1131_v14 }
 0x905   :  { %5575 = vpow2.f32 %v4376_v17 }
 0x90d   :  { %v5574_v16 = vpop.eup %5573 }
 0x90e   :  { %1141 = vrot.lane.b32.xlu1 %v5574_v16, %s5689_s18  ;;  %v1379_v16 = vld [vmem:[#allocation4 + $0x8] sm:$0xff] }
 0x90f   :  { %v5576_v18 = vpop.eup %5575 }
 0x910   :  { %v1135_v22 = vadd.f32 1.0, %v5576_v18 }
 0x912   :  { %5577 = vrcp.f32 %v1135_v22 }
 0x91c   :  { %v5578_v23 = vpop.eup %5577 }
 0x91d   :  { %v1139_v47 = vmul.f32 %v5578_v23, %v6124_v28 }
 0x980   :  { %v1142_v24 = vpop.permute.xlu1 %1141 }
 0x981   :  { %v1144_v27 = vmul.f32 %v5578_v23, %v1142_v24 }
 0x983   :  { %1146 = vrot.lane.b32.xlu0 %v1144_v27, %s5690_s19 }
 0x9f5   :  { %v1147_v29 = vpop.permute.xlu0 %1146 }
 0x9f6   :  { %v6127_v32 = vadd.f32 %v1147_v29, %v1139_v47 }
 0x9f8   :  { %5579 = vtanh.f32 %v6127_v32 }
 0xa02   :  { %v5580_v33 = vpop.eup %5579 }
 0xa03   :  { %1152 = vrot.lane.b32.xlu1 %v5580_v33, %s5689_s18 }
 0xa07   :  { %1167 = vrot.lane.b32.xlu1 %v6072_v41, %s5689_s18 }
 0xa75   :  { %v1153_v35 = vpop.permute.xlu1 %1152 }
 0xa76   :  { %v1155_v39 = vmul.f32 %v5578_v23, %v1153_v35 }
 0xa78   :  { %v1157_v42 = vmul.f32 0.9, %v1155_v39 }
 0xa79   :  { %v1168_v44 = vpop.permute.xlu1 %1167 }
 0xa7a   :  { %v6134_v43 = vadd.f32 %v1157_v42, %v1156_v26 }
 0xa7c   :  { %1164 = vrot.lane.b32.xlu0 %v6134_v43, %s5690_s19 }
 0xaee   :  { %v1165_v45 = vpop.permute.xlu0 %1164 }
 0xaef   :  { %v1170_v46 = vsel %vm66_vm0, %v1165_v45, %v1168_v44 }
 0xaf0   :  { %4854 = vmatmul.mubr.msk.f32.vlgmr.msra.gmra.mrb[16].mxu1 %vm691_vm4, %v1170_v46 }
 0xaf1   :  { %5333 = vmatpush3.bf16.msra.mxu1 %v6051_v30  ;;  %4875 = vmatprep.mubr.msk.f32.mxu1 %vm5687_vm1, %v5688_v31 }
 0xaf2   :  { %5334 = vmatprep.subr.bf16.mxu1 %v5686_v20 }
 0xaf5   :  { %5336 = vmatpush3.bf16.msra.mxu1 %v6064_v38 }
 0xaf6   :  { %5349 = vmatprep.subr.bf16.mxu1 %v5686_v20 }
 0xbc3   :  { %v1248_v1 = vpop.f32.mrb[16].mxu1 }
 0xbc4   :  { %v1258_v49 = vadd.f32 %v6023_v5, %v1248_v1  ;;  %v4855_v51 = vpop.f32.mrb[17].mxu1 }
 0xbc6   :  { %5581 = vtanh.f32 %v1258_v49  ;;  %v4379_v55 = vmul.f32 -1.442695, %v1258_v49 }
 0xbc8   :  { %5583 = vpow2.f32 %v4379_v55 }
 0xbd0   :  { %v5582_v53 = vpop.eup %5581 }
 0xbd1   :  { %1268 = vrot.lane.b32.xlu0 %v5582_v53, %s5689_s18 }
 0xbd2   :  { %v5584_v57 = vpop.eup %5583 }
 0xbd3   :  { %v1262_v60 = vadd.f32 1.0, %v5584_v57 }
 0xbd5   :  { %5585 = vrcp.f32 %v1262_v60 }
 0xbdf   :  { %v5586_v63 = vpop.eup %5585 }
 0xbe0   :  { %v1266_v7 = vmul.f32 %v5586_v63, %v6150_v4 }
 0xc43   :  { %v1269_v0 = vpop.permute.xlu0 %1268 }
 0xc44   :  { %v1271_v2 = vmul.f32 %v5586_v63, %v1269_v0  ;;  %v1160_v0 = vmul.f32 0.9, %v6127_v32  ;;  %v1650_v32 = vmul.f32 0.1, %v6134_v43 }
 0xc46   :  { %1273 = vrot.lane.b32.xlu1 %v1271_v2, %s5690_s19  ;;  %v1159_v2 = vmul.f32 0.1, %v6124_v28 }
 0xcb8   :  { %v1274_v8 = vpop.permute.xlu1 %1273 }
 0xcb9   :  { %v6153_v9 = vadd.f32 %v1274_v8, %v1266_v7 }
 0xcbb   :  { %5587 = vtanh.f32 %v6153_v9 }
 0xcc5   :  { %v5588_v10 = vpop.eup %5587 }
 0xcc6   :  { %1279 = vrot.lane.b32.xlu0 %v5588_v10, %s5689_s18 }
 0xd38   :  { %v1280_v11 = vpop.permute.xlu0 %1279 }
 0xd39   :  { %v1282_v12 = vmul.f32 %v5586_v63, %v1280_v11 }
 0xd3b   :  { %v1284_v14 = vmul.f32 0.9, %v1282_v12 }
 0xd3d   :  { %v6158_v15 = vadd.f32 %v1284_v14, %v1283_v13 }
 0xd3f   :  { %1295 = vrot.lane.b32.xlu1 %v6158_v15, %s5690_s19 }
 0xd43   :  { %1542 = vrot.lane.b32.xlu1 %v6134_v43, %s5691_s30 }
 0xdb1   :  { %v1296_v21 = vpop.permute.xlu1 %1295 }
 0xdb2   :  { %4865 = vmatmul.mubr.msk.f32.vlgmr.msra.gmra.mrb[22].mxu0 %vm66_vm0, %v1296_v21  ;;  %4876 = vmatmul.mubr.msk.f32.vlgmr.msra.gmra.mrb[18].mxu1 %vm66_vm0, %v1296_v21 }
 0xdb3   :  { %5339 = vmatpush3.bf16.msra.mxu0 %v5818_v19  ;;  %4882 = vmatprep.mubr.msk.f32.mxu0 %vm5687_vm1, %v5688_v31  ;;  %v1451_v19 = vld [vmem:[%s6798_s1 + $0x10] sm:$0xff] }
 0xdb4   :  { %5340 = vmatprep.subr.bf16.mxu0 %v5686_v20  ;;  %5351 = vmatpush3.bf16.msra.mxu1 %v5980_v48 }
 0xdb5   :  { %5352 = vmatprep.subr.bf16.mxu1 %v5686_v20  ;;  %4916 = vmatprep.mubr.msk.f32.mxu1 %vm5687_vm1, %v5688_v31  ;;  %v1543_v42 = vpop.permute.xlu1 %1542 }
 0xdb6   :  { %1537 = vrot.lane.b32.xlu0 %v1451_v19, %s5685_s16 }
 0xdb8   :  { %5354 = vmatpush3.bf16.msra.mxu1 %v5986_v50 }
 0xdb9   :  { %5355 = vmatprep.subr.bf16.mxu1 %v5686_v20 }
 0xdbc   :  { %5357 = vmatpush3.bf16.msra.mxu1 %v5996_v56 }
 0xdbd   :  { %5358 = vmatprep.subr.bf16.mxu1 %v5686_v20 }
 0xdc0   :  { %5360 = vmatpush3.bf16.msra.mxu1 %v6007_v62 }
 0xdc1   :  { %5367 = vmatprep.subr.bf16.mxu1 %v5686_v20 }
 0xe28   :  { %v1538_v35 = vpop.permute.xlu0 %1537 }
 0xe85   :  { %v6184_v41 = vpop.f32.mrb[22].mxu0  ;;  %v1446_v17 = vpop.f32.mrb[18].mxu1 }
 0xe86   :  { %v1447_v18 = vadd.f32 %v1446_v17, %v1379_v16  ;;  %v4866_v22 = vpop.f32.mrb[23].mxu0  ;;  %v4877_v23 = vpop.f32.mrb[19].mxu1 }
 0xe88   :  { %v1450_v24 = vmax.f32 %v1447_v18, 0.0 }
 0xe8a   :  { %v1452_v27 = vmul.f32 %v1451_v19, %v1450_v24 }
 0xe8c   :  { %4883 = vmatmul.mubr.msk.f32.vlgmr.msra.gmra.mrb[24].mxu0 %vm313_vm2, %v1452_v27 }
 0xe8d   :  { %5342 = vmatpush3.bf16.msra.mxu0 %v5873_v34  ;;  %4897 = vmatprep.mubr.msk.f32.mxu0 %vm5687_vm1, %v5688_v31 }
 0xe8e   :  { %5343 = vmatprep.subr.bf16.mxu0 %v5686_v20 }
 0xe91   :  { %5345 = vmatpush3.bf16.msra.mxu0 %v5883_v37 }
 0xe92   :  { %5346 = vmatprep.subr.bf16.mxu0 %v5686_v20 }
 0xe95   :  { %5348 = vmatpush3.bf16.msra.mxu0 %v5893_v40 }
 0xe96   :  { %5361 = vmatprep.subr.bf16.mxu0 %v5686_v20 }
 0xf5f   :  { %v1531_v47 = vpop.f32.mrb[24].mxu0 }
 0xf60   :  { %v1532_v29 = vadd.f32 %v5929_v58, %v1531_v47  ;;  %v4884_v33 = vpop.f32.mrb[25].mxu0 }
 0xf62   :  { %v1535_v39 = vmax.f32 %v1532_v29, 0.0 }
 0xf64   :  { %v1540_v26 = vmul.f32 %v1538_v35, %v1535_v39  ;;  %v1287_v35 = vmul.f32 0.9, %v6153_v9  ;;  %v1286_v39 = vmul.f32 0.1, %v6150_v4 }
 0xf66   :  { %v1545_v44 = vsel %vm313_vm2, %v1540_v26, %v1543_v42  ;;  %v6236_v26 = vadd.f32 %v1287_v35, %v1286_v39 }
 0xf67   :  { %4898 = vmatmul.mubr.msk.f32.vlgmr.msra.gmra.mrb[26].mxu0 %vm574_vm3, %v1545_v44 }
 0xf68   :  { %5363 = vmatpush3.bf16.msra.mxu0 %v6040_v25  ;;  %4927 = vmatprep.mubr.msk.f32.mxu0 %vm5687_vm1, %v5688_v31 }
 0xf69   :  { %5364 = vmatprep.subr.bf16.mxu0 %v5686_v20 }
 0xf6c   :  { %5366 = vmatpush3.bf16.msra.mxu0 %v6060_v36 }
 0xf6d   :  { %5373 = vmatprep.subr.bf16.mxu0 %v5686_v20 }
0x103a   :  { %v1621_v45 = vpop.f32.mrb[26].mxu0 }
0x103b   :  { %v1625_v46 = vadd.f32 %v1621_v45, %v5921_v54  ;;  %v4899_v1 = vpop.f32.mrb[27].mxu0  ;;  %v6209_v54 = vadd.f32 %v1160_v0, %v1159_v2 }
0x103d   :  { %5589 = vtanh.f32 %v1625_v46  ;;  %v4385_v51 = vmul.f32 -1.442695, %v1625_v46 }
0x103f   :  { %5591 = vpow2.f32 %v4385_v51  ;;  %v1777_v51 = vmul.f32 0.1, %v6158_v15 }
0x1047   :  { %v5590_v49 = vpop.eup %5589 }
0x1048   :  { %1635 = vrot.lane.b32.xlu0 %v5590_v49, %s5689_s18 }
0x1049   :  { %v5592_v53 = vpop.eup %5591 }
0x104a   :  { %v1629_v55 = vadd.f32 1.0, %v5592_v53 }
0x104c   :  { %5593 = vrcp.f32 %v1629_v55 }
0x1056   :  { %v5594_v57 = vpop.eup %5593 }
0x1057   :  { %v1633_v7 = vmul.f32 %v5594_v57, %v6209_v54 }
0x10ba   :  { %v1636_v60 = vpop.permute.xlu0 %1635 }
0x10bb   :  { %v1638_v63 = vmul.f32 %v5594_v57, %v1636_v60 }
0x10bd   :  { %1640 = vrot.lane.b32.xlu1 %v1638_v63, %s5690_s19 }
0x112f   :  { %v1641_v8 = vpop.permute.xlu1 %1640 }
0x1130   :  { %v6212_v10 = vadd.f32 %v1641_v8, %v1633_v7 }
0x1132   :  { %5595 = vtanh.f32 %v6212_v10 }
0x113c   :  { %v5596_v11 = vpop.eup %5595 }
0x113d   :  { %1646 = vrot.lane.b32.xlu0 %v5596_v11, %s5689_s18 }
0x1141   :  { %1661 = vrot.lane.b32.xlu0 %v6158_v15, %s5689_s18  ;;  %v1948_v15 = vld [vmem:[%s6797_s4 + $0x8] sm:$0xff] }
0x11af   :  { %v1647_v12 = vpop.permute.xlu0 %1646 }
0x11b0   :  { %v1649_v13 = vmul.f32 %v5594_v57, %v1647_v12 }
0x11b2   :  { %v1651_v28 = vmul.f32 0.9, %v1649_v13 }
0x11b3   :  { %v1662_v21 = vpop.permute.xlu0 %1661 }
0x11b4   :  { %v6219_v14 = vadd.f32 %v1651_v28, %v1650_v32 }
0x11b6   :  { %1658 = vrot.lane.b32.xlu1 %v6219_v14, %s5690_s19 }
0x1228   :  { %v1659_v19 = vpop.permute.xlu1 %1658 }
0x1229   :  { %v1664_v16 = vsel %vm66_vm0, %v1659_v19, %v1662_v21 }
0x122a   :  { %4917 = vmatmul.mubr.msk.f32.vlgmr.msra.gmra.mrb[20].mxu1 %vm691_vm4, %v1664_v16 }
0x122b   :  { %5369 = vmatpush3.bf16.msra.mxu1 %v6051_v30  ;;  %4938 = vmatprep.mubr.msk.f32.mxu1 %vm5687_vm1, %v5688_v31 }
0x122c   :  { %5370 = vmatprep.subr.bf16.mxu1 %v5686_v20 }
0x122f   :  { %5372 = vmatpush3.bf16.msra.mxu1 %v6064_v38 }
0x1230   :  { %5385 = vmatprep.subr.bf16.mxu1 %v5686_v20 }
0x12fd   :  { %v1742_v43 = vpop.f32.mrb[20].mxu1 }
0x12fe   :  { %v1752_v17 = vadd.f32 %v6023_v5, %v1742_v43  ;;  %v4918_v18 = vpop.f32.mrb[21].mxu1 }
0x1300   :  { %5597 = vtanh.f32 %v1752_v17  ;;  %v4388_v23 = vmul.f32 -1.442695, %v1752_v17 }
0x1302   :  { %5599 = vpow2.f32 %v4388_v23  ;;  %v1653_v23 = vmul.f32 0.1, %v6209_v54 }
0x130a   :  { %v5598_v22 = vpop.eup %5597 }
0x130b   :  { %1762 = vrot.lane.b32.xlu1 %v5598_v22, %s5689_s18 }
0x130c   :  { %v5600_v24 = vpop.eup %5599 }
0x130d   :  { %v1756_v27 = vadd.f32 1.0, %v5600_v24 }
0x130f   :  { %5601 = vrcp.f32 %v1756_v27 }
0x1319   :  { %v5602_v47 = vpop.eup %5601 }
0x131a   :  { %v1760_v42 = vmul.f32 %v5602_v47, %v6236_v26 }
0x137d   :  { %v1763_v29 = vpop.permute.xlu1 %1762 }
0x137e   :  { %v1765_v33 = vmul.f32 %v5602_v47, %v1763_v29 }
0x1380   :  { %1767 = vrot.lane.b32.xlu0 %v1765_v33, %s5690_s19 }
0x13f2   :  { %v1768_v44 = vpop.permute.xlu0 %1767 }
0x13f3   :  { %v6239_v45 = vadd.f32 %v1768_v44, %v1760_v42 }
0x13f5   :  { %5603 = vtanh.f32 %v6239_v45 }
0x13ff   :  { %v5604_v46 = vpop.eup %5603 }
0x1400   :  { %1773 = vrot.lane.b32.xlu1 %v5604_v46, %s5689_s18 }
0x1472   :  { %v1774_v1 = vpop.permute.xlu1 %1773 }
0x1473   :  { %v1776_v49 = vmul.f32 %v5602_v47, %v1774_v1 }
0x1475   :  { %v1778_v53 = vmul.f32 0.9, %v1776_v49 }
0x1477   :  { %v6244_v9 = vadd.f32 %v1778_v53, %v1777_v51 }
0x1479   :  { %1789 = vrot.lane.b32.xlu0 %v6244_v9, %s5690_s19 }
0x147d   :  { %2036 = vrot.lane.b32.xlu0 %v6219_v14, %s5691_s30 }
0x14eb   :  { %v1790_v4 = vpop.permute.xlu0 %1789 }
0x14ec   :  { %4928 = vmatmul.mubr.msk.f32.vlgmr.msra.gmra.mrb[28].mxu0 %vm66_vm0, %v1790_v4  ;;  %4939 = vmatmul.mubr.msk.f32.vlgmr.msra.gmra.mrb[22].mxu1 %vm66_vm0, %v1790_v4 }
0x14ed   :  { %4945 = vmatprep.mubr.msk.f32.mxu0 %vm5687_vm1, %v5688_v31  ;;  %5387 = vmatpush3.bf16.msra.mxu1 %v5980_v48  ;;  %v1947_v48 = vld [vmem:[%s6797_s4] sm:$0xff] }
0x14ee   :  { %5388 = vmatprep.subr.bf16.mxu1 %v5686_v20  ;;  %4979 = vmatprep.mubr.msk.f32.mxu1 %vm5687_vm1, %v5688_v31  ;;  %v6270_v55 = vpack.c.bf16 %v1948_v15, %v1947_v48 }
0x14ef   :  { %v2037_v28 = vpop.permute.xlu0 %2036 }
0x14f0   :  { %5375 = vmatpush3.bf16.msra.mxu0 %v6270_v55 }
0x14f1   :  { %5390 = vmatpush3.bf16.msra.mxu1 %v5986_v50  ;;  %v1945_v50 = vld [vmem:[%s6798_s1 + $0x18] sm:$0xff]  ;;  %5376 = vmatprep.subr.bf16.mxu0 %v5686_v20 }
0x14f2   :  { %5391 = vmatprep.subr.bf16.mxu1 %v5686_v20  ;;  %2031 = vrot.lane.b32.xlu1 %v1945_v50, %s5685_s16 }
0x14f5   :  { %5393 = vmatpush3.bf16.msra.mxu1 %v5996_v56 }
0x14f6   :  { %5394 = vmatprep.subr.bf16.mxu1 %v5686_v20 }
0x14f9   :  { %5396 = vmatpush3.bf16.msra.mxu1 %v6007_v62  ;;  %v1873_v62 = vld [vmem:[#allocation4 + $0x10] sm:$0xff] }
0x14fa   :  { %5403 = vmatprep.subr.bf16.mxu1 %v5686_v20 }
0x1564   :  { %v2032_v13 = vpop.permute.xlu1 %2031 }
0x15bf   :  { %v6278_v56 = vpop.f32.mrb[28].mxu0  ;;  %v1940_v57 = vpop.f32.mrb[22].mxu1 }
0x15c0   :  { %v1941_v60 = vadd.f32 %v1940_v57, %v1873_v62  ;;  %v4929_v63 = vpop.f32.mrb[29].mxu0  ;;  %v4940_v0 = vpop.f32.mrb[23].mxu1  ;;  %v1780_v62 = vmul.f32 0.1, %v6236_v26 }
0x15c2   :  { %v1944_v2 = vmax.f32 %v1941_v60, 0.0 }
0x15c4   :  { %v1946_v7 = vmul.f32 %v1945_v50, %v1944_v2 }
0x15c6   :  { %4946 = vmatmul.mubr.msk.f32.vlgmr.msra.gmra.mrb[30].mxu0 %vm313_vm2, %v1946_v7 }
0x15c7   :  { %5378 = vmatpush3.bf16.msra.mxu0 %v5873_v34  ;;  %4960 = vmatprep.mubr.msk.f32.mxu0 %vm5687_vm1, %v5688_v31 }
0x15c8   :  { %5379 = vmatprep.subr.bf16.mxu0 %v5686_v20 }
0x15cb   :  { %5381 = vmatpush3.bf16.msra.mxu0 %v5883_v37 }
0x15cc   :  { %5382 = vmatprep.subr.bf16.mxu0 %v5686_v20 }
0x15cf   :  { %5384 = vmatpush3.bf16.msra.mxu0 %v5893_v40 }
0x15d0   :  { %5397 = vmatprep.subr.bf16.mxu0 %v5686_v20 }
0x1699   :  { %v2025_v8 = vpop.f32.mrb[30].mxu0 }
0x169a   :  { %v2026_v11 = vadd.f32 %v5929_v58, %v2025_v8  ;;  %v4947_v12 = vpop.f32.mrb[31].mxu0  ;;  %v2271_v8 = vmul.f32 0.1, %v6244_v9 }
0x169c   :  { %v2029_v32 = vmax.f32 %v2026_v11, 0.0 }
0x169e   :  { %v2034_v34 = vmul.f32 %v2032_v13, %v2029_v32  ;;  %v2367_v13 = vld [vmem:[#allocation4 + $0x18] sm:$0xff] }
0x16a0   :  { %v2039_v21 = vsel %vm313_vm2, %v2034_v34, %v2037_v28 }
0x16a1   :  { %4961 = vmatmul.mubr.msk.f32.vlgmr.msra.gmra.mrb[32].mxu0 %vm574_vm3, %v2039_v21 }
0x16a2   :  { %5399 = vmatpush3.bf16.msra.mxu0 %v6040_v25  ;;  %4990 = vmatprep.mubr.msk.f32.mxu0 %vm5687_vm1, %v5688_v31 }
0x16a3   :  { %5400 = vmatprep.subr.bf16.mxu0 %v5686_v20 }
0x16a6   :  { %5402 = vmatpush3.bf16.msra.mxu0 %v6060_v36  ;;  %v1654_v36 = vmul.f32 0.9, %v6212_v10  ;;  %v2144_v10 = vmul.f32 0.1, %v6219_v14 }
0x16a7   :  { %5409 = vmatprep.subr.bf16.mxu0 %v5686_v20 }
0x1774   :  { %v2115_v37 = vpop.f32.mrb[32].mxu0 }
0x1775   :  { %v2119_v40 = vadd.f32 %v2115_v37, %v5917_v52  ;;  %v4962_v58 = vpop.f32.mrb[33].mxu0  ;;  %v6303_v52 = vadd.f32 %v1654_v36, %v1653_v23  ;;  %v2534_v37 = vld [vmem:[%s6802_s7] sm:$0xff] }
0x1776   :  { %v6394_v23 = vld [vmem:[%s6804_s5] ss:$0 sm:$0xff] }
0x1777   :  { %5605 = vtanh.f32 %v2119_v40  ;;  %v4394_v16 = vmul.f32 -1.442695, %v2119_v40  ;;  %v2535_v40 = vld [vmem:[%s6802_s7 + $0x8] sm:$0xff] }
0x1779   :  { %5607 = vpow2.f32 %v4394_v16 }
0x1781   :  { %v5606_v19 = vpop.eup %5605 }
0x1782   :  { %2129 = vrot.lane.b32.xlu1 %v5606_v19, %s5689_s18  ;;  %v6364_v19 = vpack.c.bf16 %v2535_v40, %v2534_v37 }
0x1783   :  { %v5608_v25 = vpop.eup %5607 }
0x1784   :  { %v2123_v43 = vadd.f32 1.0, %v5608_v25  ;;  %v2536_v25 = vld [vmem:[%s6802_s7 + $0x10] sm:$0xff] }
0x1786   :  { %5609 = vrcp.f32 %v2123_v43  ;;  %v2537_v43 = vld [vmem:[%s6802_s7 + $0x18] sm:$0xff] }
0x1790   :  { %v5610_v17 = vpop.eup %5609 }
0x1791   :  { %v2127_v24 = vmul.f32 %v5610_v17, %v6303_v52 }
0x17f4   :  { %v2130_v18 = vpop.permute.xlu1 %2129 }
0x17f5   :  { %v2132_v22 = vmul.f32 %v5610_v17, %v2130_v18  ;;  %v2538_v18 = vld [vmem:[%s6802_s7 + $0x20] sm:$0xff] }
0x17f7   :  { %2134 = vrot.lane.b32.xlu0 %v2132_v22, %s5690_s19  ;;  %v2539_v22 = vld [vmem:[%s6802_s7 + $0x28] sm:$0xff] }
0x17f8   :  { %v6387_v36 = vpack.c.bf16 %v2539_v22, %v2538_v18  ;;  %v6467_v18 = vld [vmem:[%s6806_s10] ss:$0 sm:$0xff] }
0x1869   :  { %v2135_v27 = vpop.permute.xlu0 %2134 }
0x186a   :  { %v6306_v47 = vadd.f32 %v2135_v27, %v2127_v24 }
0x186c   :  { %5611 = vtanh.f32 %v6306_v47 }
0x1876   :  { %v5612_v29 = vpop.eup %5611 }
0x1877   :  { %2140 = vrot.lane.b32.xlu1 %v5612_v29, %s5689_s18 }
0x187b   :  { %2155 = vrot.lane.b32.xlu1 %v6244_v9, %s5689_s18  ;;  %v2439_v9 = vld [vmem:[%s6798_s1 + $0x20] sm:$0xff] }
0x18e9   :  { %v2141_v33 = vpop.permute.xlu1 %2140 }
0x18ea   :  { %v2143_v35 = vmul.f32 %v5610_v17, %v2141_v33  ;;  %v6377_v17 = vpack.c.bf16 %v2537_v43, %v2536_v25 }
0x18ec   :  { %v2145_v54 = vmul.f32 0.9, %v2143_v35 }
0x18ed   :  { %v2156_v42 = vpop.permute.xlu1 %2155 }
0x18ee   :  { %v6313_v39 = vadd.f32 %v2145_v54, %v2144_v10 }
0x18f0   :  { %2152 = vrot.lane.b32.xlu0 %v6313_v39, %s5690_s19  ;;  %v2638_v37 = vmul.f32 0.1, %v6313_v39 }
0x1962   :  { %v2153_v44 = vpop.permute.xlu0 %2152 }
0x1963   :  { %v2158_v46 = vsel %vm66_vm0, %v2153_v44, %v2156_v42 }
0x1964   :  { %4980 = vmatmul.mubr.msk.f32.vlgmr.msra.gmra.mrb[24].mxu1 %vm691_vm4, %v2158_v46 }
0x1965   :  { %5405 = vmatpush3.bf16.msra.mxu1 %v6051_v30  ;;  %5001 = vmatprep.mubr.msk.f32.mxu1 %vm5687_vm1, %v5688_v31 }
0x1966   :  { %5406 = vmatprep.subr.bf16.mxu1 %v5686_v20 }
0x1969   :  { %5408 = vmatpush3.bf16.msra.mxu1 %v6064_v38  ;;  %v1781_v38 = vmul.f32 0.9, %v6239_v45 }
0x196a   :  { %5421 = vmatprep.subr.bf16.mxu1 %v5686_v20 }
0x1a37   :  { %v2236_v14 = vpop.f32.mrb[24].mxu1 }
0x1a38   :  { %v2246_v1 = vadd.f32 %v6023_v5, %v2236_v14  ;;  %v4981_v49 = vpop.f32.mrb[25].mxu1  ;;  %v6330_v5 = vadd.f32 %v1781_v38, %v1780_v62 }
0x1a3a   :  { %5613 = vtanh.f32 %v2246_v1  ;;  %v4397_v53 = vmul.f32 -1.442695, %v2246_v1 }
0x1a3c   :  { %5615 = vpow2.f32 %v4397_v53 }
0x1a44   :  { %v5614_v51 = vpop.eup %5613 }
0x1a45   :  { %2256 = vrot.lane.b32.xlu0 %v5614_v51, %s5689_s18 }
0x1a46   :  { %v5616_v30 = vpop.eup %5615 }
0x1a47   :  { %v2250_v4 = vadd.f32 1.0, %v5616_v30 }
0x1a49   :  { %5617 = vrcp.f32 %v2250_v4 }
0x1a53   :  { %v5618_v48 = vpop.eup %5617 }
0x1a54   :  { %v2254_v57 = vmul.f32 %v5618_v48, %v6330_v5 }
0x1ab7   :  { %v2257_v15 = vpop.permute.xlu0 %2256 }
0x1ab8   :  { %v2259_v50 = vmul.f32 %v5618_v48, %v2257_v15  ;;  %v2148_v15 = vmul.f32 0.9, %v6306_v47 }
0x1aba   :  { %2261 = vrot.lane.b32.xlu1 %v2259_v50, %s5690_s19  ;;  %v2147_v50 = vmul.f32 0.1, %v6303_v52  ;;  %v2655_v52 = vld [vmem:[%s6805_s9 + $0x10] sm:$0xff] }
0x1b2c   :  { %v2262_v60 = vpop.permute.xlu1 %2261 }
0x1b2d   :  { %v6333_v63 = vadd.f32 %v2262_v60, %v2254_v57  ;;  %v2653_v60 = vld [vmem:[%s6805_s9] sm:$0xff] }
0x1b2f   :  { %5619 = vtanh.f32 %v6333_v63 }
0x1b39   :  { %v5620_v0 = vpop.eup %5619 }
0x1b3a   :  { %2267 = vrot.lane.b32.xlu0 %v5620_v0, %s5689_s18  ;;  %v2654_v0 = vld [vmem:[%s6805_s9 + $0x8] sm:$0xff] }
0x1b3b   :  { %v6421_v47 = vpack.c.bf16 %v2654_v0, %v2653_v60  ;;  %v2860_v60 = vld [vmem:[%s6808_s13 + $0x18] sm:$0xff] }
0x1b3e   :  { %2525 = vrot.lane.b32.xlu0 %v2439_v9, %s5685_s16 }
0x1bac   :  { %v2268_v2 = vpop.permute.xlu0 %2267 }
0x1bad   :  { %v2270_v7 = vmul.f32 %v5618_v48, %v2268_v2  ;;  %v2656_v2 = vld [vmem:[%s6805_s9 + $0x18] sm:$0xff] }
0x1baf   :  { %v2272_v11 = vmul.f32 0.9, %v2270_v7  ;;  %v6427_v7 = vpack.c.bf16 %v2656_v2, %v2655_v52 }
0x1bb0   :  { %v2526_v33 = vpop.permute.xlu0 %2525 }
0x1bb1   :  { %v6338_v45 = vadd.f32 %v2272_v11, %v2271_v8  ;;  %v2657_v8 = vld [vmem:[%s6805_s9 + $0x20] sm:$0xff]  ;;  %v2658_v11 = vld [vmem:[%s6805_s9 + $0x28] sm:$0xff] }
0x1bb3   :  { %2283 = vrot.lane.b32.xlu1 %v6338_v45, %s5690_s19 }
0x1bb7   :  { %2530 = vrot.lane.b32.xlu1 %v6313_v39, %s5691_s30 }
0x1c25   :  { %v2284_v26 = vpop.permute.xlu1 %2283 }
0x1c26   :  { %4991 = vmatmul.mubr.msk.f32.vlgmr.msra.gmra.mrb[34].mxu0 %vm66_vm0, %v2284_v26  ;;  %5002 = vmatmul.mubr.msk.f32.vlgmr.msra.gmra.mrb[26].mxu1 %vm66_vm0, %v2284_v26 }
0x1c27   :  { %5411 = vmatpush3.bf16.msra.mxu0 %v6270_v55  ;;  %5008 = vmatprep.mubr.msk.f32.mxu0 %vm5687_vm1, %v5688_v31 }
0x1c28   :  { %5412 = vmatprep.subr.bf16.mxu0 %v5686_v20  ;;  %5042 = vmatprep.mubr.msk.f32.mxu1 %vm5687_vm1, %v5688_v31 }
0x1c29   :  { %v2531_v54 = vpop.permute.xlu1 %2530  ;;  %5423 = vmatpush3.bf16.msra.mxu1 %v6421_v47 }
0x1c2a   :  { %5424 = vmatprep.subr.bf16.mxu1 %v5686_v20 }
0x1c2d   :  { %5426 = vmatpush3.bf16.msra.mxu1 %v6427_v7 }
0x1c2e   :  { %5427 = vmatprep.subr.bf16.mxu1 %v5686_v20 }
0x1cf9   :  { %v6356_v12 = vpop.f32.mrb[34].mxu0  ;;  %v2434_v32 = vpop.f32.mrb[26].mxu1 }
0x1cfa   :  { %v2435_v34 = vadd.f32 %v2434_v32, %v2367_v13  ;;  %v4992_v28 = vpop.f32.mrb[35].mxu0  ;;  %v5003_v21 = vpop.f32.mrb[27].mxu1  ;;  %v2659_v13 = vld [vmem:[%s6805_s9 + $0x30] sm:$0xff]  ;;  %v2660_v32 = vld [vmem:[%s6805_s9 + $0x38] sm:$0xff] }
0x1cfc   :  { %v2438_v58 = vmax.f32 %v2435_v34, 0.0  ;;  %v6450_v34 = vpack.c.bf16 %v2660_v32, %v2659_v13 }
0x1cfe   :  { %v2440_v16 = vmul.f32 %v2439_v9, %v2438_v58  ;;  %v6438_v9 = vpack.c.bf16 %v2658_v11, %v2657_v8  ;;  %v2765_v11 = vmul.f32 0.1, %v6338_v45 }
0x1d00   :  { %5009 = vmatmul.mubr.msk.f32.vlgmr.msra.gmra.mrb[36].mxu0 %vm313_vm2, %v2440_v16  ;;  %5429 = vmatpush3.bf16.msra.mxu1 %v6438_v9 }
0x1d01   :  { %5414 = vmatpush3.bf16.msra.mxu0 %v6364_v19  ;;  %5023 = vmatprep.mubr.msk.f32.mxu0 %vm5687_vm1, %v5688_v31 }
0x1d02   :  { %5415 = vmatprep.subr.bf16.mxu0 %v5686_v20  ;;  %5430 = vmatprep.subr.bf16.mxu1 %v5686_v20 }
0x1d04   :  { %5432 = vmatpush3.bf16.msra.mxu1 %v6450_v34 }
0x1d05   :  { %5417 = vmatpush3.bf16.msra.mxu0 %v6377_v17  ;;  %5439 = vmatprep.subr.bf16.mxu1 %v5686_v20 }
0x1d06   :  { %5418 = vmatprep.subr.bf16.mxu0 %v5686_v20 }
0x1d09   :  { %5420 = vmatpush3.bf16.msra.mxu0 %v6387_v36 }
0x1d0a   :  { %5433 = vmatprep.subr.bf16.mxu0 %v5686_v20 }
0x1dd3   :  { %v2519_v24 = vpop.f32.mrb[36].mxu0 }
0x1dd4   :  { %v2520_v27 = vadd.f32 %v6394_v23, %v2519_v24  ;;  %v5010_v29 = vpop.f32.mrb[37].mxu0 }
0x1dd6   :  { %v2523_v35 = vmax.f32 %v2520_v27, 0.0 }
0x1dd8   :  { %v2528_v10 = vmul.f32 %v2526_v33, %v2523_v35 }
0x1dda   :  { %v2533_v42 = vsel %vm313_vm2, %v2528_v10, %v2531_v54 }
0x1ddb   :  { %5024 = vmatmul.mubr.msk.f32.vlgmr.msra.gmra.mrb[38].mxu0 %vm574_vm3, %v2533_v42 }
0x1ddc   :  { %5053 = vmatprep.mubr.msk.f32.mxu0 %vm5687_vm1, %v5688_v31 }
0x1eae   :  { %v2609_v44 = vpop.f32.mrb[38].mxu0 }
0x1eaf   :  { %v2613_v46 = vadd.f32 %v2609_v44, %v5936_v61  ;;  %v5025_v14 = vpop.f32.mrb[39].mxu0  ;;  %v6406_v61 = vadd.f32 %v2148_v15, %v2147_v50  ;;  %v2275_v44 = vmul.f32 0.9, %v6333_v63  ;;  %v2774_v15 = vld [vmem:[%s6807_s11 + $0x18] sm:$0xff] }
0x1eb1   :  { %5621 = vtanh.f32 %v2613_v46  ;;  %v4403_v49 = vmul.f32 -1.442695, %v2613_v46  ;;  %v2274_v46 = vmul.f32 0.1, %v6330_v5  ;;  %v2857_v5 = vld [vmem:[%s6808_s13] sm:$0xff] }
0x1eb3   :  { %5623 = vpow2.f32 %v4403_v49  ;;  %v6474_v14 = vadd.f32 %v2275_v44, %v2274_v46 }
0x1ebb   :  { %v5622_v1 = vpop.eup %5621 }
0x1ebc   :  { %2623 = vrot.lane.b32.xlu0 %v5622_v1, %s5689_s18 }
0x1ebd   :  { %v5624_v51 = vpop.eup %5623 }
0x1ebe   :  { %v2617_v53 = vadd.f32 1.0, %v5624_v51 }
0x1ec0   :  { %5625 = vrcp.f32 %v2617_v53  ;;  %v2771_v53 = vld [vmem:[%s6807_s11] sm:$0xff] }
0x1eca   :  { %v5626_v30 = vpop.eup %5625 }
0x1ecb   :  { %v2621_v38 = vmul.f32 %v5626_v30, %v6406_v61 }
0x1f2e   :  { %v2624_v4 = vpop.permute.xlu0 %2623 }
0x1f2f   :  { %v2626_v48 = vmul.f32 %v5626_v30, %v2624_v4  ;;  %v2858_v4 = vld [vmem:[%s6808_s13 + $0x8] sm:$0xff] }
0x1f31   :  { %2628 = vrot.lane.b32.xlu1 %v2626_v48, %s5690_s19  ;;  %v2773_v48 = vld [vmem:[%s6807_s11 + $0x10] sm:$0xff] }
0x1f32   :  { %v6510_v0 = vpack.c.bf16 %v2774_v15, %v2773_v48 }
0x1fa3   :  { %v2629_v62 = vpop.permute.xlu1 %2628 }
0x1fa4   :  { %v6409_v57 = vadd.f32 %v2629_v62, %v2621_v38  ;;  %v6500_v38 = vpack.c.bf16 %v2858_v4, %v2857_v5  ;;  %v2859_v62 = vld [vmem:[%s6808_s13 + $0x10] sm:$0xff] }
0x1fa5   :  { %v6514_v52 = vpack.c.bf16 %v2860_v60, %v2859_v62 }
0x1fa6   :  { %5627 = vtanh.f32 %v6409_v57  ;;  %v2642_v15 = vmul.f32 0.9, %v6409_v57 }
0x1fb0   :  { %v5628_v26 = vpop.eup %5627 }
0x1fb1   :  { %2634 = vrot.lane.b32.xlu0 %v5628_v26, %s5689_s18 }
0x1fb5   :  { %2649 = vrot.lane.b32.xlu0 %v6338_v45, %s5689_s18  ;;  %v2933_v45 = vld [vmem:[%s6798_s1 + $0x28] sm:$0xff] }
0x2023   :  { %v2635_v28 = vpop.permute.xlu0 %2634 }
0x2024   :  { %v2637_v21 = vmul.f32 %v5626_v30, %v2635_v28  ;;  %v2772_v30 = vld [vmem:[%s6807_s11 + $0x8] sm:$0xff] }
0x2025   :  { %v6489_v63 = vpack.c.bf16 %v2772_v30, %v2771_v53 }
0x2026   :  { %v2639_v40 = vmul.f32 0.9, %v2637_v21  ;;  %v2861_v21 = vld [vmem:[#allocation4 + $0x20] sm:$0xff] }
0x2027   :  { %v2650_v16 = vpop.permute.xlu0 %2649  ;;  %5435 = vmatpush3.bf16.msra.mxu0 %v6489_v63 }
0x2028   :  { %v6456_v58 = vadd.f32 %v2639_v40, %v2638_v37  ;;  %5436 = vmatprep.subr.bf16.mxu0 %v5686_v20 }
0x202a   :  { %2646 = vrot.lane.b32.xlu1 %v6456_v58, %s5690_s19  ;;  %v3132_v57 = vmul.f32 0.1, %v6456_v58 }
0x202b   :  { %5438 = vmatpush3.bf16.msra.mxu0 %v6510_v0 }
0x202c   :  { %5445 = vmatprep.subr.bf16.mxu0 %v5686_v20 }
0x209c   :  { %v2647_v25 = vpop.permute.xlu1 %2646 }
0x209d   :  { %v2652_v43 = vsel %vm66_vm0, %v2647_v25, %v2650_v16 }
0x209e   :  { %5043 = vmatmul.mubr.msk.f32.vlgmr.msra.gmra.mrb[28].mxu1 %vm691_vm4, %v2652_v43 }
0x209f   :  { %5064 = vmatprep.mubr.msk.f32.mxu1 %vm5687_vm1, %v5688_v31  ;;  %5441 = vmatpush3.bf16.msra.mxu1 %v6500_v38 }
0x20a0   :  { %5442 = vmatprep.subr.bf16.mxu1 %v5686_v20 }
0x20a3   :  { %5444 = vmatpush3.bf16.msra.mxu1 %v6514_v52 }
0x20a4   :  { %5457 = vmatprep.subr.bf16.mxu1 %v5686_v20 }
0x2171   :  { %v2730_v39 = vpop.f32.mrb[28].mxu1 }
0x2172   :  { %v2740_v22 = vadd.f32 %v6467_v18, %v2730_v39  ;;  %v5044_v24 = vpop.f32.mrb[29].mxu1 }
0x2174   :  { %5629 = vtanh.f32 %v2740_v22  ;;  %v4406_v29 = vmul.f32 -1.442695, %v2740_v22 }
0x2176   :  { %5631 = vpow2.f32 %v4406_v29 }
0x217e   :  { %v5630_v27 = vpop.eup %5629 }
0x217f   :  { %2750 = vrot.lane.b32.xlu1 %v5630_v27, %s5689_s18 }
0x2180   :  { %v5632_v33 = vpop.eup %5631 }
0x2181   :  { %v2744_v35 = vadd.f32 1.0, %v5632_v33 }
0x2183   :  { %5633 = vrcp.f32 %v2744_v35 }
0x218d   :  { %v5634_v10 = vpop.eup %5633 }
0x218e   :  { %v2748_v1 = vmul.f32 %v5634_v10, %v6474_v14 }
0x21f1   :  { %v2751_v54 = vpop.permute.xlu1 %2750 }
0x21f2   :  { %v2753_v42 = vmul.f32 %v5634_v10, %v2751_v54 }
0x21f4   :  { %2755 = vrot.lane.b32.xlu0 %v2753_v42, %s5690_s19 }
0x2266   :  { %v2756_v49 = vpop.permute.xlu0 %2755 }
0x2267   :  { %v6477_v51 = vadd.f32 %v2756_v49, %v2748_v1 }
0x2269   :  { %5635 = vtanh.f32 %v6477_v51 }
0x2273   :  { %v5636_v50 = vpop.eup %5635 }
0x2274   :  { %2761 = vrot.lane.b32.xlu1 %v5636_v50, %s5689_s18  ;;  %v2641_v50 = vmul.f32 0.1, %v6406_v61 }
0x2278   :  { %3019 = vrot.lane.b32.xlu1 %v2933_v45, %s5685_s16 }
0x22e6   :  { %v2762_v2 = vpop.permute.xlu1 %2761 }
0x22e7   :  { %v2764_v8 = vmul.f32 %v5634_v10, %v2762_v2 }
0x22e9   :  { %v2766_v26 = vmul.f32 0.9, %v2764_v8 }
0x22ea   :  { %v3020_v29 = vpop.permute.xlu1 %3019 }
0x22eb   :  { %v6522_v13 = vadd.f32 %v2766_v26, %v2765_v11 }
0x22ed   :  { %2777 = vrot.lane.b32.xlu0 %v6522_v13, %s5690_s19 }
0x22f1   :  { %3024 = vrot.lane.b32.xlu0 %v6456_v58, %s5691_s30 }
0x235f   :  { %v2778_v32 = vpop.permute.xlu0 %2777 }
0x2360   :  { %5054 = vmatmul.mubr.msk.f32.vlgmr.msra.gmra.mrb[40].mxu0 %vm66_vm0, %v2778_v32  ;;  %5065 = vmatmul.mubr.msk.f32.vlgmr.msra.gmra.mrb[30].mxu1 %vm66_vm0, %v2778_v32 }
0x2361   :  { %5447 = vmatpush3.bf16.msra.mxu0 %v6270_v55  ;;  %5071 = vmatprep.mubr.msk.f32.mxu0 %vm5687_vm1, %v5688_v31 }
0x2362   :  { %5448 = vmatprep.subr.bf16.mxu0 %v5686_v20  ;;  %5459 = vmatpush3.bf16.msra.mxu1 %v6421_v47 }
0x2363   :  { %5460 = vmatprep.subr.bf16.mxu1 %v5686_v20  ;;  %5105 = vmatprep.mubr.msk.f32.mxu1 %vm5687_vm1, %v5688_v31  ;;  %v3025_v10 = vpop.permute.xlu0 %3024 }
0x2366   :  { %5462 = vmatpush3.bf16.msra.mxu1 %v6427_v7 }
0x2367   :  { %5463 = vmatprep.subr.bf16.mxu1 %v5686_v20 }
0x236a   :  { %5465 = vmatpush3.bf16.msra.mxu1 %v6438_v9 }
0x236b   :  { %5466 = vmatprep.subr.bf16.mxu1 %v5686_v20 }
0x236e   :  { %5468 = vmatpush3.bf16.msra.mxu1 %v6450_v34 }
0x236f   :  { %5475 = vmatprep.subr.bf16.mxu1 %v5686_v20 }
0x2433   :  { %v6548_v28 = vpop.f32.mrb[40].mxu0  ;;  %v2928_v37 = vpop.f32.mrb[30].mxu1 }
0x2434   :  { %v2929_v40 = vadd.f32 %v2928_v37, %v2861_v21  ;;  %v5055_v16 = vpop.f32.mrb[41].mxu0  ;;  %v5066_v25 = vpop.f32.mrb[31].mxu1 }
0x2436   :  { %v2932_v43 = vmax.f32 %v2929_v40, 0.0 }
0x2438   :  { %v2934_v39 = vmul.f32 %v2933_v45, %v2932_v43 }
0x243a   :  { %5072 = vmatmul.mubr.msk.f32.vlgmr.msra.gmra.mrb[42].mxu0 %vm313_vm2, %v2934_v39 }
0x243b   :  { %5450 = vmatpush3.bf16.msra.mxu0 %v6364_v19  ;;  %5086 = vmatprep.mubr.msk.f32.mxu0 %vm5687_vm1, %v5688_v31 }
0x243c   :  { %5451 = vmatprep.subr.bf16.mxu0 %v5686_v20 }
0x243f   :  { %5453 = vmatpush3.bf16.msra.mxu0 %v6377_v17 }
0x2440   :  { %5454 = vmatprep.subr.bf16.mxu0 %v5686_v20 }
0x2443   :  { %5456 = vmatpush3.bf16.msra.mxu0 %v6387_v36 }
0x2444   :  { %5469 = vmatprep.subr.bf16.mxu0 %v5686_v20 }
0x250d   :  { %v3013_v22 = vpop.f32.mrb[42].mxu0 }
0x250e   :  { %v3014_v24 = vadd.f32 %v6394_v23, %v3013_v22  ;;  %v5073_v27 = vpop.f32.mrb[43].mxu0 }
0x2510   :  { %v3017_v33 = vmax.f32 %v3014_v24, 0.0 }
0x2512   :  { %v3022_v35 = vmul.f32 %v3020_v29, %v3017_v33  ;;  %v2769_v33 = vmul.f32 0.9, %v6477_v51 }
0x2514   :  { %v3027_v54 = vsel %vm313_vm2, %v3022_v35, %v3025_v10  ;;  %v2768_v35 = vmul.f32 0.1, %v6474_v14 }
0x2515   :  { %5087 = vmatmul.mubr.msk.f32.vlgmr.msra.gmra.mrb[44].mxu0 %vm574_vm3, %v3027_v54 }
0x2516   :  { %5471 = vmatpush3.bf16.msra.mxu0 %v6489_v63  ;;  %5116 = vmatprep.mubr.msk.f32.mxu0 %vm5687_vm1, %v5688_v31  ;;  %v6600_v10 = vadd.f32 %v2769_v33, %v2768_v35 }
0x2517   :  { %5472 = vmatprep.subr.bf16.mxu0 %v5686_v20 }
0x251a   :  { %5474 = vmatpush3.bf16.msra.mxu0 %v6510_v0 }
0x251b   :  { %5481 = vmatprep.subr.bf16.mxu0 %v5686_v20 }
0x25e8   :  { %v3103_v42 = vpop.f32.mrb[44].mxu0 }
0x25e9   :  { %v3107_v44 = vadd.f32 %v3103_v42, %v5932_v59  ;;  %v5088_v46 = vpop.f32.mrb[45].mxu0  ;;  %v6573_v59 = vadd.f32 %v2642_v15, %v2641_v50 }
0x25eb   :  { %5637 = vtanh.f32 %v3107_v44  ;;  %v4412_v49 = vmul.f32 -1.442695, %v3107_v44  ;;  %v3135_v35 = vmul.f32 0.1, %v6573_v59 }
0x25ed   :  { %5639 = vpow2.f32 %v4412_v49 }
0x25f5   :  { %v5638_v1 = vpop.eup %5637 }
0x25f6   :  { %3117 = vrot.lane.b32.xlu1 %v5638_v1, %s5689_s18 }
0x25f7   :  { %v5640_v53 = vpop.eup %5639 }
0x25f8   :  { %v3111_v30 = vadd.f32 1.0, %v5640_v53  ;;  %v3259_v53 = vmul.f32 0.1, %v6522_v13 }
0x25fa   :  { %5641 = vrcp.f32 %v3111_v30 }
0x2604   :  { %v5642_v5 = vpop.eup %5641 }
0x2605   :  { %v3115_v62 = vmul.f32 %v5642_v5, %v6573_v59 }
0x2668   :  { %v3118_v4 = vpop.permute.xlu1 %3117 }
0x2669   :  { %v3120_v48 = vmul.f32 %v5642_v5, %v3118_v4 }
0x266b   :  { %3122 = vrot.lane.b32.xlu0 %v3120_v48, %s5690_s19 }
0x26dd   :  { %v3123_v60 = vpop.permute.xlu0 %3122 }
0x26de   :  { %v6576_v2 = vadd.f32 %v3123_v60, %v3115_v62 }
0x26e0   :  { %5643 = vtanh.f32 %v6576_v2  ;;  %v3136_v33 = vmul.f32 0.9, %v6576_v2 }
0x26ea   :  { %v5644_v8 = vpop.eup %5643 }
0x26eb   :  { %3128 = vrot.lane.b32.xlu1 %v5644_v8, %s5689_s18 }
0x26ef   :  { %3143 = vrot.lane.b32.xlu1 %v6522_v13, %s5689_s18 }
0x275d   :  { %v3129_v11 = vpop.permute.xlu1 %3128 }
0x275e   :  { %v3131_v26 = vmul.f32 %v5642_v5, %v3129_v11  ;;  %v3355_v5 = vld [vmem:[#allocation4 + $0x28] sm:$0xff] }
0x2760   :  { %v3133_v61 = vmul.f32 0.9, %v3131_v26 }
0x2761   :  { %v3144_v45 = vpop.permute.xlu1 %3143 }
0x2762   :  { %v6583_v32 = vadd.f32 %v3133_v61, %v3132_v57 }
0x2764   :  { %3140 = vrot.lane.b32.xlu0 %v6583_v32, %s5690_s19  ;;  %v3626_v2 = vmul.f32 0.1, %v6583_v32 }
0x27d6   :  { %v3141_v21 = vpop.permute.xlu0 %3140 }
0x27d7   :  { %v3146_v37 = vsel %vm66_vm0, %v3141_v21, %v3144_v45 }
0x27d8   :  { %5106 = vmatmul.mubr.msk.f32.vlgmr.msra.gmra.mrb[32].mxu1 %vm691_vm4, %v3146_v37 }
0x27d9   :  { %5477 = vmatpush3.bf16.msra.mxu1 %v6500_v38  ;;  %5127 = vmatprep.mubr.msk.f32.mxu1 %vm5687_vm1, %v5688_v31 }
0x27da   :  { %5478 = vmatprep.subr.bf16.mxu1 %v5686_v20 }
0x27dd   :  { %5480 = vmatpush3.bf16.msra.mxu1 %v6514_v52 }
0x27de   :  { %5493 = vmatprep.subr.bf16.mxu1 %v5686_v20 }
0x28ab   :  { %v3224_v58 = vpop.f32.mrb[32].mxu1 }
0x28ac   :  { %v3234_v40 = vadd.f32 %v6467_v18, %v3224_v58  ;;  %v5107_v16 = vpop.f32.mrb[33].mxu1 }
0x28ae   :  { %5645 = vtanh.f32 %v3234_v40  ;;  %v4415_v43 = vmul.f32 -1.442695, %v3234_v40 }
0x28b0   :  { %5647 = vpow2.f32 %v4415_v43 }
0x28b8   :  { %v5646_v25 = vpop.eup %5645 }
0x28b9   :  { %3244 = vrot.lane.b32.xlu0 %v5646_v25, %s5689_s18 }
0x28ba   :  { %v5648_v39 = vpop.eup %5647 }
0x28bb   :  { %v3238_v22 = vadd.f32 1.0, %v5648_v39 }
0x28bd   :  { %5649 = vrcp.f32 %v3238_v22 }
0x28c7   :  { %v5650_v24 = vpop.eup %5649 }
0x28c8   :  { %v3242_v54 = vmul.f32 %v5650_v24, %v6600_v10 }
0x292b   :  { %v3245_v27 = vpop.permute.xlu0 %3244 }
0x292c   :  { %v3247_v29 = vmul.f32 %v5650_v24, %v3245_v27 }
0x292e   :  { %3249 = vrot.lane.b32.xlu1 %v3247_v29, %s5690_s19 }
0x29a0   :  { %v3250_v42 = vpop.permute.xlu1 %3249 }
0x29a1   :  { %v6603_v44 = vadd.f32 %v3250_v42, %v3242_v54 }
0x29a3   :  { %5651 = vtanh.f32 %v6603_v44 }
0x29ad   :  { %v5652_v46 = vpop.eup %5651 }
0x29ae   :  { %3255 = vrot.lane.b32.xlu0 %v5652_v46, %s5689_s18 }
0x2a20   :  { %v3256_v1 = vpop.permute.xlu0 %3255 }
0x2a21   :  { %v3258_v49 = vmul.f32 %v5650_v24, %v3256_v1 }
0x2a23   :  { %v3260_v30 = vmul.f32 0.9, %v3258_v49 }
0x2a25   :  { %v6608_v51 = vadd.f32 %v3260_v30, %v3259_v53 }
0x2a27   :  { %3271 = vrot.lane.b32.xlu1 %v6608_v51, %s5690_s19 }
0x2a2b   :  { %3518 = vrot.lane.b32.xlu1 %v6583_v32, %s5691_s30 }
0x2a99   :  { %v3272_v14 = vpop.permute.xlu1 %3271 }
0x2a9a   :  { %5117 = vmatmul.mubr.msk.f32.vlgmr.msra.gmra.mrb[46].mxu0 %vm66_vm0, %v3272_v14  ;;  %5128 = vmatmul.mubr.msk.f32.vlgmr.msra.gmra.mrb[34].mxu1 %vm66_vm0, %v3272_v14 }
0x2a9b   :  { %5483 = vmatpush3.bf16.msra.mxu0 %v6270_v55  ;;  %5134 = vmatprep.mubr.msk.f32.mxu0 %vm5687_vm1, %v5688_v31  ;;  %v3427_v55 = vld [vmem:[%s6798_s1 + $0x30] sm:$0xff] }
0x2a9c   :  { %5484 = vmatprep.subr.bf16.mxu0 %v5686_v20  ;;  %5495 = vmatpush3.bf16.msra.mxu1 %v6421_v47 }
0x2a9d   :  { %5496 = vmatprep.subr.bf16.mxu1 %v5686_v20  ;;  %5168 = vmatprep.mubr.msk.f32.mxu1 %vm5687_vm1, %v5688_v31  ;;  %v3519_v21 = vpop.permute.xlu1 %3518 }
0x2a9e   :  { %3513 = vrot.lane.b32.xlu0 %v3427_v55, %s5685_s16 }
0x2aa0   :  { %5498 = vmatpush3.bf16.msra.mxu1 %v6427_v7 }
0x2aa1   :  { %5499 = vmatprep.subr.bf16.mxu1 %v5686_v20 }
0x2aa4   :  { %5501 = vmatpush3.bf16.msra.mxu1 %v6438_v9 }
0x2aa5   :  { %5502 = vmatprep.subr.bf16.mxu1 %v5686_v20 }
0x2aa8   :  { %5504 = vmatpush3.bf16.msra.mxu1 %v6450_v34 }
0x2aa9   :  { %5511 = vmatprep.subr.bf16.mxu1 %v5686_v20 }
0x2b10   :  { %v3514_v57 = vpop.permute.xlu0 %3513 }
0x2b6d   :  { %v6634_v13 = vpop.f32.mrb[46].mxu0  ;;  %v3422_v4 = vpop.f32.mrb[34].mxu1 }
0x2b6e   :  { %v3423_v48 = vadd.f32 %v3422_v4, %v3355_v5  ;;  %v5118_v15 = vpop.f32.mrb[47].mxu0  ;;  %v5129_v50 = vpop.f32.mrb[35].mxu1 }
0x2b70   :  { %v3426_v62 = vmax.f32 %v3423_v48, 0.0 }
0x2b72   :  { %v3428_v60 = vmul.f32 %v3427_v55, %v3426_v62 }
0x2b74   :  { %5135 = vmatmul.mubr.msk.f32.vlgmr.msra.gmra.mrb[48].mxu0 %vm313_vm2, %v3428_v60 }
0x2b75   :  { %5486 = vmatpush3.bf16.msra.mxu0 %v6364_v19  ;;  %5149 = vmatprep.mubr.msk.f32.mxu0 %vm5687_vm1, %v5688_v31 }
0x2b76   :  { %5487 = vmatprep.subr.bf16.mxu0 %v5686_v20 }
0x2b79   :  { %5489 = vmatpush3.bf16.msra.mxu0 %v6377_v17 }
0x2b7a   :  { %5490 = vmatprep.subr.bf16.mxu0 %v5686_v20 }
0x2b7d   :  { %5492 = vmatpush3.bf16.msra.mxu0 %v6387_v36 }
0x2b7e   :  { %5505 = vmatprep.subr.bf16.mxu0 %v5686_v20 }
0x2c47   :  { %v3507_v8 = vpop.f32.mrb[48].mxu0 }
0x2c48   :  { %v3508_v11 = vadd.f32 %v6394_v23, %v3507_v8  ;;  %v5136_v26 = vpop.f32.mrb[49].mxu0 }
0x2c49   :  { %v3262_v26 = vmul.f32 0.1, %v6600_v10 }
0x2c4a   :  { %v3511_v61 = vmax.f32 %v3508_v11, 0.0 }
0x2c4c   :  { %v3516_v45 = vmul.f32 %v3514_v57, %v3511_v61 }
0x2c4e   :  { %v3521_v37 = vsel %vm313_vm2, %v3516_v45, %v3519_v21 }
0x2c4f   :  { %5150 = vmatmul.mubr.msk.f32.vlgmr.msra.gmra.mrb[50].mxu0 %vm574_vm3, %v3521_v37 }
0x2c50   :  { %5507 = vmatpush3.bf16.msra.mxu0 %v6489_v63  ;;  %5179 = vmatprep.mubr.msk.f32.mxu0 %vm5687_vm1, %v5688_v31 }
0x2c51   :  { %5508 = vmatprep.subr.bf16.mxu0 %v5686_v20 }
0x2c54   :  { %5510 = vmatpush3.bf16.msra.mxu0 %v6510_v0 }
0x2c55   :  { %5517 = vmatprep.subr.bf16.mxu0 %v5686_v20 }
0x2d22   :  { %v3597_v58 = vpop.f32.mrb[50].mxu0 }
0x2d23   :  { %v3601_v40 = vadd.f32 %v3597_v58, %v5945_v6  ;;  %v5151_v16 = vpop.f32.mrb[51].mxu0  ;;  %v6659_v6 = vadd.f32 %v3136_v33, %v3135_v35 }
0x2d24   :  { %v3753_v16 = vmul.f32 0.1, %v6608_v51 }
0x2d25   :  { %5653 = vtanh.f32 %v3601_v40  ;;  %v4421_v43 = vmul.f32 -1.442695, %v3601_v40 }
0x2d27   :  { %5655 = vpow2.f32 %v4421_v43 }
0x2d2f   :  { %v5654_v25 = vpop.eup %5653 }
0x2d30   :  { %3611 = vrot.lane.b32.xlu0 %v5654_v25, %s5689_s18 }
0x2d31   :  { %v5656_v39 = vpop.eup %5655 }
0x2d32   :  { %v3605_v22 = vadd.f32 1.0, %v5656_v39 }
0x2d34   :  { %5657 = vrcp.f32 %v3605_v22 }
0x2d3e   :  { %v5658_v24 = vpop.eup %5657 }
0x2d3f   :  { %v3609_v54 = vmul.f32 %v5658_v24, %v6659_v6 }
0x2da2   :  { %v3612_v27 = vpop.permute.xlu0 %3611 }
0x2da3   :  { %v3614_v29 = vmul.f32 %v5658_v24, %v3612_v27 }
0x2da5   :  { %3616 = vrot.lane.b32.xlu1 %v3614_v29, %s5690_s19 }
0x2e17   :  { %v3617_v42 = vpop.permute.xlu1 %3616 }
0x2e18   :  { %v6662_v46 = vadd.f32 %v3617_v42, %v3609_v54 }
0x2e1a   :  { %5659 = vtanh.f32 %v6662_v46 }
0x2e24   :  { %v5660_v1 = vpop.eup %5659 }
0x2e25   :  { %3622 = vrot.lane.b32.xlu0 %v5660_v1, %s5689_s18 }
0x2e29   :  { %3637 = vrot.lane.b32.xlu0 %v6608_v51, %s5689_s18  ;;  %v3923_v51 = vld [vmem:[%s6797_s4] sm:$0xff] }
0x2e97   :  { %v3623_v49 = vpop.permute.xlu0 %3622 }
0x2e98   :  { %v3625_v53 = vmul.f32 %v5658_v24, %v3623_v49 }
0x2e9a   :  { %v3627_v59 = vmul.f32 0.9, %v3625_v53 }
0x2e9b   :  { %v3638_v14 = vpop.permute.xlu0 %3637 }
0x2e9c   :  { %v6669_v30 = vadd.f32 %v3627_v59, %v3626_v2 }
0x2e9e   :  { %3634 = vrot.lane.b32.xlu1 %v6669_v30, %s5690_s19 }
0x2f10   :  { %v3635_v55 = vpop.permute.xlu1 %3634 }
0x2f11   :  { %v3640_v5 = vsel %vm66_vm0, %v3635_v55, %v3638_v14 }
0x2f12   :  { %5169 = vmatmul.mubr.msk.f32.vlgmr.msra.gmra.mrb[36].mxu1 %vm691_vm4, %v3640_v5 }
0x2f13   :  { %5513 = vmatpush3.bf16.msra.mxu1 %v6500_v38  ;;  %5190 = vmatprep.mubr.msk.f32.mxu1 %vm5687_vm1, %v5688_v31 }
0x2f14   :  { %5514 = vmatprep.subr.bf16.mxu1 %v5686_v20 }
0x2f17   :  { %5516 = vmatpush3.bf16.msra.mxu1 %v6514_v52  ;;  %v3263_v52 = vmul.f32 0.9, %v6603_v44 }
0x2f18   :  { %5529 = vmatprep.subr.bf16.mxu1 %v5686_v20 }
0x2f19   :  { %v6686_v57 = vadd.f32 %v3263_v52, %v3262_v26 }
0x2fe5   :  { %v3718_v32 = vpop.f32.mrb[36].mxu1 }
0x2fe6   :  { %v3728_v4 = vadd.f32 %v6467_v18, %v3718_v32  ;;  %v5170_v48 = vpop.f32.mrb[37].mxu1 }
0x2fe8   :  { %5661 = vtanh.f32 %v3728_v4  ;;  %v4424_v50 = vmul.f32 -1.442695, %v3728_v4 }
0x2fea   :  { %5663 = vpow2.f32 %v4424_v50 }
0x2ff2   :  { %v5662_v15 = vpop.eup %5661 }
0x2ff3   :  { %3738 = vrot.lane.b32.xlu1 %v5662_v15, %s5689_s18 }
0x2ff4   :  { %v5664_v38 = vpop.eup %5663 }
0x2ff5   :  { %v3732_v62 = vadd.f32 1.0, %v5664_v38 }
0x2ff7   :  { %5665 = vrcp.f32 %v3732_v62 }
0x3001   :  { %v5666_v60 = vpop.eup %5665 }
0x3002   :  { %v3736_v61 = vmul.f32 %v5666_v60, %v6686_v57 }
0x3065   :  { %v3739_v8 = vpop.permute.xlu1 %3738 }
0x3066   :  { %v3741_v11 = vmul.f32 %v5666_v60, %v3739_v8 }
0x3068   :  { %3743 = vrot.lane.b32.xlu0 %v3741_v11, %s5690_s19 }
0x30da   :  { %v3744_v45 = vpop.permute.xlu0 %3743 }
0x30db   :  { %v6689_v21 = vadd.f32 %v3744_v45, %v3736_v61 }
0x30dd   :  { %5667 = vtanh.f32 %v6689_v21 }
0x30e7   :  { %v5668_v37 = vpop.eup %5667 }
0x30e8   :  { %3749 = vrot.lane.b32.xlu1 %v5668_v37, %s5689_s18 }
0x315a   :  { %v3750_v58 = vpop.permute.xlu1 %3749 }
0x315b   :  { %v3752_v40 = vmul.f32 %v5666_v60, %v3750_v58  ;;  %v4120_v60 = vmul.f32 0.1, %v6669_v30 }
0x315d   :  { %v3754_v25 = vmul.f32 0.9, %v3752_v40 }
0x315f   :  { %v6694_v44 = vadd.f32 %v3754_v25, %v3753_v16 }
0x3161   :  { %3765 = vrot.lane.b32.xlu0 %v6694_v44, %s5690_s19 }
0x3165   :  { %4012 = vrot.lane.b32.xlu0 %v6669_v30, %s5691_s30 }
0x31d3   :  { %v3766_v10 = vpop.permute.xlu0 %3765 }
0x31d4   :  { %5180 = vmatmul.mubr.msk.f32.vlgmr.msra.gmra.mrb[52].mxu0 %vm66_vm0, %v3766_v10  ;;  %5191 = vmatmul.mubr.msk.f32.vlgmr.msra.gmra.mrb[38].mxu1 %vm66_vm0, %v3766_v10 }
0x31d5   :  { %5197 = vmatprep.mubr.msk.f32.mxu0 %vm5687_vm1, %v5688_v31  ;;  %5531 = vmatpush3.bf16.msra.mxu1 %v6421_v47  ;;  %v3924_v47 = vld [vmem:[%s6797_s4 + $0x8] sm:$0xff]  ;;  %s5693_s4 = smov 80  }
0x31d6   :  { %5532 = vmatprep.subr.bf16.mxu1 %v5686_v20  ;;  %5231 = vmatprep.mubr.msk.f32.mxu1 %vm5687_vm1, %v5688_v31  ;;  %v5518_v43 = vpack.c.bf16 %v3924_v47, %v3923_v51  ;;  %v3757_v51 = vmul.f32 0.9, %v6689_v21  ;;  %v3756_v47 = vmul.f32 0.1, %v6686_v57  ;;  %v3269_v21 = vld [vmem:[#allocation3 + $0x28] sm:$0xff] }
0x31d7   :  { %v4013_v53 = vpop.permute.xlu0 %4012  ;;  %v3342_v57 = vadd.f32 %v6634_v13, %v3269_v21  ;;  %v2775_v13 = vld [vmem:[#allocation3 + $0x20] sm:$0xff] }
0x31d8   :  { %5519 = vmatpush3.bf16.msra.mxu0 %v5518_v43 }
0x31d9   :  { %5534 = vmatpush3.bf16.msra.mxu1 %v6427_v7  ;;  %v3921_v7 = vld [vmem:[%s6798_s1 + $0x38] sm:$0xff]  ;;  %5520 = vmatprep.subr.bf16.mxu0 %v5686_v20  ;;  %s5692_s1 = smov 16  }
0x31da   :  { %5535 = vmatprep.subr.bf16.mxu1 %v5686_v20  ;;  %4007 = vrot.lane.b32.xlu1 %v3921_v7, %s5685_s16 }
0x31dd   :  { %5537 = vmatpush3.bf16.msra.mxu1 %v6438_v9 }
0x31de   :  { %5538 = vmatprep.subr.bf16.mxu1 %v5686_v20 }
0x31e1   :  { %5540 = vmatpush3.bf16.msra.mxu1 %v6450_v34  ;;  %v3849_v34 = vld [vmem:[#allocation4 + $0x30] sm:$0xff] }
0x324c   :  { %v4008_v1 = vpop.permute.xlu1 %4007 }
0x32a7   :  { %v6724_v9 = vpop.f32.mrb[52].mxu0  ;;  %v3916_v39 = vpop.f32.mrb[38].mxu1 }
0x32a8   :  { %v3917_v22 = vadd.f32 %v3916_v39, %v3849_v34  ;;  %v5181_v24 = vpop.f32.mrb[53].mxu0  ;;  %v5192_v27 = vpop.f32.mrb[39].mxu1 }
0x32a9   :  { %v2281_v27 = vld [vmem:[#allocation3 + $0x18] sm:$0xff] }
0x32aa   :  { %v3920_v29 = vmax.f32 %v3917_v22, 0.0  ;;  %v1293_v22 = vld [vmem:[#allocation3 + $0x8] sm:$0xff] }
0x32ab   :  { %v1366_v24 = vadd.f32 %v6184_v41, %v1293_v22 }
0x32ac   :  { %v3922_v33 = vmul.f32 %v3921_v7, %v3920_v29  ;;  %v2354_v29 = vadd.f32 %v6356_v12, %v2281_v27  ;;  %v1787_v12 = vld [vmem:[#allocation3 + $0x10] sm:$0xff] }
0x32ae   :  { %5198 = vmatmul.mubr.msk.f32.vlgmr.msra.gmra.mrb[54].mxu0 %vm313_vm2, %v3922_v33 }
0x32af   :  { %5522 = vmatpush3.bf16.msra.mxu0 %v6364_v19  ;;  %5212 = vmatprep.mubr.msk.f32.mxu0 %vm5687_vm1, %v5688_v31 }
0x32b0   :  { %5523 = vmatprep.subr.bf16.mxu0 %v5686_v20 }
0x32b3   :  { %5525 = vmatpush3.bf16.msra.mxu0 %v6377_v17 }
0x32b4   :  { %5526 = vmatprep.subr.bf16.mxu0 %v5686_v20 }
0x32b7   :  { %5528 = vmatpush3.bf16.msra.mxu0 %v6387_v36 }
0x32b8   :  { %5541 = vmatprep.subr.bf16.mxu0 %v5686_v20 }
0x3381   :  { %v4001_v35 = vpop.f32.mrb[54].mxu0 }
0x3382   :  { %v4002_v54 = vadd.f32 %v6394_v23, %v4001_v35  ;;  %v5199_v42 = vpop.f32.mrb[55].mxu0 }
0x3384   :  { %v4005_v49 = vmax.f32 %v4002_v54, 0.0  ;;  %v4244_v54 = vmul.f32 0.1, %v6694_v44 }
0x3386   :  { %v4010_v19 = vmul.f32 %v4008_v1, %v4005_v49  ;;  %v1860_v49 = vadd.f32 %v6278_v56, %v1787_v12 }
0x3388   :  { %v4015_v2 = vsel %vm313_vm2, %v4010_v19, %v4013_v53  ;;  %v2848_v19 = vadd.f32 %v6548_v28, %v2775_v13 }
0x3389   :  { %5213 = vmatmul.mubr.msk.f32.vlgmr.msra.gmra.mrb[56].mxu0 %vm574_vm3, %v4015_v2 }
0x338a   :  { %5543 = vmatpush3.bf16.msra.mxu0 %v6489_v63  ;;  %5242 = vmatprep.mubr.msk.f32.mxu0 %vm5687_vm1, %v5688_v31 }
0x338b   :  { %5544 = vmatprep.subr.bf16.mxu0 %v5686_v20  ;;  %v3630_v20 = vmul.f32 0.9, %v6662_v46 }
0x338e   :  { %5546 = vmatpush3.bf16.msra.mxu0 %v6510_v0  ;;  %v3629_v0 = vmul.f32 0.1, %v6659_v6 }
0x345c   :  { %v4091_v17 = vpop.f32.mrb[56].mxu0 }
0x345d   :  { %v4095_v36 = vadd.f32 %v4091_v17, %v5942_v3  ;;  %v5214_v23 = vpop.f32.mrb[57].mxu0  ;;  %v3631_v3 = vadd.f32 %v3630_v20, %v3629_v0 }
0x345e   :  { %v4251_v23 = vld [vmem:[#allocation3 + $0x38] sm:$0xff] }
0x345f   :  { %5669 = vtanh.f32 %v4095_v36  ;;  %v4430_v14 = vmul.f32 -1.442695, %v4095_v36 }
0x3461   :  { %5671 = vpow2.f32 %v4430_v14 }
0x3469   :  { %v5670_v59 = vpop.eup %5669 }
0x346a   :  { %4105 = vrot.lane.b32.xlu1 %v5670_v59, %s5689_s18 }
0x346b   :  { %v5672_v55 = vpop.eup %5671 }
0x346c   :  { %v4099_v5 = vadd.f32 1.0, %v5672_v55 }
0x346e   :  { %5673 = vrcp.f32 %v4099_v5 }
0x3478   :  { %v5674_v63 = vpop.eup %5673 }
0x3479   :  { %v4103_v4 = vmul.f32 %v5674_v63, %v3631_v3 }
0x34dc   :  { %v4106_v32 = vpop.permute.xlu1 %4105 }
0x34dd   :  { %v4108_v31 = vmul.f32 %v5674_v63, %v4106_v32 }
0x34df   :  { %4110 = vrot.lane.b32.xlu0 %v4108_v31, %s5690_s19 }
0x3551   :  { %v4111_v48 = vpop.permute.xlu0 %4110 }
0x3552   :  { %v4113_v15 = vadd.f32 %v4111_v48, %v4103_v4 }
0x3554   :  { %5675 = vtanh.f32 %v4113_v15 }
0x355e   :  { %v5676_v50 = vpop.eup %5675 }
0x355f   :  { %4116 = vrot.lane.b32.xlu1 %v5676_v50, %s5689_s18 }
0x3563   :  { %4128 = vrot.lane.b32.xlu1 %v6694_v44, %s5689_s18  ;;  %v3763_v44 = vld [vmem:[#allocation3 + $0x30] sm:$0xff] }
0x3564   :  { %v3836_v53 = vadd.f32 %v6724_v9, %v3763_v44 }
0x35d1   :  { %v4117_v38 = vpop.permute.xlu1 %4116 }
0x35d2   :  { %v4119_v62 = vmul.f32 %v5674_v63, %v4117_v38 }
0x35d4   :  { %v4121_v8 = vmul.f32 0.9, %v4119_v62 }
0x35d5   :  { %v4129_v6 = vpop.permute.xlu1 %4128 }
0x35d6   :  { %v4122_v11 = vadd.f32 %v4121_v8, %v4120_v60 }
0x35d8   :  { %4125 = vrot.lane.b32.xlu0 %v4122_v11, %s5690_s19 }
0x364a   :  { %v4126_v46 = vpop.permute.xlu0 %4125 }
0x364b   :  { %v4131_v52 = vsel %vm66_vm0, %v4126_v46, %v4129_v6 }
0x364c   :  { %5232 = vmatmul.mubr.msk.f32.vlgmr.msra.gmra.mrb[40].mxu1 %vm691_vm4, %v4131_v52 }
0x371f   :  { %v4209_v26 = vpop.f32.mrb[40].mxu1 }
0x3720   :  { %v4219_v61 = vadd.f32 %v6467_v18, %v4209_v26  ;;  %v5233_v45 = vpop.f32.mrb[41].mxu1  ;;  %v3758_v18 = vadd.f32 %v3757_v51, %v3756_v47 }
0x3722   :  { %5677 = vtanh.f32 %v4219_v61  ;;  %v4433_v58 = vmul.f32 -1.442695, %v4219_v61 }
0x3724   :  { %5679 = vpow2.f32 %v4433_v58 }
0x372c   :  { %v5678_v37 = vpop.eup %5677 }
0x372d   :  { %4229 = vrot.lane.b32.xlu0 %v5678_v37, %s5689_s18 }
0x372e   :  { %v5680_v30 = vpop.eup %5679 }
0x372f   :  { %v4223_v40 = vadd.f32 1.0, %v5680_v30 }
0x3731   :  { %5681 = vrcp.f32 %v4223_v40 }
0x373b   :  { %v5682_v16 = vpop.eup %5681 }
0x373c   :  { %v4227_v43 = vmul.f32 %v5682_v16, %v3758_v18 }
0x379f   :  { %v4230_v25 = vpop.permute.xlu0 %4229 }
0x37a0   :  { %v4232_v10 = vmul.f32 %v5682_v16, %v4230_v25 }
0x37a2   :  { %4234 = vrot.lane.b32.xlu1 %v4232_v10, %s5690_s19 }
0x3814   :  { %v4235_v7 = vpop.permute.xlu1 %4234 }
0x3815   :  { %v4237_v34 = vadd.f32 %v4235_v7, %v4227_v43 }
0x3817   :  { %5683 = vtanh.f32 %v4237_v34 }
0x3821   :  { %v5684_v39 = vpop.eup %5683 }
0x3822   :  { %4240 = vrot.lane.b32.xlu0 %v5684_v39, %s5689_s18 }
0x3826   :  { %1370 = vrot.lane.b32.xlu0 %v1366_v24, %s5692_s1 }
0x382a   :  { %2358 = vrot.lane.b32.xlu0 %v2354_v29, %s5691_s30  ;;  %s5694_s30 = smov 96  }
0x382e   :  { %3346 = vrot.lane.b32.xlu0 %v3342_v57, %s5693_s4 }
0x3894   :  { %v4241_v33 = vpop.permute.xlu0 %4240 }
0x3895   :  { %v4243_v35 = vmul.f32 %v5682_v16, %v4241_v33 }
0x3897   :  { %v4245_v42 = vmul.f32 0.9, %v4243_v35 }
0x3898   :  { %v1371_v1 = vpop.permute.xlu0 %1370 }
0x3899   :  { %v4246_v41 = vadd.f32 %v4245_v42, %v4244_v54  ;;  %1374 = vst.msk [vmem:[%s6809_s14] sm:$0xff] %vm1373_vm5, %v1371_v1 }
0x389b   :  { %4253 = vrot.lane.b32.xlu1 %v4246_v41, %s5690_s19 }
0x389c   :  { %v2359_v17 = vpop.permute.xlu0 %2358 }
0x389f   :  { %1864 = vrot.lane.b32.xlu1 %v1860_v49, %s5690_s19 }
0x38a0   :  { %v3347_v28 = vpop.permute.xlu0 %3346 }
0x38a3   :  { %2852 = vrot.lane.b32.xlu1 %v2848_v19, %s5689_s18 }
0x38a7   :  { %3840 = vrot.lane.b32.xlu1 %v3836_v53, %s5694_s30 }
0x390d   :  { %v4254_v2 = vpop.permute.xlu1 %4253 }
0x390e   :  { %5243 = vmatmul.mubr.msk.f32.vlgmr.msra.gmra.mrb[58].mxu0 %vm66_vm0, %v4254_v2 }
0x3911   :  { %v1865_v36 = vpop.permute.xlu1 %1864 }
0x3912   :  { %1868 = vst.msk [vmem:[%s6809_s14] sm:$0xff] %vm1867_vm6, %v1865_v36 }
0x3913   :  { %2362 = vst.msk [vmem:[%s6809_s14] sm:$0xff] %vm2361_vm7, %v2359_v17 }
0x3915   :  { %v2853_v56 = vpop.permute.xlu1 %2852 }
0x3916   :  { %2856 = vst.msk [vmem:[%s6809_s14] sm:$0xff] %vm2855_vm8, %v2853_v56 }
0x3917   :  { %3350 = vst.msk [vmem:[%s6809_s14] sm:$0xff] %vm3349_vm9, %v3347_v28 }
0x3919   :  { %v3841_v9 = vpop.permute.xlu1 %3840 }
0x391a   :  { %3844 = vst.msk [vmem:[%s6809_s14] sm:$0xff] %vm3843_vm10, %v3841_v9 }
0x39e1   :  { %v4323_v59 = vpop.f32.mrb[58].mxu0 }
0x39e2   :  { %v4324_v14 = vadd.f32 %v4323_v59, %v4251_v23  ;;  %v5244_v55 = vpop.f32.mrb[59].mxu0 }
0x39e4   :  { %4328 = vrot.lane.b32.xlu0 %v4324_v14, %s5685_s16 }
0x3a56   :  { %v4329_v5 = vpop.permute.xlu0 %4328 }
0x3a57   :  { %4332 = vst.msk [vmem:[%s6809_s14] sm:$0xff] %vm4331_vm11, %v4329_v5 }

</bundles_post_ra>
